<compile_context>
chip_gen: v6e
topology: v6e:2x2x1
jax: 0.10.0
libtpu: 0.0.40
codegen_flags: <defaults>
</compile_context>

<pallas_src>
import math
from collections import namedtuple
from functools import partial

import jax
import jax.numpy as jnp
from jax.experimental import pallas as pl
from jax.experimental.pallas import tpu as pltpu

ViTSelfAttentionHGOutput = namedtuple(
    "ViTEncoderWithAttentionHGOutput", ["out", "t_length", "attn_weights"]
)

LN_EPS = 1e-12                 # HF ViT layer_norm_eps
ACT_DTYPE = jnp.bfloat16       # residual-stream / activation storage dtype
MM_DTYPE = jnp.bfloat16        # MXU operand dtype (f32 accumulation everywhere)
_INV_SQRT2 = 1.0 / math.sqrt(2.0)


# ----------------------------------------------------------------------------
# Small in-kernel helpers
# ----------------------------------------------------------------------------
def _gelu_exact(x):
    # exact (erf) GELU, as used by HF ViT ("gelu")
    return 0.5 * x * (1.0 + jax.lax.erf(x * _INV_SQRT2))


def _layernorm_f32(x, g, b, eps=LN_EPS):
    xf = x.astype(jnp.float32)
    mu = jnp.mean(xf, axis=-1, keepdims=True)
    var = jnp.mean(jnp.square(xf - mu), axis=-1, keepdims=True)
    return (xf - mu) * jax.lax.rsqrt(var + eps) * g + b


def _frames_per_block(B, S, target_rows=512, max_rows=2048):
    """How many frames a row-wise kernel processes per grid step (kb | B)."""
    kb = 1
    for cand in range(1, B + 1):
        if B % cand != 0:
            continue
        if cand * S > max_rows:
            break
        kb = cand
        if cand * S >= target_rows:
            break
    return kb


def _cparams():
    # single leading grid axis, parallel -> shards across v7x's two TensorCores
    return pltpu.CompilerParams(dimension_semantics=("parallel",))


# ----------------------------------------------------------------------------
# Fused (LayerNorm?) + Linear (+ GELU?) (+ residual?) kernel
# ----------------------------------------------------------------------------
def _make_linear_kernel(*, use_ln, activation, use_res):
    def kernel(*refs):
        it = iter(refs)
        x_ref = next(it)
        g_ref = bln_ref = r_ref = None
        if use_ln:
            g_ref = next(it)
            bln_ref = next(it)
        w_ref = next(it)
        bias_ref = next(it)
        if use_res:
            r_ref = next(it)
        o_ref = next(it)

        w = w_ref[...].astype(MM_DTYPE)            # one weight DMA per block
        bias = bias_ref[...].astype(jnp.float32)
        for j in range(x_ref.shape[0]):            # static unroll over frames
            x = x_ref[j]                           # (S, Din)
            if use_ln:
                x = _layernorm_f32(x, g_ref[...], bln_ref[...])
            y = jnp.dot(x.astype(MM_DTYPE), w, preferred_element_type=jnp.float32)
            y = y + bias
            if activation == "gelu":
                y = _gelu_exact(y)
            if use_res:
                y = y + r_ref[j].astype(jnp.float32)
            o_ref[j] = y.astype(o_ref.dtype)

    return kernel


def fused_linear(x, w, b, *, ln_g=None, ln_b=None, residual=None,
                 activation=None, out_dtype=None):
    """y = [residual +] [gelu]( LN?(x) @ w + b ) ; x: (B, S, Din) -> (B, S, Dout)."""
    B, S, Din = x.shape
    Dout = w.shape[1]
    out_dtype = x.dtype if out_dtype is None else out_dtype
    kb = _frames_per_block(B, S)
    use_ln = ln_g is not None
    use_res = residual is not None

    in_specs = [pl.BlockSpec((kb, S, Din), lambda i: (i, 0, 0))]
    args = [x]
    if use_ln:
        in_specs += [pl.BlockSpec((1, Din), lambda i: (0, 0)),
                     pl.BlockSpec((1, Din), lambda i: (0, 0))]
        args += [ln_g.reshape(1, Din).astype(jnp.float32),
                 ln_b.reshape(1, Din).astype(jnp.float32)]
    in_specs += [pl.BlockSpec((Din, Dout), lambda i: (0, 0)),
                 pl.BlockSpec((1, Dout), lambda i: (0, 0))]
    args += [w, b.reshape(1, Dout).astype(jnp.float32)]
    if use_res:
        in_specs += [pl.BlockSpec((kb, S, Dout), lambda i: (i, 0, 0))]
        args += [residual]

    return pl.pallas_call(
        _make_linear_kernel(use_ln=use_ln, activation=activation, use_res=use_res),
        out_shape=jax.ShapeDtypeStruct((B, S, Dout), out_dtype),
        grid=(B // kb,),
        in_specs=in_specs,
        out_specs=pl.BlockSpec((kb, S, Dout), lambda i: (i, 0, 0)),
        compiler_params=_cparams(),
    )(*args)


# ----------------------------------------------------------------------------
# Fused LN2 + fc1 + GELU + fc2 + residual (MLP block)
# ----------------------------------------------------------------------------
def _mlp_kernel(h_ref, g_ref, bln_ref, w1_ref, b1_ref, w2_ref, b2_ref, o_ref):
    w1 = w1_ref[...].astype(MM_DTYPE)
    b1 = b1_ref[...].astype(jnp.float32)
    w2 = w2_ref[...].astype(MM_DTYPE)
    b2 = b2_ref[...].astype(jnp.float32)
    for j in range(h_ref.shape[0]):
        h = h_ref[j]                                              # (S, D)
        xn = _layernorm_f32(h, g_ref[...], bln_ref[...])
        mid = jnp.dot(xn.astype(MM_DTYPE), w1,
                      preferred_element_type=jnp.float32) + b1    # (S, 4D) stays in VMEM
        mid = _gelu_exact(mid)
        out = jnp.dot(mid.astype(MM_DTYPE), w2,
                      preferred_element_type=jnp.float32) + b2
        o_ref[j] = (out + h.astype(jnp.float32)).astype(o_ref.dtype)


def fused_mlp(h, ln_g, ln_b, w1, b1, w2, b2):
    B, S, D = h.shape
    Dmid = w1.shape[1]
    kb = _frames_per_block(B, S)
    return pl.pallas_call(
        _mlp_kernel,
        out_shape=jax.ShapeDtypeStruct((B, S, D), h.dtype),
        grid=(B // kb,),
        in_specs=[
            pl.BlockSpec((kb, S, D), lambda i: (i, 0, 0)),
            pl.BlockSpec((1, D), lambda i: (0, 0)),
            pl.BlockSpec((1, D), lambda i: (0, 0)),
            pl.BlockSpec((D, Dmid), lambda i: (0, 0)),
            pl.BlockSpec((1, Dmid), lambda i: (0, 0)),
            pl.BlockSpec((Dmid, D), lambda i: (0, 0)),
            pl.BlockSpec((1, D), lambda i: (0, 0)),
        ],
        out_specs=pl.BlockSpec((kb, S, D), lambda i: (i, 0, 0)),
        compiler_params=_cparams(),
    )(h,
      ln_g.reshape(1, D).astype(jnp.float32),
      ln_b.reshape(1, D).astype(jnp.float32),
      w1, b1.reshape(1, Dmid).astype(jnp.float32),
      w2, b2.reshape(1, D).astype(jnp.float32))


# ----------------------------------------------------------------------------
# Self-attention: all heads in-kernel, emits hooked probs (CLS key dropped)
# ----------------------------------------------------------------------------
def _attention_kernel(qkv_ref, ctx_ref, probs_ref, *, num_heads, head_dim, scale):
    D = num_heads * head_dim
    ctx_cols = []
    for h in range(num_heads):                       # static unroll over heads
        q = qkv_ref[:, h * head_dim:(h + 1) * head_dim].astype(MM_DTYPE)
        k = qkv_ref[:, D + h * head_dim:D + (h + 1) * head_dim].astype(MM_DTYPE)
        v = qkv_ref[:, 2 * D + h * head_dim:2 * D + (h + 1) * head_dim].astype(MM_DTYPE)
        s = jnp.dot(q, k.T, preferred_element_type=jnp.float32) * scale   # (S, S)
        s = s - jnp.max(s, axis=-1, keepdims=True)
        p = jnp.exp(s)
        denom = jnp.sum(p, axis=-1, keepdims=True)
        p = p * pl.reciprocal(denom, approx=True)                         # EUP reciprocal
        # attention_hook: drop CLS key; write already-sliced probs once (f32).
        probs_ref[h] = p[:, 1:].astype(probs_ref.dtype)
        ctx_cols.append(jnp.dot(p.astype(MM_DTYPE), v,
                                preferred_element_type=jnp.float32))
    # merge heads without any transpose: concat per-head columns, one dense store
    ctx_ref[...] = jnp.concatenate(ctx_cols, axis=-1).astype(ctx_ref.dtype)


def attention_with_hook(qkv, *, num_heads, scale):
    """qkv: (B, S, 3D) -> context (B, S, D), hooked probs (B, heads, S, S-1)."""
    B, S, D3 = qkv.shape
    D = D3 // 3
    hd = D // num_heads
    L = S - 1
    return pl.pallas_call(
        partial(_attention_kernel, num_heads=num_heads, head_dim=hd, scale=scale),
        out_shape=(
            jax.ShapeDtypeStruct((B, S, D), qkv.dtype),
            jax.ShapeDtypeStruct((B, num_heads, S, L), jnp.float32),
        ),
        grid=(B,),
        in_specs=[pl.BlockSpec((None, S, D3), lambda b: (b, 0, 0))],
        out_specs=(
            pl.BlockSpec((None, S, D), lambda b: (b, 0, 0)),
            pl.BlockSpec((None, num_heads, S, L), lambda b: (b, 0, 0, 0)),
        ),
        compiler_params=_cparams(),
    )(qkv)


# ----------------------------------------------------------------------------
# Final LayerNorm fused with CLS selection / patch-token mean pooling
# ----------------------------------------------------------------------------
def _final_pool_kernel(h_ref, g_ref, b_ref, o_ref, *, use_cls_token):
    for j in range(h_ref.shape[0]):
        y = _layernorm_f32(h_ref[j], g_ref[...], b_ref[...])   # (S, D)
        if use_cls_token:
            o_ref[j] = y[0:1, :].astype(o_ref.dtype)
        else:
            o_ref[j] = jnp.mean(y[1:, :], axis=0, keepdims=True).astype(o_ref.dtype)


def final_layernorm_pool(h, g, b, *, use_cls_token):
    B, S, D = h.shape
    kb = _frames_per_block(B, S)
    return pl.pallas_call(
        partial(_final_pool_kernel, use_cls_token=use_cls_token),
        out_shape=jax.ShapeDtypeStruct((B, 1, D), jnp.float32),
        grid=(B // kb,),
        in_specs=[
            pl.BlockSpec((kb, S, D), lambda i: (i, 0, 0)),
            pl.BlockSpec((1, D), lambda i: (0, 0)),
            pl.BlockSpec((1, D), lambda i: (0, 0)),
        ],
        out_specs=pl.BlockSpec((kb, 1, D), lambda i: (i, 0, 0)),
        compiler_params=_cparams(),
    )(h, g.reshape(1, D).astype(jnp.float32), b.reshape(1, D).astype(jnp.float32))


# ----------------------------------------------------------------------------
# Model forward (glue in JAX, hot paths in fused Pallas kernels)
# ----------------------------------------------------------------------------
@partial(jax.jit, static_argnames=("patch_size", "num_heads", "use_cls_token"))
def vit_encoder_with_attn_forward(
    params, x, t_length, *, patch_size, num_heads, use_cls_token=False
):
    N, C, T, H, W = x.shape
    B = N * T
    P = patch_size
    gh, gw = H // P, W // P
    L = gh * gw

    # 'n c t h w -> (n t) c h w'
    frames = jnp.transpose(x, (0, 2, 1, 3, 4)).reshape(B, C, H, W)

    # TODO(synk): patchify left as one XLA strided transpose of the raw input
    # (equivalent to Conv2d(kernel=P, stride=P) + flatten(2).transpose(1,2)).
    patches = (
        frames.reshape(B, C, gh, P, gw, P)
        .transpose(0, 2, 4, 1, 3, 5)
        .reshape(B, L, C * P * P)
    )

    # Patch embedding (bf16 matmul, f32 accumulation).
    emb = fused_linear(patches, params["patch_w"], params["patch_b"],
                       out_dtype=jnp.float32)                      # (B, L, D)
    D = emb.shape[-1]
    hd = D // num_heads
    scale = 1.0 / math.sqrt(hd)

    cls = jnp.broadcast_to(params["cls_token"].astype(jnp.float32), (B, 1, D))
    h = (jnp.concatenate([cls, emb], axis=1) + params["pos_emb"]).astype(ACT_DTYPE)
    S = h.shape[1]

    attn_cache = []  # emulates the forward-hook attention cache
    for layer in params["layers"]:
        # fused LN1 + QKV projection: reads h once, one (D, 3D) weight DMA
        qkv = fused_linear(h, layer["qkv_w"], layer["qkv_b"],
                           ln_g=layer["ln1_g"], ln_b=layer["ln1_b"])   # (B, S, 3D)

        # per-frame attention over all heads, hooked probs emitted directly
        ctx, hooked = attention_with_hook(qkv, num_heads=num_heads, scale=scale)
        attn_cache.append(hooked)                                      # (B, heads, S, L)

        # fused output projection + residual add
        h = fused_linear(ctx, layer["o_w"], layer["o_b"], residual=h)

        # fused LN2 + fc1 + GELU + fc2 + residual
        h = fused_mlp(h, layer["ln2_g"], layer["ln2_b"],
                      layer["fc1_w"], layer["fc1_b"],
                      layer["fc2_w"], layer["fc2_b"])

    # final LayerNorm fused with CLS-select / patch-mean pooling
    pooled = final_layernorm_pool(h, params["lnf_g"], params["lnf_b"],
                                  use_cls_token=use_cls_token)          # (B, 1, D) f32
    out = pooled[:, 0, :].reshape(N, T, D).transpose(0, 2, 1)           # (N, D, T)

    # torch.stack(cache, dim=0); 's (n t) heads q (h w) -> t n s heads q h w'
    attn_weight = jnp.stack(attn_cache, axis=0)            # (layers, B, heads, S, L)
    num_layers = attn_weight.shape[0]
    attn_weight = attn_weight.reshape(num_layers, N, T, num_heads, S, gh, gw)
    attn_weight = attn_weight.transpose(2, 1, 0, 3, 4, 5, 6)

    # TODO(synk): the original module raises ValueError whenever the hooks
    # produced attention weights; that control-flow bug is not reproduced —
    # the computed attention weights are returned instead.
    return ViTSelfAttentionHGOutput(out=out, t_length=t_length, attn_weights=attn_weight)


# ----------------------------------------------------------------------------
# Deterministic synthetic parameter init (shapes follow HF ViTModel,
# QKV pre-fused along the output dim; matmul weights stored in bf16)
# ----------------------------------------------------------------------------
def init_params(key, *, channels, patch, hidden, heads, mlp_dim, num_layers, num_patches):
    del heads  # head count only affects runtime reshaping, not parameter shapes
    counter = [0]

    def nxt():
        k = jax.random.fold_in(key, counter[0])
        counter[0] += 1
        return k

    def w(shape, s=0.02, dtype=jnp.float32):
        return (s * jax.random.normal(nxt(), shape, dtype=jnp.float32)).astype(dtype)

    params = {
        "patch_w": w((channels * patch * patch, hidden), dtype=jnp.bfloat16),
        "patch_b": w((hidden,)),
        "cls_token": w((1, 1, hidden)),
        "pos_emb": w((1, 1 + num_patches, hidden)),
        "lnf_g": jnp.ones((hidden,), jnp.float32),
        "lnf_b": jnp.zeros((hidden,), jnp.float32),
        "layers": [],
    }
    for _ in range(num_layers):
        qkv_w = jnp.concatenate(
            [w((hidden, hidden)), w((hidden, hidden)), w((hidden, hidden))], axis=1
        )
        qkv_b = jnp.concatenate([w((hidden,)), w((hidden,)), w((hidden,))])
        params["layers"].append(
            {
                "ln1_g": 1.0 + w((hidden,), 0.01),
                "ln1_b": w((hidden,), 0.01),
                "qkv_w": qkv_w.astype(jnp.bfloat16),
                "qkv_b": qkv_b,
                "o_w": w((hidden, hidden), dtype=jnp.bfloat16),
                "o_b": w((hidden,)),
                "ln2_g": 1.0 + w((hidden,), 0.01),
                "ln2_b": w((hidden,), 0.01),
                "fc1_w": w((hidden, mlp_dim), dtype=jnp.bfloat16),
                "fc1_b": w((mlp_dim,)),
                "fc2_w": w((mlp_dim, hidden), dtype=jnp.bfloat16),
                "fc2_b": w((hidden,)),
            }
        )
    return params


if __name__ == "__main__":
    # Small ViT config: 16x16 images, patch 4 -> 4x4 = 16 patches (+1 CLS).
    N, C, T, H, W = 2, 3, 2, 16, 16
    PATCH, HIDDEN, HEADS, MLP, LAYERS = 4, 32, 2, 64, 2
    GH = GW = H // PATCH
    L = GH * GW

    key = jax.random.PRNGKey(0)
    k_param, k_x = jax.random.split(key)
    params = init_params(
        k_param,
        channels=C,
        patch=PATCH,
        hidden=HIDDEN,
        heads=HEADS,
        mlp_dim=MLP,
        num_layers=LAYERS,
        num_patches=L,
    )
    x = jax.random.normal(k_x, (N, C, T, H, W), dtype=jnp.float32)
    t_length = jnp.array([T, T], dtype=jnp.int32)

    result = vit_encoder_with_attn_forward(
        params, x, t_length, patch_size=PATCH, num_heads=HEADS, use_cls_token=False
    )
    jax.block_until_ready(result.out)
    jax.block_until_ready(result.attn_weights)

    assert result.out.shape == (N, HIDDEN, T), result.out.shape
    assert result.attn_weights.shape == (T, N, LAYERS, HEADS, 1 + L, GH, GW), (
        result.attn_weights.shape
    )
    assert bool(jnp.all(jnp.isfinite(result.out)))
    assert bool(jnp.all(jnp.isfinite(result.attn_weights)))
    # attention probs (over all keys incl. CLS) sum to 1; CLS-dropped rows sum <= 1
    row_sums = jnp.sum(result.attn_weights, axis=(-2, -1))
    assert bool(jnp.all(row_sums <= 1.0 + 1e-3))
    assert bool(jnp.all(row_sums >= 0.0))

    print("KERNEL_OK")
</pallas_src>

<mosaic_0001>
module attributes {stable_mosaic.version = 11 : i64} {
  func.func @kernel(%arg0: i32, %arg1: memref<4x16x48xf32, #tpu.memory_space<vmem>>, %arg2: memref<48x32xbf16, #tpu.memory_space<vmem>>, %arg3: memref<1x32xf32, #tpu.memory_space<vmem>>, %arg4: memref<4x16x32xf32, #tpu.memory_space<vmem>>) attributes {dimension_semantics = [#tpu.dimension_semantics<parallel>], iteration_bounds = array<i64: 1>, scalar_prefetch = 0 : i64, scratch_operands = 0 : i64, tpu.core_type = #tpu.core_type<tc>, window_params = [{transform_indices = @transform_0, window_bounds = array<i64: 4, 16, 48>}, {pipeline_mode = #tpu.pipeline_mode<synchronous>, transform_indices = @transform_1, window_bounds = array<i64: 48, 32>}, {pipeline_mode = #tpu.pipeline_mode<synchronous>, transform_indices = @transform_2, window_bounds = array<i64: 1, 32>}, {transform_indices = @transform_3, window_bounds = array<i64: 4, 16, 32>}]} {
    %c0 = arith.constant 0 : index
    %c0_0 = arith.constant 0 : index
    %0 = vector.load %arg2[%c0, %c0_0] : memref<48x32xbf16, #tpu.memory_space<vmem>>, vector<48x32xbf16>
    %c0_1 = arith.constant 0 : index
    %c0_2 = arith.constant 0 : index
    %1 = vector.load %arg3[%c0_1, %c0_2] : memref<1x32xf32, #tpu.memory_space<vmem>>, vector<1x32xf32>
    %c0_3 = arith.constant 0 : index
    %c0_4 = arith.constant 0 : index
    %c0_5 = arith.constant 0 : index
    %2 = vector.load %arg1[%c0_3, %c0_4, %c0_5] : memref<4x16x48xf32, #tpu.memory_space<vmem>>, vector<1x16x48xf32>
    %3 = vector.shape_cast %2 : vector<1x16x48xf32> to vector<16x48xf32>
    %4 = arith.truncf %3 : vector<16x48xf32> to vector<16x48xbf16>
    %cst = arith.constant dense<0.000000e+00> : vector<16x32xf32>
    %5 = tpu.matmul %4, %0, %cst {dimension_numbers = #tpu.dot_dimension_numbers<[1], [0], [0], [1], [0, 0, 1, 1], [], []>} : vector<16x48xbf16>, vector<48x32xbf16>, vector<16x32xf32> -> vector<16x32xf32>
    %6 = vector.broadcast %1 : vector<1x32xf32> to vector<16x32xf32>
    %7 = arith.addf %5, %6 : vector<16x32xf32>
    %c0_6 = arith.constant 0 : index
    %c0_7 = arith.constant 0 : index
    %c0_8 = arith.constant 0 : index
    %8 = vector.load %arg4[%c0_6, %c0_7, %c0_8] : memref<4x16x32xf32, #tpu.memory_space<vmem>>, vector<1x16x32xf32>
    %9 = vector.shape_cast %8 : vector<1x16x32xf32> to vector<16x32xf32>
    %10 = vector.shape_cast %7 : vector<16x32xf32> to vector<1x16x32xf32>
    tpu.vector_store %arg4[%c0_6, %c0_7, %c0_8], %10 {strides = array<i32>} : memref<4x16x32xf32, #tpu.memory_space<vmem>>, vector<1x16x32xf32>,
    %c1 = arith.constant 1 : index
    %c0_9 = arith.constant 0 : index
    %c0_10 = arith.constant 0 : index
    %11 = vector.load %arg1[%c1, %c0_9, %c0_10] : memref<4x16x48xf32, #tpu.memory_space<vmem>>, vector<1x16x48xf32>
    %12 = vector.shape_cast %11 : vector<1x16x48xf32> to vector<16x48xf32>
    %13 = arith.truncf %12 : vector<16x48xf32> to vector<16x48xbf16>
    %cst_11 = arith.constant dense<0.000000e+00> : vector<16x32xf32>
    %14 = tpu.matmul %13, %0, %cst_11 {dimension_numbers = #tpu.dot_dimension_numbers<[1], [0], [0], [1], [0, 0, 1, 1], [], []>} : vector<16x48xbf16>, vector<48x32xbf16>, vector<16x32xf32> -> vector<16x32xf32>
    %15 = vector.broadcast %1 : vector<1x32xf32> to vector<16x32xf32>
    %16 = arith.addf %14, %15 : vector<16x32xf32>
    %c1_12 = arith.constant 1 : index
    %c0_13 = arith.constant 0 : index
    %c0_14 = arith.constant 0 : index
    %17 = vector.load %arg4[%c1_12, %c0_13, %c0_14] : memref<4x16x32xf32, #tpu.memory_space<vmem>>, vector<1x16x32xf32>
    %18 = vector.shape_cast %17 : vector<1x16x32xf32> to vector<16x32xf32>
    %19 = vector.shape_cast %16 : vector<16x32xf32> to vector<1x16x32xf32>
    tpu.vector_store %arg4[%c1_12, %c0_13, %c0_14], %19 {strides = array<i32>} : memref<4x16x32xf32, #tpu.memory_space<vmem>>, vector<1x16x32xf32>,
    %c2 = arith.constant 2 : index
    %c0_15 = arith.constant 0 : index
    %c0_16 = arith.constant 0 : index
    %20 = vector.load %arg1[%c2, %c0_15, %c0_16] : memref<4x16x48xf32, #tpu.memory_space<vmem>>, vector<1x16x48xf32>
    %21 = vector.shape_cast %20 : vector<1x16x48xf32> to vector<16x48xf32>
    %22 = arith.truncf %21 : vector<16x48xf32> to vector<16x48xbf16>
    %cst_17 = arith.constant dense<0.000000e+00> : vector<16x32xf32>
    %23 = tpu.matmul %22, %0, %cst_17 {dimension_numbers = #tpu.dot_dimension_numbers<[1], [0], [0], [1], [0, 0, 1, 1], [], []>} : vector<16x48xbf16>, vector<48x32xbf16>, vector<16x32xf32> -> vector<16x32xf32>
    %24 = vector.broadcast %1 : vector<1x32xf32> to vector<16x32xf32>
    %25 = arith.addf %23, %24 : vector<16x32xf32>
    %c2_18 = arith.constant 2 : index
    %c0_19 = arith.constant 0 : index
    %c0_20 = arith.constant 0 : index
    %26 = vector.load %arg4[%c2_18, %c0_19, %c0_20] : memref<4x16x32xf32, #tpu.memory_space<vmem>>, vector<1x16x32xf32>
    %27 = vector.shape_cast %26 : vector<1x16x32xf32> to vector<16x32xf32>
    %28 = vector.shape_cast %25 : vector<16x32xf32> to vector<1x16x32xf32>
    tpu.vector_store %arg4[%c2_18, %c0_19, %c0_20], %28 {strides = array<i32>} : memref<4x16x32xf32, #tpu.memory_space<vmem>>, vector<1x16x32xf32>,
    %c3 = arith.constant 3 : index
    %c0_21 = arith.constant 0 : index
    %c0_22 = arith.constant 0 : index
    %29 = vector.load %arg1[%c3, %c0_21, %c0_22] : memref<4x16x48xf32, #tpu.memory_space<vmem>>, vector<1x16x48xf32>
    %30 = vector.shape_cast %29 : vector<1x16x48xf32> to vector<16x48xf32>
    %31 = arith.truncf %30 : vector<16x48xf32> to vector<16x48xbf16>
    %cst_23 = arith.constant dense<0.000000e+00> : vector<16x32xf32>
    %32 = tpu.matmul %31, %0, %cst_23 {dimension_numbers = #tpu.dot_dimension_numbers<[1], [0], [0], [1], [0, 0, 1, 1], [], []>} : vector<16x48xbf16>, vector<48x32xbf16>, vector<16x32xf32> -> vector<16x32xf32>
    %33 = vector.broadcast %1 : vector<1x32xf32> to vector<16x32xf32>
    %34 = arith.addf %32, %33 : vector<16x32xf32>
    %c3_24 = arith.constant 3 : index
    %c0_25 = arith.constant 0 : index
    %c0_26 = arith.constant 0 : index
    %35 = vector.load %arg4[%c3_24, %c0_25, %c0_26] : memref<4x16x32xf32, #tpu.memory_space<vmem>>, vector<1x16x32xf32>
    %36 = vector.shape_cast %35 : vector<1x16x32xf32> to vector<16x32xf32>
    %37 = vector.shape_cast %34 : vector<16x32xf32> to vector<1x16x32xf32>
    tpu.vector_store %arg4[%c3_24, %c0_25, %c0_26], %37 {strides = array<i32>} : memref<4x16x32xf32, #tpu.memory_space<vmem>>, vector<1x16x32xf32>,
    return
  }
  func.func @transform_0(%arg0: i32) -> (i32, i32, i32) {
    %c0_i32 = arith.constant 0 : i32
    %c0_i32_0 = arith.constant 0 : i32
    %c0_i32_1 = arith.constant 0 : i32
    return %arg0, %c0_i32, %c0_i32_0 : i32, i32, i32
  }
  func.func @transform_1(%arg0: i32) -> (i32, i32) {
    %c0_i32 = arith.constant 0 : i32
    %c0_i32_0 = arith.constant 0 : i32
    %c0_i32_1 = arith.constant 0 : i32
    return %c0_i32, %c0_i32_0 : i32, i32
  }
  func.func @transform_2(%arg0: i32) -> (i32, i32) {
    %c0_i32 = arith.constant 0 : i32
    %c0_i32_0 = arith.constant 0 : i32
    %c0_i32_1 = arith.constant 0 : i32
    return %c0_i32, %c0_i32_0 : i32, i32
  }
  func.func @transform_3(%arg0: i32) -> (i32, i32, i32) {
    %c0_i32 = arith.constant 0 : i32
    %c0_i32_0 = arith.constant 0 : i32
    %c0_i32_1 = arith.constant 0 : i32
    return %arg0, %c0_i32, %c0_i32_0 : i32, i32, i32
  }
}

module attributes {stable_mosaic.version = 11 : i64} {
  func.func @_attention_kernel(%arg0: i32, %arg1: memref<1x17x96xbf16, #tpu.memory_space<vmem>>, %arg2: memref<1x17x32xbf16, #tpu.memory_space<vmem>>, %arg3: memref<1x2x17x16xf32, #tpu.memory_space<vmem>>) attributes {dimension_semantics = [#tpu.dimension_semantics<parallel>], iteration_bounds = array<i64: 4>, scalar_prefetch = 0 : i64, scratch_operands = 0 : i64, tpu.core_type = #tpu.core_type<tc>, window_params = [{transform_indices = @transform_0, window_bounds = array<i64: 1, 17, 96>}, {transform_indices = @transform_1, window_bounds = array<i64: 1, 17, 32>}, {transform_indices = @transform_2, window_bounds = array<i64: 1, 2, 17, 16>}]} {
    %c0 = arith.constant 0 : index
    %c0_0 = arith.constant 0 : index
    %c0_1 = arith.constant 0 : index
    %0 = vector.load %arg1[%c0, %c0_0, %c0_1] : memref<1x17x96xbf16, #tpu.memory_space<vmem>>, vector<1x17x16xbf16>
    %1 = vector.shape_cast %0 : vector<1x17x16xbf16> to vector<17x16xbf16>
    %c0_2 = arith.constant 0 : index
    %c0_3 = arith.constant 0 : index
    %c32 = arith.constant 32 : index
    %2 = vector.load %arg1[%c0_2, %c0_3, %c32] : memref<1x17x96xbf16, #tpu.memory_space<vmem>>, vector<1x17x16xbf16>
    %3 = vector.shape_cast %2 : vector<1x17x16xbf16> to vector<17x16xbf16>
    %c0_4 = arith.constant 0 : index
    %c0_5 = arith.constant 0 : index
    %c64 = arith.constant 64 : index
    %4 = vector.load %arg1[%c0_4, %c0_5, %c64] : memref<1x17x96xbf16, #tpu.memory_space<vmem>>, vector<1x17x16xbf16>
    %5 = vector.shape_cast %4 : vector<1x17x16xbf16> to vector<17x16xbf16>
    %6 = tpu.transpose %3, [1, 0] : vector<17x16xbf16> -> vector<16x17xbf16>
    %cst = arith.constant dense<0.000000e+00> : vector<17x17xf32>
    %7 = tpu.matmul %1, %6, %cst {dimension_numbers = #tpu.dot_dimension_numbers<[1], [0], [0], [1], [0, 0, 1, 1], [], []>} : vector<17x16xbf16>, vector<16x17xbf16>, vector<17x17xf32> -> vector<17x17xf32>
    %cst_6 = arith.constant 2.500000e-01 : f32
    %8 = vector.broadcast %cst_6 : f32 to vector<17x17xf32>
    %9 = arith.mulf %7, %8 : vector<17x17xf32>
    %cst_7 = arith.constant dense<0xFF800000> : vector<17xf32>
    %10 = vector.multi_reduction <maximumf>, %9, %cst_7 [1] : vector<17x17xf32> to vector<17xf32>
    %11 = vector.shape_cast %10 : vector<17xf32> to vector<17x1xf32>
    %12 = vector.broadcast %11 : vector<17x1xf32> to vector<17x17xf32>
    %13 = arith.subf %9, %12 : vector<17x17xf32>
    %14 = math.exp %13 : vector<17x17xf32>
    %cst_8 = arith.constant dense<0.000000e+00> : vector<17xf32>
    %15 = vector.multi_reduction <add>, %14, %cst_8 [1] : vector<17x17xf32> to vector<17xf32>
    %16 = vector.shape_cast %15 : vector<17xf32> to vector<17x1xf32>
    %17 = tpu.reciprocal %16 {approx = true} : vector<17x1xf32> -> vector<17x1xf32>
    %18 = vector.broadcast %17 : vector<17x1xf32> to vector<17x17xf32>
    %19 = arith.mulf %14, %18 : vector<17x17xf32>
    %20 = vector.extract_strided_slice %19 {offsets = [0, 1], sizes = [17, 16], strides = [1, 1]} : vector<17x17xf32> to vector<17x16xf32>
    %c0_9 = arith.constant 0 : index
    %c0_10 = arith.constant 0 : index
    %c0_11 = arith.constant 0 : index
    %c0_12 = arith.constant 0 : index
    %21 = vector.load %arg3[%c0_9, %c0_10, %c0_11, %c0_12] : memref<1x2x17x16xf32, #tpu.memory_space<vmem>>, vector<1x1x17x16xf32>
    %22 = vector.shape_cast %21 : vector<1x1x17x16xf32> to vector<17x16xf32>
    %23 = vector.shape_cast %20 : vector<17x16xf32> to vector<1x1x17x16xf32>
    tpu.vector_store %arg3[%c0_9, %c0_10, %c0_11, %c0_12], %23 {strides = array<i32>} : memref<1x2x17x16xf32, #tpu.memory_space<vmem>>, vector<1x1x17x16xf32>,
    %24 = arith.truncf %19 : vector<17x17xf32> to vector<17x17xbf16>
    %cst_13 = arith.constant dense<0.000000e+00> : vector<17x16xf32>
    %25 = tpu.matmul %24, %5, %cst_13 {dimension_numbers = #tpu.dot_dimension_numbers<[1], [0], [0], [1], [0, 0, 1, 1], [], []>} : vector<17x17xbf16>, vector<17x16xbf16>, vector<17x16xf32> -> vector<17x16xf32>
    %c0_14 = arith.constant 0 : index
    %c0_15 = arith.constant 0 : index
    %c16 = arith.constant 16 : index
    %26 = vector.load %arg1[%c0_14, %c0_15, %c16] : memref<1x17x96xbf16, #tpu.memory_space<vmem>>, vector<1x17x16xbf16>
    %27 = vector.shape_cast %26 : vector<1x17x16xbf16> to vector<17x16xbf16>
    %c0_16 = arith.constant 0 : index
    %c0_17 = arith.constant 0 : index
    %c48 = arith.constant 48 : index
    %28 = vector.load %arg1[%c0_16, %c0_17, %c48] : memref<1x17x96xbf16, #tpu.memory_space<vmem>>, vector<1x17x16xbf16>
    %29 = vector.shape_cast %28 : vector<1x17x16xbf16> to vector<17x16xbf16>
    %c0_18 = arith.constant 0 : index
    %c0_19 = arith.constant 0 : index
    %c80 = arith.constant 80 : index
    %30 = vector.load %arg1[%c0_18, %c0_19, %c80] : memref<1x17x96xbf16, #tpu.memory_space<vmem>>, vector<1x17x16xbf16>
    %31 = vector.shape_cast %30 : vector<1x17x16xbf16> to vector<17x16xbf16>
    %32 = tpu.transpose %29, [1, 0] : vector<17x16xbf16> -> vector<16x17xbf16>
    %cst_20 = arith.constant dense<0.000000e+00> : vector<17x17xf32>
    %33 = tpu.matmul %27, %32, %cst_20 {dimension_numbers = #tpu.dot_dimension_numbers<[1], [0], [0], [1], [0, 0, 1, 1], [], []>} : vector<17x16xbf16>, vector<16x17xbf16>, vector<17x17xf32> -> vector<17x17xf32>
    %cst_21 = arith.constant 2.500000e-01 : f32
    %34 = vector.broadcast %cst_21 : f32 to vector<17x17xf32>
    %35 = arith.mulf %33, %34 : vector<17x17xf32>
    %cst_22 = arith.constant dense<0xFF800000> : vector<17xf32>
    %36 = vector.multi_reduction <maximumf>, %35, %cst_22 [1] : vector<17x17xf32> to vector<17xf32>
    %37 = vector.shape_cast %36 : vector<17xf32> to vector<17x1xf32>
    %38 = vector.broadcast %37 : vector<17x1xf32> to vector<17x17xf32>
    %39 = arith.subf %35, %38 : vector<17x17xf32>
    %40 = math.exp %39 : vector<17x17xf32>
    %cst_23 = arith.constant dense<0.000000e+00> : vector<17xf32>
    %41 = vector.multi_reduction <add>, %40, %cst_23 [1] : vector<17x17xf32> to vector<17xf32>
    %42 = vector.shape_cast %41 : vector<17xf32> to vector<17x1xf32>
    %43 = tpu.reciprocal %42 {approx = true} : vector<17x1xf32> -> vector<17x1xf32>
    %44 = vector.broadcast %43 : vector<17x1xf32> to vector<17x17xf32>
    %45 = arith.mulf %40, %44 : vector<17x17xf32>
    %46 = vector.extract_strided_slice %45 {offsets = [0, 1], sizes = [17, 16], strides = [1, 1]} : vector<17x17xf32> to vector<17x16xf32>
    %c0_24 = arith.constant 0 : index
    %c1 = arith.constant 1 : index
    %c0_25 = arith.constant 0 : index
    %c0_26 = arith.constant 0 : index
    %47 = vector.load %arg3[%c0_24, %c1, %c0_25, %c0_26] : memref<1x2x17x16xf32, #tpu.memory_space<vmem>>, vector<1x1x17x16xf32>
    %48 = vector.shape_cast %47 : vector<1x1x17x16xf32> to vector<17x16xf32>
    %49 = vector.shape_cast %46 : vector<17x16xf32> to vector<1x1x17x16xf32>
    tpu.vector_store %arg3[%c0_24, %c1, %c0_25, %c0_26], %49 {strides = array<i32>} : memref<1x2x17x16xf32, #tpu.memory_space<vmem>>, vector<1x1x17x16xf32>,
    %50 = arith.truncf %45 : vector<17x17xf32> to vector<17x17xbf16>
    %cst_27 = arith.constant dense<0.000000e+00> : vector<17x16xf32>
    %51 = tpu.matmul %50, %31, %cst_27 {dimension_numbers = #tpu.dot_dimension_numbers<[1], [0], [0], [1], [0, 0, 1, 1], [], []>} : vector<17x17xbf16>, vector<17x16xbf16>, vector<17x16xf32> -> vector<17x16xf32>
    %52 = tpu.concatenate %25, %51 in 1 : vector<17x16xf32>, vector<17x16xf32> -> vector<17x32xf32>
    %53 = arith.truncf %52 : vector<17x32xf32> to vector<17x32xbf16>
    %c0_28 = arith.constant 0 : index
    %c0_29 = arith.constant 0 : index
    %c0_30 = arith.constant 0 : index
    %54 = vector.load %arg2[%c0_28, %c0_29, %c0_30] : memref<1x17x32xbf16, #tpu.memory_space<vmem>>, vector<1x17x32xbf16>
    %55 = vector.shape_cast %54 : vector<1x17x32xbf16> to vector<17x32xbf16>
    %56 = vector.shape_cast %53 : vector<17x32xbf16> to vector<1x17x32xbf16>
    tpu.vector_store %arg2[%c0_28, %c0_29, %c0_30], %56 {strides = array<i32>} : memref<1x17x32xbf16, #tpu.memory_space<vmem>>, vector<1x17x32xbf16>,
    return
  }
  func.func @transform_0(%arg0: i32) -> (i32, i32, i32) {
    %c0_i32 = arith.constant 0 : i32
    %c0_i32_0 = arith.constant 0 : i32
    %c0_i32_1 = arith.constant 0 : i32
    return %arg0, %c0_i32, %c0_i32_0 : i32, i32, i32
  }
  func.func @transform_1(%arg0: i32) -> (i32, i32, i32) {
    %c0_i32 = arith.constant 0 : i32
    %c0_i32_0 = arith.constant 0 : i32
    %c0_i32_1 = arith.constant 0 : i32
    return %arg0, %c0_i32, %c0_i32_0 : i32, i32, i32
  }
  func.func @transform_2(%arg0: i32) -> (i32, i32, i32, i32) {
    %c0_i32 = arith.constant 0 : i32
    %c0_i32_0 = arith.constant 0 : i32
    %c0_i32_1 = arith.constant 0 : i32
    %c0_i32_2 = arith.constant 0 : i32
    return %arg0, %c0_i32, %c0_i32_0, %c0_i32_1 : i32, i32, i32, i32
  }
}

module attributes {stable_mosaic.version = 11 : i64} {
  func.func @kernel(%arg0: i32, %arg1: memref<4x17x32xbf16, #tpu.memory_space<vmem>>, %arg2: memref<1x32xf32, #tpu.memory_space<vmem>>, %arg3: memref<1x32xf32, #tpu.memory_space<vmem>>, %arg4: memref<32x96xbf16, #tpu.memory_space<vmem>>, %arg5: memref<1x96xf32, #tpu.memory_space<vmem>>, %arg6: memref<4x17x96xbf16, #tpu.memory_space<vmem>>) attributes {dimension_semantics = [#tpu.dimension_semantics<parallel>], iteration_bounds = array<i64: 1>, scalar_prefetch = 0 : i64, scratch_operands = 0 : i64, tpu.core_type = #tpu.core_type<tc>, window_params = [{transform_indices = @transform_0, window_bounds = array<i64: 4, 17, 32>}, {pipeline_mode = #tpu.pipeline_mode<synchronous>, transform_indices = @transform_1, window_bounds = array<i64: 1, 32>}, {pipeline_mode = #tpu.pipeline_mode<synchronous>, transform_indices = @transform_2, window_bounds = array<i64: 1, 32>}, {pipeline_mode = #tpu.pipeline_mode<synchronous>, transform_indices = @transform_3, window_bounds = array<i64: 32, 96>}, {pipeline_mode = #tpu.pipeline_mode<synchronous>, transform_indices = @transform_4, window_bounds = array<i64: 1, 96>}, {transform_indices = @transform_5, window_bounds = array<i64: 4, 17, 96>}]} {
    %c0 = arith.constant 0 : index
    %c0_0 = arith.constant 0 : index
    %0 = vector.load %arg4[%c0, %c0_0] : memref<32x96xbf16, #tpu.memory_space<vmem>>, vector<32x96xbf16>
    %c0_1 = arith.constant 0 : index
    %c0_2 = arith.constant 0 : index
    %1 = vector.load %arg5[%c0_1, %c0_2] : memref<1x96xf32, #tpu.memory_space<vmem>>, vector<1x96xf32>
    %c0_3 = arith.constant 0 : index
    %c0_4 = arith.constant 0 : index
    %c0_5 = arith.constant 0 : index
    %2 = vector.load %arg1[%c0_3, %c0_4, %c0_5] : memref<4x17x32xbf16, #tpu.memory_space<vmem>>, vector<1x17x32xbf16>
    %3 = vector.shape_cast %2 : vector<1x17x32xbf16> to vector<17x32xbf16>
    %c0_6 = arith.constant 0 : index
    %c0_7 = arith.constant 0 : index
    %4 = vector.load %arg2[%c0_6, %c0_7] : memref<1x32xf32, #tpu.memory_space<vmem>>, vector<1x32xf32>
    %c0_8 = arith.constant 0 : index
    %c0_9 = arith.constant 0 : index
    %5 = vector.load %arg3[%c0_8, %c0_9] : memref<1x32xf32, #tpu.memory_space<vmem>>, vector<1x32xf32>
    %6 = arith.extf %3 : vector<17x32xbf16> to vector<17x32xf32>
    %cst = arith.constant dense<0.000000e+00> : vector<17xf32>
    %7 = vector.multi_reduction <add>, %6, %cst [1] : vector<17x32xf32> to vector<17xf32>
    %8 = vector.shape_cast %7 : vector<17xf32> to vector<17x1xf32>
    %cst_10 = arith.constant 3.200000e+01 : f32
    %9 = vector.broadcast %cst_10 : f32 to vector<17x1xf32>
    %10 = arith.divf %8, %9 : vector<17x1xf32>
    %11 = vector.broadcast %10 : vector<17x1xf32> to vector<17x32xf32>
    %12 = arith.subf %6, %11 : vector<17x32xf32>
    %13 = arith.mulf %12, %12 : vector<17x32xf32>
    %cst_11 = arith.constant dense<0.000000e+00> : vector<17xf32>
    %14 = vector.multi_reduction <add>, %13, %cst_11 [1] : vector<17x32xf32> to vector<17xf32>
    %15 = vector.shape_cast %14 : vector<17xf32> to vector<17x1xf32>
    %cst_12 = arith.constant 3.200000e+01 : f32
    %16 = vector.broadcast %cst_12 : f32 to vector<17x1xf32>
    %17 = arith.divf %15, %16 : vector<17x1xf32>
    %18 = vector.broadcast %10 : vector<17x1xf32> to vector<17x32xf32>
    %19 = arith.subf %6, %18 : vector<17x32xf32>
    %cst_13 = arith.constant 9.99999996E-13 : f32
    %20 = vector.broadcast %cst_13 : f32 to vector<17x1xf32>
    %21 = arith.addf %17, %20 : vector<17x1xf32>
    %22 = math.rsqrt %21 : vector<17x1xf32>
    %23 = vector.broadcast %22 : vector<17x1xf32> to vector<17x32xf32>
    %24 = arith.mulf %19, %23 : vector<17x32xf32>
    %25 = vector.broadcast %4 : vector<1x32xf32> to vector<17x32xf32>
    %26 = arith.mulf %24, %25 : vector<17x32xf32>
    %27 = vector.broadcast %5 : vector<1x32xf32> to vector<17x32xf32>
    %28 = arith.addf %26, %27 : vector<17x32xf32>
    %29 = arith.truncf %28 : vector<17x32xf32> to vector<17x32xbf16>
    %cst_14 = arith.constant dense<0.000000e+00> : vector<17x96xf32>
    %30 = tpu.matmul %29, %0, %cst_14 {dimension_numbers = #tpu.dot_dimension_numbers<[1], [0], [0], [1], [0, 0, 1, 1], [], []>} : vector<17x32xbf16>, vector<32x96xbf16>, vector<17x96xf32> -> vector<17x96xf32>
    %31 = vector.broadcast %1 : vector<1x96xf32> to vector<17x96xf32>
    %32 = arith.addf %30, %31 : vector<17x96xf32>
    %33 = arith.truncf %32 : vector<17x96xf32> to vector<17x96xbf16>
    %c0_15 = arith.constant 0 : index
    %c0_16 = arith.constant 0 : index
    %c0_17 = arith.constant 0 : index
    %34 = vector.load %arg6[%c0_15, %c0_16, %c0_17] : memref<4x17x96xbf16, #tpu.memory_space<vmem>>, vector<1x17x96xbf16>
    %35 = vector.shape_cast %34 : vector<1x17x96xbf16> to vector<17x96xbf16>
    %36 = vector.shape_cast %33 : vector<17x96xbf16> to vector<1x17x96xbf16>
    tpu.vector_store %arg6[%c0_15, %c0_16, %c0_17], %36 {strides = array<i32>} : memref<4x17x96xbf16, #tpu.memory_space<vmem>>, vector<1x17x96xbf16>,
    %c1 = arith.constant 1 : index
    %c0_18 = arith.constant 0 : index
    %c0_19 = arith.constant 0 : index
    %37 = vector.load %arg1[%c1, %c0_18, %c0_19] : memref<4x17x32xbf16, #tpu.memory_space<vmem>>, vector<1x17x32xbf16>
    %38 = vector.shape_cast %37 : vector<1x17x32xbf16> to vector<17x32xbf16>
    %c0_20 = arith.constant 0 : index
    %c0_21 = arith.constant 0 : index
    %39 = vector.load %arg2[%c0_20, %c0_21] : memref<1x32xf32, #tpu.memory_space<vmem>>, vector<1x32xf32>
    %c0_22 = arith.constant 0 : index
    %c0_23 = arith.constant 0 : index
    %40 = vector.load %arg3[%c0_22, %c0_23] : memref<1x32xf32, #tpu.memory_space<vmem>>, vector<1x32xf32>
    %41 = arith.extf %38 : vector<17x32xbf16> to vector<17x32xf32>
    %cst_24 = arith.constant dense<0.000000e+00> : vector<17xf32>
    %42 = vector.multi_reduction <add>, %41, %cst_24 [1] : vector<17x32xf32> to vector<17xf32>
    %43 = vector.shape_cast %42 : vector<17xf32> to vector<17x1xf32>
    %cst_25 = arith.constant 3.200000e+01 : f32
    %44 = vector.broadcast %cst_25 : f32 to vector<17x1xf32>
    %45 = arith.divf %43, %44 : vector<17x1xf32>
    %46 = vector.broadcast %45 : vector<17x1xf32> to vector<17x32xf32>
    %47 = arith.subf %41, %46 : vector<17x32xf32>
    %48 = arith.mulf %47, %47 : vector<17x32xf32>
    %cst_26 = arith.constant dense<0.000000e+00> : vector<17xf32>
    %49 = vector.multi_reduction <add>, %48, %cst_26 [1] : vector<17x32xf32> to vector<17xf32>
    %50 = vector.shape_cast %49 : vector<17xf32> to vector<17x1xf32>
    %cst_27 = arith.constant 3.200000e+01 : f32
    %51 = vector.broadcast %cst_27 : f32 to vector<17x1xf32>
    %52 = arith.divf %50, %51 : vector<17x1xf32>
    %53 = vector.broadcast %45 : vector<17x1xf32> to vector<17x32xf32>
    %54 = arith.subf %41, %53 : vector<17x32xf32>
    %cst_28 = arith.constant 9.99999996E-13 : f32
    %55 = vector.broadcast %cst_28 : f32 to vector<17x1xf32>
    %56 = arith.addf %52, %55 : vector<17x1xf32>
    %57 = math.rsqrt %56 : vector<17x1xf32>
    %58 = vector.broadcast %57 : vector<17x1xf32> to vector<17x32xf32>
    %59 = arith.mulf %54, %58 : vector<17x32xf32>
    %60 = vector.broadcast %39 : vector<1x32xf32> to vector<17x32xf32>
    %61 = arith.mulf %59, %60 : vector<17x32xf32>
    %62 = vector.broadcast %40 : vector<1x32xf32> to vector<17x32xf32>
    %63 = arith.addf %61, %62 : vector<17x32xf32>
    %64 = arith.truncf %63 : vector<17x32xf32> to vector<17x32xbf16>
    %cst_29 = arith.constant dense<0.000000e+00> : vector<17x96xf32>
    %65 = tpu.matmul %64, %0, %cst_29 {dimension_numbers = #tpu.dot_dimension_numbers<[1], [0], [0], [1], [0, 0, 1, 1], [], []>} : vector<17x32xbf16>, vector<32x96xbf16>, vector<17x96xf32> -> vector<17x96xf32>
    %66 = vector.broadcast %1 : vector<1x96xf32> to vector<17x96xf32>
    %67 = arith.addf %65, %66 : vector<17x96xf32>
    %68 = arith.truncf %67 : vector<17x96xf32> to vector<17x96xbf16>
    %c1_30 = arith.constant 1 : index
    %c0_31 = arith.constant 0 : index
    %c0_32 = arith.constant 0 : index
    %69 = vector.load %arg6[%c1_30, %c0_31, %c0_32] : memref<4x17x96xbf16, #tpu.memory_space<vmem>>, vector<1x17x96xbf16>
    %70 = vector.shape_cast %69 : vector<1x17x96xbf16> to vector<17x96xbf16>
    %71 = vector.shape_cast %68 : vector<17x96xbf16> to vector<1x17x96xbf16>
    tpu.vector_store %arg6[%c1_30, %c0_31, %c0_32], %71 {strides = array<i32>} : memref<4x17x96xbf16, #tpu.memory_space<vmem>>, vector<1x17x96xbf16>,
    %c2 = arith.constant 2 : index
    %c0_33 = arith.constant 0 : index
    %c0_34 = arith.constant 0 : index
    %72 = vector.load %arg1[%c2, %c0_33, %c0_34] : memref<4x17x32xbf16, #tpu.memory_space<vmem>>, vector<1x17x32xbf16>
    %73 = vector.shape_cast %72 : vector<1x17x32xbf16> to vector<17x32xbf16>
    %c0_35 = arith.constant 0 : index
    %c0_36 = arith.constant 0 : index
    %74 = vector.load %arg2[%c0_35, %c0_36] : memref<1x32xf32, #tpu.memory_space<vmem>>, vector<1x32xf32>
    %c0_37 = arith.constant 0 : index
    %c0_38 = arith.constant 0 : index
    %75 = vector.load %arg3[%c0_37, %c0_38] : memref<1x32xf32, #tpu.memory_space<vmem>>, vector<1x32xf32>
    %76 = arith.extf %73 : vector<17x32xbf16> to vector<17x32xf32>
    %cst_39 = arith.constant dense<0.000000e+00> : vector<17xf32>
    %77 = vector.multi_reduction <add>, %76, %cst_39 [1] : vector<17x32xf32> to vector<17xf32>
    %78 = vector.shape_cast %77 : vector<17xf32> to vector<17x1xf32>
    %cst_40 = arith.constant 3.200000e+01 : f32
    %79 = vector.broadcast %cst_40 : f32 to vector<17x1xf32>
    %80 = arith.divf %78, %79 : vector<17x1xf32>
    %81 = vector.broadcast %80 : vector<17x1xf32> to vector<17x32xf32>
    %82 = arith.subf %76, %81 : vector<17x32xf32>
    %83 = arith.mulf %82, %82 : vector<17x32xf32>
    %cst_41 = arith.constant dense<0.000000e+00> : vector<17xf32>
    %84 = vector.multi_reduction <add>, %83, %cst_41 [1] : vector<17x32xf32> to vector<17xf32>
    %85 = vector.shape_cast %84 : vector<17xf32> to vector<17x1xf32>
    %cst_42 = arith.constant 3.200000e+01 : f32
    %86 = vector.broadcast %cst_42 : f32 to vector<17x1xf32>
    %87 = arith.divf %85, %86 : vector<17x1xf32>
    %88 = vector.broadcast %80 : vector<17x1xf32> to vector<17x32xf32>
    %89 = arith.subf %76, %88 : vector<17x32xf32>
    %cst_43 = arith.constant 9.99999996E-13 : f32
    %90 = vector.broadcast %cst_43 : f32 to vector<17x1xf32>
    %91 = arith.addf %87, %90 : vector<17x1xf32>
    %92 = math.rsqrt %91 : vector<17x1xf32>
    %93 = vector.broadcast %92 : vector<17x1xf32> to vector<17x32xf32>
    %94 = arith.mulf %89, %93 : vector<17x32xf32>
    %95 = vector.broadcast %74 : vector<1x32xf32> to vector<17x32xf32>
    %96 = arith.mulf %94, %95 : vector<17x32xf32>
    %97 = vector.broadcast %75 : vector<1x32xf32> to vector<17x32xf32>
    %98 = arith.addf %96, %97 : vector<17x32xf32>
    %99 = arith.truncf %98 : vector<17x32xf32> to vector<17x32xbf16>
    %cst_44 = arith.constant dense<0.000000e+00> : vector<17x96xf32>
    %100 = tpu.matmul %99, %0, %cst_44 {dimension_numbers = #tpu.dot_dimension_numbers<[1], [0], [0], [1], [0, 0, 1, 1], [], []>} : vector<17x32xbf16>, vector<32x96xbf16>, vector<17x96xf32> -> vector<17x96xf32>
    %101 = vector.broadcast %1 : vector<1x96xf32> to vector<17x96xf32>
    %102 = arith.addf %100, %101 : vector<17x96xf32>
    %103 = arith.truncf %102 : vector<17x96xf32> to vector<17x96xbf16>
    %c2_45 = arith.constant 2 : index
    %c0_46 = arith.constant 0 : index
    %c0_47 = arith.constant 0 : index
    %104 = vector.load %arg6[%c2_45, %c0_46, %c0_47] : memref<4x17x96xbf16, #tpu.memory_space<vmem>>, vector<1x17x96xbf16>
    %105 = vector.shape_cast %104 : vector<1x17x96xbf16> to vector<17x96xbf16>
    %106 = vector.shape_cast %103 : vector<17x96xbf16> to vector<1x17x96xbf16>
    tpu.vector_store %arg6[%c2_45, %c0_46, %c0_47], %106 {strides = array<i32>} : memref<4x17x96xbf16, #tpu.memory_space<vmem>>, vector<1x17x96xbf16>,
    %c3 = arith.constant 3 : index
    %c0_48 = arith.constant 0 : index
    %c0_49 = arith.constant 0 : index
    %107 = vector.load %arg1[%c3, %c0_48, %c0_49] : memref<4x17x32xbf16, #tpu.memory_space<vmem>>, vector<1x17x32xbf16>
    %108 = vector.shape_cast %107 : vector<1x17x32xbf16> to vector<17x32xbf16>
    %c0_50 = arith.constant 0 : index
    %c0_51 = arith.constant 0 : index
    %109 = vector.load %arg2[%c0_50, %c0_51] : memref<1x32xf32, #tpu.memory_space<vmem>>, vector<1x32xf32>
    %c0_52 = arith.constant 0 : index
    %c0_53 = arith.constant 0 : index
    %110 = vector.load %arg3[%c0_52, %c0_53] : memref<1x32xf32, #tpu.memory_space<vmem>>, vector<1x32xf32>
    %111 = arith.extf %108 : vector<17x32xbf16> to vector<17x32xf32>
    %cst_54 = arith.constant dense<0.000000e+00> : vector<17xf32>
    %112 = vector.multi_reduction <add>, %111, %cst_54 [1] : vector<17x32xf32> to vector<17xf32>
    %113 = vector.shape_cast %112 : vector<17xf32> to vector<17x1xf32>
    %cst_55 = arith.constant 3.200000e+01 : f32
    %114 = vector.broadcast %cst_55 : f32 to vector<17x1xf32>
    %115 = arith.divf %113, %114 : vector<17x1xf32>
    %116 = vector.broadcast %115 : vector<17x1xf32> to vector<17x32xf32>
    %117 = arith.subf %111, %116 : vector<17x32xf32>
    %118 = arith.mulf %117, %117 : vector<17x32xf32>
    %cst_56 = arith.constant dense<0.000000e+00> : vector<17xf32>
    %119 = vector.multi_reduction <add>, %118, %cst_56 [1] : vector<17x32xf32> to vector<17xf32>
    %120 = vector.shape_cast %119 : vector<17xf32> to vector<17x1xf32>
    %cst_57 = arith.constant 3.200000e+01 : f32
    %121 = vector.broadcast %cst_57 : f32 to vector<17x1xf32>
    %122 = arith.divf %120, %121 : vector<17x1xf32>
    %123 = vector.broadcast %115 : vector<17x1xf32> to vector<17x32xf32>
    %124 = arith.subf %111, %123 : vector<17x32xf32>
    %cst_58 = arith.constant 9.99999996E-13 : f32
    %125 = vector.broadcast %cst_58 : f32 to vector<17x1xf32>
    %126 = arith.addf %122, %125 : vector<17x1xf32>
    %127 = math.rsqrt %126 : vector<17x1xf32>
    %128 = vector.broadcast %127 : vector<17x1xf32> to vector<17x32xf32>
    %129 = arith.mulf %124, %128 : vector<17x32xf32>
    %130 = vector.broadcast %109 : vector<1x32xf32> to vector<17x32xf32>
    %131 = arith.mulf %129, %130 : vector<17x32xf32>
    %132 = vector.broadcast %110 : vector<1x32xf32> to vector<17x32xf32>
    %133 = arith.addf %131, %132 : vector<17x32xf32>
    %134 = arith.truncf %133 : vector<17x32xf32> to vector<17x32xbf16>
    %cst_59 = arith.constant dense<0.000000e+00> : vector<17x96xf32>
    %135 = tpu.matmul %134, %0, %cst_59 {dimension_numbers = #tpu.dot_dimension_numbers<[1], [0], [0], [1], [0, 0, 1, 1], [], []>} : vector<17x32xbf16>, vector<32x96xbf16>, vector<17x96xf32> -> vector<17x96xf32>
    %136 = vector.broadcast %1 : vector<1x96xf32> to vector<17x96xf32>
    %137 = arith.addf %135, %136 : vector<17x96xf32>
    %138 = arith.truncf %137 : vector<17x96xf32> to vector<17x96xbf16>
    %c3_60 = arith.constant 3 : index
    %c0_61 = arith.constant 0 : index
    %c0_62 = arith.constant 0 : index
    %139 = vector.load %arg6[%c3_60, %c0_61, %c0_62] : memref<4x17x96xbf16, #tpu.memory_space<vmem>>, vector<1x17x96xbf16>
    %140 = vector.shape_cast %139 : vector<1x17x96xbf16> to vector<17x96xbf16>
    %141 = vector.shape_cast %138 : vector<17x96xbf16> to vector<1x17x96xbf16>
    tpu.vector_store %arg6[%c3_60, %c0_61, %c0_62], %141 {strides = array<i32>} : memref<4x17x96xbf16, #tpu.memory_space<vmem>>, vector<1x17x96xbf16>,
    return
  }
  func.func @transform_0(%arg0: i32) -> (i32, i32, i32) {
    %c0_i32 = arith.constant 0 : i32
    %c0_i32_0 = arith.constant 0 : i32
    %c0_i32_1 = arith.constant 0 : i32
    return %arg0, %c0_i32, %c0_i32_0 : i32, i32, i32
  }
  func.func @transform_1(%arg0: i32) -> (i32, i32) {
    %c0_i32 = arith.constant 0 : i32
    %c0_i32_0 = arith.constant 0 : i32
    %c0_i32_1 = arith.constant 0 : i32
    return %c0_i32, %c0_i32_0 : i32, i32
  }
  func.func @transform_2(%arg0: i32) -> (i32, i32) {
    %c0_i32 = arith.constant 0 : i32
    %c0_i32_0 = arith.constant 0 : i32
    %c0_i32_1 = arith.constant 0 : i32
    return %c0_i32, %c0_i32_0 : i32, i32
  }
  func.func @transform_3(%arg0: i32) -> (i32, i32) {
    %c0_i32 = arith.constant 0 : i32
    %c0_i32_0 = arith.constant 0 : i32
    %c0_i32_1 = arith.constant 0 : i32
    return %c0_i32, %c0_i32_0 : i32, i32
  }
  func.func @transform_4(%arg0: i32) -> (i32, i32) {
    %c0_i32 = arith.constant 0 : i32
    %c0_i32_0 = arith.constant 0 : i32
    %c0_i32_1 = arith.constant 0 : i32
    return %c0_i32, %c0_i32_0 : i32, i32
  }
  func.func @transform_5(%arg0: i32) -> (i32, i32, i32) {
    %c0_i32 = arith.constant 0 : i32
    %c0_i32_0 = arith.constant 0 : i32
    %c0_i32_1 = arith.constant 0 : i32
    return %arg0, %c0_i32, %c0_i32_0 : i32, i32, i32
  }
}

module attributes {stable_mosaic.version = 11 : i64} {
  func.func @kernel(%arg0: i32, %arg1: memref<4x17x32xbf16, #tpu.memory_space<vmem>>, %arg2: memref<32x32xbf16, #tpu.memory_space<vmem>>, %arg3: memref<1x32xf32, #tpu.memory_space<vmem>>, %arg4: memref<4x17x32xbf16, #tpu.memory_space<vmem>>, %arg5: memref<4x17x32xbf16, #tpu.memory_space<vmem>>) attributes {dimension_semantics = [#tpu.dimension_semantics<parallel>], iteration_bounds = array<i64: 1>, scalar_prefetch = 0 : i64, scratch_operands = 0 : i64, tpu.core_type = #tpu.core_type<tc>, window_params = [{transform_indices = @transform_0, window_bounds = array<i64: 4, 17, 32>}, {pipeline_mode = #tpu.pipeline_mode<synchronous>, transform_indices = @transform_1, window_bounds = array<i64: 32, 32>}, {pipeline_mode = #tpu.pipeline_mode<synchronous>, transform_indices = @transform_2, window_bounds = array<i64: 1, 32>}, {transform_indices = @transform_3, window_bounds = array<i64: 4, 17, 32>}, {transform_indices = @transform_4, window_bounds = array<i64: 4, 17, 32>}]} {
    %c0 = arith.constant 0 : index
    %c0_0 = arith.constant 0 : index
    %0 = vector.load %arg2[%c0, %c0_0] : memref<32x32xbf16, #tpu.memory_space<vmem>>, vector<32x32xbf16>
    %c0_1 = arith.constant 0 : index
    %c0_2 = arith.constant 0 : index
    %1 = vector.load %arg3[%c0_1, %c0_2] : memref<1x32xf32, #tpu.memory_space<vmem>>, vector<1x32xf32>
    %c0_3 = arith.constant 0 : index
    %c0_4 = arith.constant 0 : index
    %c0_5 = arith.constant 0 : index
    %2 = vector.load %arg1[%c0_3, %c0_4, %c0_5] : memref<4x17x32xbf16, #tpu.memory_space<vmem>>, vector<1x17x32xbf16>
    %3 = vector.shape_cast %2 : vector<1x17x32xbf16> to vector<17x32xbf16>
    %cst = arith.constant dense<0.000000e+00> : vector<17x32xf32>
    %4 = tpu.matmul %3, %0, %cst {dimension_numbers = #tpu.dot_dimension_numbers<[1], [0], [0], [1], [0, 0, 1, 1], [], []>} : vector<17x32xbf16>, vector<32x32xbf16>, vector<17x32xf32> -> vector<17x32xf32>
    %5 = vector.broadcast %1 : vector<1x32xf32> to vector<17x32xf32>
    %6 = arith.addf %4, %5 : vector<17x32xf32>
    %c0_6 = arith.constant 0 : index
    %c0_7 = arith.constant 0 : index
    %c0_8 = arith.constant 0 : index
    %7 = vector.load %arg4[%c0_6, %c0_7, %c0_8] : memref<4x17x32xbf16, #tpu.memory_space<vmem>>, vector<1x17x32xbf16>
    %8 = vector.shape_cast %7 : vector<1x17x32xbf16> to vector<17x32xbf16>
    %9 = arith.extf %8 : vector<17x32xbf16> to vector<17x32xf32>
    %10 = arith.addf %6, %9 : vector<17x32xf32>
    %11 = arith.truncf %10 : vector<17x32xf32> to vector<17x32xbf16>
    %c0_9 = arith.constant 0 : index
    %c0_10 = arith.constant 0 : index
    %c0_11 = arith.constant 0 : index
    %12 = vector.load %arg5[%c0_9, %c0_10, %c0_11] : memref<4x17x32xbf16, #tpu.memory_space<vmem>>, vector<1x17x32xbf16>
    %13 = vector.shape_cast %12 : vector<1x17x32xbf16> to vector<17x32xbf16>
    %14 = vector.shape_cast %11 : vector<17x32xbf16> to vector<1x17x32xbf16>
    tpu.vector_store %arg5[%c0_9, %c0_10, %c0_11], %14 {strides = array<i32>} : memref<4x17x32xbf16, #tpu.memory_space<vmem>>, vector<1x17x32xbf16>,
    %c1 = arith.constant 1 : index
    %c0_12 = arith.constant 0 : index
    %c0_13 = arith.constant 0 : index
    %15 = vector.load %arg1[%c1, %c0_12, %c0_13] : memref<4x17x32xbf16, #tpu.memory_space<vmem>>, vector<1x17x32xbf16>
    %16 = vector.shape_cast %15 : vector<1x17x32xbf16> to vector<17x32xbf16>
    %cst_14 = arith.constant dense<0.000000e+00> : vector<17x32xf32>
    %17 = tpu.matmul %16, %0, %cst_14 {dimension_numbers = #tpu.dot_dimension_numbers<[1], [0], [0], [1], [0, 0, 1, 1], [], []>} : vector<17x32xbf16>, vector<32x32xbf16>, vector<17x32xf32> -> vector<17x32xf32>
    %18 = vector.broadcast %1 : vector<1x32xf32> to vector<17x32xf32>
    %19 = arith.addf %17, %18 : vector<17x32xf32>
    %c1_15 = arith.constant 1 : index
    %c0_16 = arith.constant 0 : index
    %c0_17 = arith.constant 0 : index
    %20 = vector.load %arg4[%c1_15, %c0_16, %c0_17] : memref<4x17x32xbf16, #tpu.memory_space<vmem>>, vector<1x17x32xbf16>
    %21 = vector.shape_cast %20 : vector<1x17x32xbf16> to vector<17x32xbf16>
    %22 = arith.extf %21 : vector<17x32xbf16> to vector<17x32xf32>
    %23 = arith.addf %19, %22 : vector<17x32xf32>
    %24 = arith.truncf %23 : vector<17x32xf32> to vector<17x32xbf16>
    %c1_18 = arith.constant 1 : index
    %c0_19 = arith.constant 0 : index
    %c0_20 = arith.constant 0 : index
    %25 = vector.load %arg5[%c1_18, %c0_19, %c0_20] : memref<4x17x32xbf16, #tpu.memory_space<vmem>>, vector<1x17x32xbf16>
    %26 = vector.shape_cast %25 : vector<1x17x32xbf16> to vector<17x32xbf16>
    %27 = vector.shape_cast %24 : vector<17x32xbf16> to vector<1x17x32xbf16>
    tpu.vector_store %arg5[%c1_18, %c0_19, %c0_20], %27 {strides = array<i32>} : memref<4x17x32xbf16, #tpu.memory_space<vmem>>, vector<1x17x32xbf16>,
    %c2 = arith.constant 2 : index
    %c0_21 = arith.constant 0 : index
    %c0_22 = arith.constant 0 : index
    %28 = vector.load %arg1[%c2, %c0_21, %c0_22] : memref<4x17x32xbf16, #tpu.memory_space<vmem>>, vector<1x17x32xbf16>
    %29 = vector.shape_cast %28 : vector<1x17x32xbf16> to vector<17x32xbf16>
    %cst_23 = arith.constant dense<0.000000e+00> : vector<17x32xf32>
    %30 = tpu.matmul %29, %0, %cst_23 {dimension_numbers = #tpu.dot_dimension_numbers<[1], [0], [0], [1], [0, 0, 1, 1], [], []>} : vector<17x32xbf16>, vector<32x32xbf16>, vector<17x32xf32> -> vector<17x32xf32>
    %31 = vector.broadcast %1 : vector<1x32xf32> to vector<17x32xf32>
    %32 = arith.addf %30, %31 : vector<17x32xf32>
    %c2_24 = arith.constant 2 : index
    %c0_25 = arith.constant 0 : index
    %c0_26 = arith.constant 0 : index
    %33 = vector.load %arg4[%c2_24, %c0_25, %c0_26] : memref<4x17x32xbf16, #tpu.memory_space<vmem>>, vector<1x17x32xbf16>
    %34 = vector.shape_cast %33 : vector<1x17x32xbf16> to vector<17x32xbf16>
    %35 = arith.extf %34 : vector<17x32xbf16> to vector<17x32xf32>
    %36 = arith.addf %32, %35 : vector<17x32xf32>
    %37 = arith.truncf %36 : vector<17x32xf32> to vector<17x32xbf16>
    %c2_27 = arith.constant 2 : index
    %c0_28 = arith.constant 0 : index
    %c0_29 = arith.constant 0 : index
    %38 = vector.load %arg5[%c2_27, %c0_28, %c0_29] : memref<4x17x32xbf16, #tpu.memory_space<vmem>>, vector<1x17x32xbf16>
    %39 = vector.shape_cast %38 : vector<1x17x32xbf16> to vector<17x32xbf16>
    %40 = vector.shape_cast %37 : vector<17x32xbf16> to vector<1x17x32xbf16>
    tpu.vector_store %arg5[%c2_27, %c0_28, %c0_29], %40 {strides = array<i32>} : memref<4x17x32xbf16, #tpu.memory_space<vmem>>, vector<1x17x32xbf16>,
    %c3 = arith.constant 3 : index
    %c0_30 = arith.constant 0 : index
    %c0_31 = arith.constant 0 : index
    %41 = vector.load %arg1[%c3, %c0_30, %c0_31] : memref<4x17x32xbf16, #tpu.memory_space<vmem>>, vector<1x17x32xbf16>
    %42 = vector.shape_cast %41 : vector<1x17x32xbf16> to vector<17x32xbf16>
    %cst_32 = arith.constant dense<0.000000e+00> : vector<17x32xf32>
    %43 = tpu.matmul %42, %0, %cst_32 {dimension_numbers = #tpu.dot_dimension_numbers<[1], [0], [0], [1], [0, 0, 1, 1], [], []>} : vector<17x32xbf16>, vector<32x32xbf16>, vector<17x32xf32> -> vector<17x32xf32>
    %44 = vector.broadcast %1 : vector<1x32xf32> to vector<17x32xf32>
    %45 = arith.addf %43, %44 : vector<17x32xf32>
    %c3_33 = arith.constant 3 : index
    %c0_34 = arith.constant 0 : index
    %c0_35 = arith.constant 0 : index
    %46 = vector.load %arg4[%c3_33, %c0_34, %c0_35] : memref<4x17x32xbf16, #tpu.memory_space<vmem>>, vector<1x17x32xbf16>
    %47 = vector.shape_cast %46 : vector<1x17x32xbf16> to vector<17x32xbf16>
    %48 = arith.extf %47 : vector<17x32xbf16> to vector<17x32xf32>
    %49 = arith.addf %45, %48 : vector<17x32xf32>
    %50 = arith.truncf %49 : vector<17x32xf32> to vector<17x32xbf16>
    %c3_36 = arith.constant 3 : index
    %c0_37 = arith.constant 0 : index
    %c0_38 = arith.constant 0 : index
    %51 = vector.load %arg5[%c3_36, %c0_37, %c0_38] : memref<4x17x32xbf16, #tpu.memory_space<vmem>>, vector<1x17x32xbf16>
    %52 = vector.shape_cast %51 : vector<1x17x32xbf16> to vector<17x32xbf16>
    %53 = vector.shape_cast %50 : vector<17x32xbf16> to vector<1x17x32xbf16>
    tpu.vector_store %arg5[%c3_36, %c0_37, %c0_38], %53 {strides = array<i32>} : memref<4x17x32xbf16, #tpu.memory_space<vmem>>, vector<1x17x32xbf16>,
    return
  }
  func.func @transform_0(%arg0: i32) -> (i32, i32, i32) {
    %c0_i32 = arith.constant 0 : i32
    %c0_i32_0 = arith.constant 0 : i32
    %c0_i32_1 = arith.constant 0 : i32
    return %arg0, %c0_i32, %c0_i32_0 : i32, i32, i32
  }
  func.func @transform_1(%arg0: i32) -> (i32, i32) {
    %c0_i32 = arith.constant 0 : i32
    %c0_i32_0 = arith.constant 0 : i32
    %c0_i32_1 = arith.constant 0 : i32
    return %c0_i32, %c0_i32_0 : i32, i32
  }
  func.func @transform_2(%arg0: i32) -> (i32, i32) {
    %c0_i32 = arith.constant 0 : i32
    %c0_i32_0 = arith.constant 0 : i32
    %c0_i32_1 = arith.constant 0 : i32
    return %c0_i32, %c0_i32_0 : i32, i32
  }
  func.func @transform_3(%arg0: i32) -> (i32, i32, i32) {
    %c0_i32 = arith.constant 0 : i32
    %c0_i32_0 = arith.constant 0 : i32
    %c0_i32_1 = arith.constant 0 : i32
    return %arg0, %c0_i32, %c0_i32_0 : i32, i32, i32
  }
  func.func @transform_4(%arg0: i32) -> (i32, i32, i32) {
    %c0_i32 = arith.constant 0 : i32
    %c0_i32_0 = arith.constant 0 : i32
    %c0_i32_1 = arith.constant 0 : i32
    return %arg0, %c0_i32, %c0_i32_0 : i32, i32, i32
  }
}

module attributes {stable_mosaic.version = 11 : i64} {
  func.func @_mlp_kernel(%arg0: i32, %arg1: memref<4x17x32xbf16, #tpu.memory_space<vmem>>, %arg2: memref<1x32xf32, #tpu.memory_space<vmem>>, %arg3: memref<1x32xf32, #tpu.memory_space<vmem>>, %arg4: memref<32x64xbf16, #tpu.memory_space<vmem>>, %arg5: memref<1x64xf32, #tpu.memory_space<vmem>>, %arg6: memref<64x32xbf16, #tpu.memory_space<vmem>>, %arg7: memref<1x32xf32, #tpu.memory_space<vmem>>, %arg8: memref<4x17x32xbf16, #tpu.memory_space<vmem>>) attributes {dimension_semantics = [#tpu.dimension_semantics<parallel>], iteration_bounds = array<i64: 1>, scalar_prefetch = 0 : i64, scratch_operands = 0 : i64, tpu.core_type = #tpu.core_type<tc>, window_params = [{transform_indices = @transform_0, window_bounds = array<i64: 4, 17, 32>}, {pipeline_mode = #tpu.pipeline_mode<synchronous>, transform_indices = @transform_1, window_bounds = array<i64: 1, 32>}, {pipeline_mode = #tpu.pipeline_mode<synchronous>, transform_indices = @transform_2, window_bounds = array<i64: 1, 32>}, {pipeline_mode = #tpu.pipeline_mode<synchronous>, transform_indices = @transform_3, window_bounds = array<i64: 32, 64>}, {pipeline_mode = #tpu.pipeline_mode<synchronous>, transform_indices = @transform_4, window_bounds = array<i64: 1, 64>}, {pipeline_mode = #tpu.pipeline_mode<synchronous>, transform_indices = @transform_5, window_bounds = array<i64: 64, 32>}, {pipeline_mode = #tpu.pipeline_mode<synchronous>, transform_indices = @transform_6, window_bounds = array<i64: 1, 32>}, {transform_indices = @transform_7, window_bounds = array<i64: 4, 17, 32>}]} {
    %c0 = arith.constant 0 : index
    %c0_0 = arith.constant 0 : index
    %0 = vector.load %arg4[%c0, %c0_0] : memref<32x64xbf16, #tpu.memory_space<vmem>>, vector<32x64xbf16>
    %c0_1 = arith.constant 0 : index
    %c0_2 = arith.constant 0 : index
    %1 = vector.load %arg5[%c0_1, %c0_2] : memref<1x64xf32, #tpu.memory_space<vmem>>, vector<1x64xf32>
    %c0_3 = arith.constant 0 : index
    %c0_4 = arith.constant 0 : index
    %2 = vector.load %arg6[%c0_3, %c0_4] : memref<64x32xbf16, #tpu.memory_space<vmem>>, vector<64x32xbf16>
    %c0_5 = arith.constant 0 : index
    %c0_6 = arith.constant 0 : index
    %3 = vector.load %arg7[%c0_5, %c0_6] : memref<1x32xf32, #tpu.memory_space<vmem>>, vector<1x32xf32>
    %c0_7 = arith.constant 0 : index
    %c0_8 = arith.constant 0 : index
    %c0_9 = arith.constant 0 : index
    %4 = vector.load %arg1[%c0_7, %c0_8, %c0_9] : memref<4x17x32xbf16, #tpu.memory_space<vmem>>, vector<1x17x32xbf16>
    %5 = vector.shape_cast %4 : vector<1x17x32xbf16> to vector<17x32xbf16>
    %c0_10 = arith.constant 0 : index
    %c0_11 = arith.constant 0 : index
    %6 = vector.load %arg2[%c0_10, %c0_11] : memref<1x32xf32, #tpu.memory_space<vmem>>, vector<1x32xf32>
    %c0_12 = arith.constant 0 : index
    %c0_13 = arith.constant 0 : index
    %7 = vector.load %arg3[%c0_12, %c0_13] : memref<1x32xf32, #tpu.memory_space<vmem>>, vector<1x32xf32>
    %8 = arith.extf %5 : vector<17x32xbf16> to vector<17x32xf32>
    %cst = arith.constant dense<0.000000e+00> : vector<17xf32>
    %9 = vector.multi_reduction <add>, %8, %cst [1] : vector<17x32xf32> to vector<17xf32>
    %10 = vector.shape_cast %9 : vector<17xf32> to vector<17x1xf32>
    %cst_14 = arith.constant 3.200000e+01 : f32
    %11 = vector.broadcast %cst_14 : f32 to vector<17x1xf32>
    %12 = arith.divf %10, %11 : vector<17x1xf32>
    %13 = vector.broadcast %12 : vector<17x1xf32> to vector<17x32xf32>
    %14 = arith.subf %8, %13 : vector<17x32xf32>
    %15 = arith.mulf %14, %14 : vector<17x32xf32>
    %cst_15 = arith.constant dense<0.000000e+00> : vector<17xf32>
    %16 = vector.multi_reduction <add>, %15, %cst_15 [1] : vector<17x32xf32> to vector<17xf32>
    %17 = vector.shape_cast %16 : vector<17xf32> to vector<17x1xf32>
    %cst_16 = arith.constant 3.200000e+01 : f32
    %18 = vector.broadcast %cst_16 : f32 to vector<17x1xf32>
    %19 = arith.divf %17, %18 : vector<17x1xf32>
    %20 = vector.broadcast %12 : vector<17x1xf32> to vector<17x32xf32>
    %21 = arith.subf %8, %20 : vector<17x32xf32>
    %cst_17 = arith.constant 9.99999996E-13 : f32
    %22 = vector.broadcast %cst_17 : f32 to vector<17x1xf32>
    %23 = arith.addf %19, %22 : vector<17x1xf32>
    %24 = math.rsqrt %23 : vector<17x1xf32>
    %25 = vector.broadcast %24 : vector<17x1xf32> to vector<17x32xf32>
    %26 = arith.mulf %21, %25 : vector<17x32xf32>
    %27 = vector.broadcast %6 : vector<1x32xf32> to vector<17x32xf32>
    %28 = arith.mulf %26, %27 : vector<17x32xf32>
    %29 = vector.broadcast %7 : vector<1x32xf32> to vector<17x32xf32>
    %30 = arith.addf %28, %29 : vector<17x32xf32>
    %31 = arith.truncf %30 : vector<17x32xf32> to vector<17x32xbf16>
    %cst_18 = arith.constant dense<0.000000e+00> : vector<17x64xf32>
    %32 = tpu.matmul %31, %0, %cst_18 {dimension_numbers = #tpu.dot_dimension_numbers<[1], [0], [0], [1], [0, 0, 1, 1], [], []>} : vector<17x32xbf16>, vector<32x64xbf16>, vector<17x64xf32> -> vector<17x64xf32>
    %33 = vector.broadcast %1 : vector<1x64xf32> to vector<17x64xf32>
    %34 = arith.addf %32, %33 : vector<17x64xf32>
    %cst_19 = arith.constant 5.000000e-01 : f32
    %35 = vector.broadcast %cst_19 : f32 to vector<17x64xf32>
    %36 = arith.mulf %35, %34 : vector<17x64xf32>
    %cst_20 = arith.constant 0.707106769 : f32
    %37 = vector.broadcast %cst_20 : f32 to vector<17x64xf32>
    %38 = arith.mulf %34, %37 : vector<17x64xf32>
    %39 = math.erf %38 : vector<17x64xf32>
    %cst_21 = arith.constant 1.000000e+00 : f32
    %40 = vector.broadcast %cst_21 : f32 to vector<17x64xf32>
    %41 = arith.addf %40, %39 : vector<17x64xf32>
    %42 = arith.mulf %36, %41 : vector<17x64xf32>
    %43 = arith.truncf %42 : vector<17x64xf32> to vector<17x64xbf16>
    %cst_22 = arith.constant dense<0.000000e+00> : vector<17x32xf32>
    %44 = tpu.matmul %43, %2, %cst_22 {dimension_numbers = #tpu.dot_dimension_numbers<[1], [0], [0], [1], [0, 0, 1, 1], [], []>} : vector<17x64xbf16>, vector<64x32xbf16>, vector<17x32xf32> -> vector<17x32xf32>
    %45 = vector.broadcast %3 : vector<1x32xf32> to vector<17x32xf32>
    %46 = arith.addf %44, %45 : vector<17x32xf32>
    %47 = arith.extf %5 : vector<17x32xbf16> to vector<17x32xf32>
    %48 = arith.addf %46, %47 : vector<17x32xf32>
    %49 = arith.truncf %48 : vector<17x32xf32> to vector<17x32xbf16>
    %c0_23 = arith.constant 0 : index
    %c0_24 = arith.constant 0 : index
    %c0_25 = arith.constant 0 : index
    %50 = vector.load %arg8[%c0_23, %c0_24, %c0_25] : memref<4x17x32xbf16, #tpu.memory_space<vmem>>, vector<1x17x32xbf16>
    %51 = vector.shape_cast %50 : vector<1x17x32xbf16> to vector<17x32xbf16>
    %52 = vector.shape_cast %49 : vector<17x32xbf16> to vector<1x17x32xbf16>
    tpu.vector_store %arg8[%c0_23, %c0_24, %c0_25], %52 {strides = array<i32>} : memref<4x17x32xbf16, #tpu.memory_space<vmem>>, vector<1x17x32xbf16>,
    %c1 = arith.constant 1 : index
    %c0_26 = arith.constant 0 : index
    %c0_27 = arith.constant 0 : index
    %53 = vector.load %arg1[%c1, %c0_26, %c0_27] : memref<4x17x32xbf16, #tpu.memory_space<vmem>>, vector<1x17x32xbf16>
    %54 = vector.shape_cast %53 : vector<1x17x32xbf16> to vector<17x32xbf16>
    %c0_28 = arith.constant 0 : index
    %c0_29 = arith.constant 0 : index
    %55 = vector.load %arg2[%c0_28, %c0_29] : memref<1x32xf32, #tpu.memory_space<vmem>>, vector<1x32xf32>
    %c0_30 = arith.constant 0 : index
    %c0_31 = arith.constant 0 : index
    %56 = vector.load %arg3[%c0_30, %c0_31] : memref<1x32xf32, #tpu.memory_space<vmem>>, vector<1x32xf32>
    %57 = arith.extf %54 : vector<17x32xbf16> to vector<17x32xf32>
    %cst_32 = arith.constant dense<0.000000e+00> : vector<17xf32>
    %58 = vector.multi_reduction <add>, %57, %cst_32 [1] : vector<17x32xf32> to vector<17xf32>
    %59 = vector.shape_cast %58 : vector<17xf32> to vector<17x1xf32>
    %cst_33 = arith.constant 3.200000e+01 : f32
    %60 = vector.broadcast %cst_33 : f32 to vector<17x1xf32>
    %61 = arith.divf %59, %60 : vector<17x1xf32>
    %62 = vector.broadcast %61 : vector<17x1xf32> to vector<17x32xf32>
    %63 = arith.subf %57, %62 : vector<17x32xf32>
    %64 = arith.mulf %63, %63 : vector<17x32xf32>
    %cst_34 = arith.constant dense<0.000000e+00> : vector<17xf32>
    %65 = vector.multi_reduction <add>, %64, %cst_34 [1] : vector<17x32xf32> to vector<17xf32>
    %66 = vector.shape_cast %65 : vector<17xf32> to vector<17x1xf32>
    %cst_35 = arith.constant 3.200000e+01 : f32
    %67 = vector.broadcast %cst_35 : f32 to vector<17x1xf32>
    %68 = arith.divf %66, %67 : vector<17x1xf32>
    %69 = vector.broadcast %61 : vector<17x1xf32> to vector<17x32xf32>
    %70 = arith.subf %57, %69 : vector<17x32xf32>
    %cst_36 = arith.constant 9.99999996E-13 : f32
    %71 = vector.broadcast %cst_36 : f32 to vector<17x1xf32>
    %72 = arith.addf %68, %71 : vector<17x1xf32>
    %73 = math.rsqrt %72 : vector<17x1xf32>
    %74 = vector.broadcast %73 : vector<17x1xf32> to vector<17x32xf32>
    %75 = arith.mulf %70, %74 : vector<17x32xf32>
    %76 = vector.broadcast %55 : vector<1x32xf32> to vector<17x32xf32>
    %77 = arith.mulf %75, %76 : vector<17x32xf32>
    %78 = vector.broadcast %56 : vector<1x32xf32> to vector<17x32xf32>
    %79 = arith.addf %77, %78 : vector<17x32xf32>
    %80 = arith.truncf %79 : vector<17x32xf32> to vector<17x32xbf16>
    %cst_37 = arith.constant dense<0.000000e+00> : vector<17x64xf32>
    %81 = tpu.matmul %80, %0, %cst_37 {dimension_numbers = #tpu.dot_dimension_numbers<[1], [0], [0], [1], [0, 0, 1, 1], [], []>} : vector<17x32xbf16>, vector<32x64xbf16>, vector<17x64xf32> -> vector<17x64xf32>
    %82 = vector.broadcast %1 : vector<1x64xf32> to vector<17x64xf32>
    %83 = arith.addf %81, %82 : vector<17x64xf32>
    %cst_38 = arith.constant 5.000000e-01 : f32
    %84 = vector.broadcast %cst_38 : f32 to vector<17x64xf32>
    %85 = arith.mulf %84, %83 : vector<17x64xf32>
    %cst_39 = arith.constant 0.707106769 : f32
    %86 = vector.broadcast %cst_39 : f32 to vector<17x64xf32>
    %87 = arith.mulf %83, %86 : vector<17x64xf32>
    %88 = math.erf %87 : vector<17x64xf32>
    %cst_40 = arith.constant 1.000000e+00 : f32
    %89 = vector.broadcast %cst_40 : f32 to vector<17x64xf32>
    %90 = arith.addf %89, %88 : vector<17x64xf32>
    %91 = arith.mulf %85, %90 : vector<17x64xf32>
    %92 = arith.truncf %91 : vector<17x64xf32> to vector<17x64xbf16>
    %cst_41 = arith.constant dense<0.000000e+00> : vector<17x32xf32>
    %93 = tpu.matmul %92, %2, %cst_41 {dimension_numbers = #tpu.dot_dimension_numbers<[1], [0], [0], [1], [0, 0, 1, 1], [], []>} : vector<17x64xbf16>, vector<64x32xbf16>, vector<17x32xf32> -> vector<17x32xf32>
    %94 = vector.broadcast %3 : vector<1x32xf32> to vector<17x32xf32>
    %95 = arith.addf %93, %94 : vector<17x32xf32>
    %96 = arith.extf %54 : vector<17x32xbf16> to vector<17x32xf32>
    %97 = arith.addf %95, %96 : vector<17x32xf32>
    %98 = arith.truncf %97 : vector<17x32xf32> to vector<17x32xbf16>
    %c1_42 = arith.constant 1 : index
    %c0_43 = arith.constant 0 : index
    %c0_44 = arith.constant 0 : index
    %99 = vector.load %arg8[%c1_42, %c0_43, %c0_44] : memref<4x17x32xbf16, #tpu.memory_space<vmem>>, vector<1x17x32xbf16>
    %100 = vector.shape_cast %99 : vector<1x17x32xbf16> to vector<17x32xbf16>
    %101 = vector.shape_cast %98 : vector<17x32xbf16> to vector<1x17x32xbf16>
    tpu.vector_store %arg8[%c1_42, %c0_43, %c0_44], %101 {strides = array<i32>} : memref<4x17x32xbf16, #tpu.memory_space<vmem>>, vector<1x17x32xbf16>,
    %c2 = arith.constant 2 : index
    %c0_45 = arith.constant 0 : index
    %c0_46 = arith.constant 0 : index
    %102 = vector.load %arg1[%c2, %c0_45, %c0_46] : memref<4x17x32xbf16, #tpu.memory_space<vmem>>, vector<1x17x32xbf16>
    %103 = vector.shape_cast %102 : vector<1x17x32xbf16> to vector<17x32xbf16>
    %c0_47 = arith.constant 0 : index
    %c0_48 = arith.constant 0 : index
    %104 = vector.load %arg2[%c0_47, %c0_48] : memref<1x32xf32, #tpu.memory_space<vmem>>, vector<1x32xf32>
    %c0_49 = arith.constant 0 : index
    %c0_50 = arith.constant 0 : index
    %105 = vector.load %arg3[%c0_49, %c0_50] : memref<1x32xf32, #tpu.memory_space<vmem>>, vector<1x32xf32>
    %106 = arith.extf %103 : vector<17x32xbf16> to vector<17x32xf32>
    %cst_51 = arith.constant dense<0.000000e+00> : vector<17xf32>
    %107 = vector.multi_reduction <add>, %106, %cst_51 [1] : vector<17x32xf32> to vector<17xf32>
    %108 = vector.shape_cast %107 : vector<17xf32> to vector<17x1xf32>
    %cst_52 = arith.constant 3.200000e+01 : f32
    %109 = vector.broadcast %cst_52 : f32 to vector<17x1xf32>
    %110 = arith.divf %108, %109 : vector<17x1xf32>
    %111 = vector.broadcast %110 : vector<17x1xf32> to vector<17x32xf32>
    %112 = arith.subf %106, %111 : vector<17x32xf32>
    %113 = arith.mulf %112, %112 : vector<17x32xf32>
    %cst_53 = arith.constant dense<0.000000e+00> : vector<17xf32>
    %114 = vector.multi_reduction <add>, %113, %cst_53 [1] : vector<17x32xf32> to vector<17xf32>
    %115 = vector.shape_cast %114 : vector<17xf32> to vector<17x1xf32>
    %cst_54 = arith.constant 3.200000e+01 : f32
    %116 = vector.broadcast %cst_54 : f32 to vector<17x1xf32>
    %117 = arith.divf %115, %116 : vector<17x1xf32>
    %118 = vector.broadcast %110 : vector<17x1xf32> to vector<17x32xf32>
    %119 = arith.subf %106, %118 : vector<17x32xf32>
    %cst_55 = arith.constant 9.99999996E-13 : f32
    %120 = vector.broadcast %cst_55 : f32 to vector<17x1xf32>
    %121 = arith.addf %117, %120 : vector<17x1xf32>
    %122 = math.rsqrt %121 : vector<17x1xf32>
    %123 = vector.broadcast %122 : vector<17x1xf32> to vector<17x32xf32>
    %124 = arith.mulf %119, %123 : vector<17x32xf32>
    %125 = vector.broadcast %104 : vector<1x32xf32> to vector<17x32xf32>
    %126 = arith.mulf %124, %125 : vector<17x32xf32>
    %127 = vector.broadcast %105 : vector<1x32xf32> to vector<17x32xf32>
    %128 = arith.addf %126, %127 : vector<17x32xf32>
    %129 = arith.truncf %128 : vector<17x32xf32> to vector<17x32xbf16>
    %cst_56 = arith.constant dense<0.000000e+00> : vector<17x64xf32>
    %130 = tpu.matmul %129, %0, %cst_56 {dimension_numbers = #tpu.dot_dimension_numbers<[1], [0], [0], [1], [0, 0, 1, 1], [], []>} : vector<17x32xbf16>, vector<32x64xbf16>, vector<17x64xf32> -> vector<17x64xf32>
    %131 = vector.broadcast %1 : vector<1x64xf32> to vector<17x64xf32>
    %132 = arith.addf %130, %131 : vector<17x64xf32>
    %cst_57 = arith.constant 5.000000e-01 : f32
    %133 = vector.broadcast %cst_57 : f32 to vector<17x64xf32>
    %134 = arith.mulf %133, %132 : vector<17x64xf32>
    %cst_58 = arith.constant 0.707106769 : f32
    %135 = vector.broadcast %cst_58 : f32 to vector<17x64xf32>
    %136 = arith.mulf %132, %135 : vector<17x64xf32>
    %137 = math.erf %136 : vector<17x64xf32>
    %cst_59 = arith.constant 1.000000e+00 : f32
    %138 = vector.broadcast %cst_59 : f32 to vector<17x64xf32>
    %139 = arith.addf %138, %137 : vector<17x64xf32>
    %140 = arith.mulf %134, %139 : vector<17x64xf32>
    %141 = arith.truncf %140 : vector<17x64xf32> to vector<17x64xbf16>
    %cst_60 = arith.constant dense<0.000000e+00> : vector<17x32xf32>
    %142 = tpu.matmul %141, %2, %cst_60 {dimension_numbers = #tpu.dot_dimension_numbers<[1], [0], [0], [1], [0, 0, 1, 1], [], []>} : vector<17x64xbf16>, vector<64x32xbf16>, vector<17x32xf32> -> vector<17x32xf32>
    %143 = vector.broadcast %3 : vector<1x32xf32> to vector<17x32xf32>
    %144 = arith.addf %142, %143 : vector<17x32xf32>
    %145 = arith.extf %103 : vector<17x32xbf16> to vector<17x32xf32>
    %146 = arith.addf %144, %145 : vector<17x32xf32>
    %147 = arith.truncf %146 : vector<17x32xf32> to vector<17x32xbf16>
    %c2_61 = arith.constant 2 : index
    %c0_62 = arith.constant 0 : index
    %c0_63 = arith.constant 0 : index
    %148 = vector.load %arg8[%c2_61, %c0_62, %c0_63] : memref<4x17x32xbf16, #tpu.memory_space<vmem>>, vector<1x17x32xbf16>
    %149 = vector.shape_cast %148 : vector<1x17x32xbf16> to vector<17x32xbf16>
    %150 = vector.shape_cast %147 : vector<17x32xbf16> to vector<1x17x32xbf16>
    tpu.vector_store %arg8[%c2_61, %c0_62, %c0_63], %150 {strides = array<i32>} : memref<4x17x32xbf16, #tpu.memory_space<vmem>>, vector<1x17x32xbf16>,
    %c3 = arith.constant 3 : index
    %c0_64 = arith.constant 0 : index
    %c0_65 = arith.constant 0 : index
    %151 = vector.load %arg1[%c3, %c0_64, %c0_65] : memref<4x17x32xbf16, #tpu.memory_space<vmem>>, vector<1x17x32xbf16>
    %152 = vector.shape_cast %151 : vector<1x17x32xbf16> to vector<17x32xbf16>
    %c0_66 = arith.constant 0 : index
    %c0_67 = arith.constant 0 : index
    %153 = vector.load %arg2[%c0_66, %c0_67] : memref<1x32xf32, #tpu.memory_space<vmem>>, vector<1x32xf32>
    %c0_68 = arith.constant 0 : index
    %c0_69 = arith.constant 0 : index
    %154 = vector.load %arg3[%c0_68, %c0_69] : memref<1x32xf32, #tpu.memory_space<vmem>>, vector<1x32xf32>
    %155 = arith.extf %152 : vector<17x32xbf16> to vector<17x32xf32>
    %cst_70 = arith.constant dense<0.000000e+00> : vector<17xf32>
    %156 = vector.multi_reduction <add>, %155, %cst_70 [1] : vector<17x32xf32> to vector<17xf32>
    %157 = vector.shape_cast %156 : vector<17xf32> to vector<17x1xf32>
    %cst_71 = arith.constant 3.200000e+01 : f32
    %158 = vector.broadcast %cst_71 : f32 to vector<17x1xf32>
    %159 = arith.divf %157, %158 : vector<17x1xf32>
    %160 = vector.broadcast %159 : vector<17x1xf32> to vector<17x32xf32>
    %161 = arith.subf %155, %160 : vector<17x32xf32>
    %162 = arith.mulf %161, %161 : vector<17x32xf32>
    %cst_72 = arith.constant dense<0.000000e+00> : vector<17xf32>
    %163 = vector.multi_reduction <add>, %162, %cst_72 [1] : vector<17x32xf32> to vector<17xf32>
    %164 = vector.shape_cast %163 : vector<17xf32> to vector<17x1xf32>
    %cst_73 = arith.constant 3.200000e+01 : f32
    %165 = vector.broadcast %cst_73 : f32 to vector<17x1xf32>
    %166 = arith.divf %164, %165 : vector<17x1xf32>
    %167 = vector.broadcast %159 : vector<17x1xf32> to vector<17x32xf32>
    %168 = arith.subf %155, %167 : vector<17x32xf32>
    %cst_74 = arith.constant 9.99999996E-13 : f32
    %169 = vector.broadcast %cst_74 : f32 to vector<17x1xf32>
    %170 = arith.addf %166, %169 : vector<17x1xf32>
    %171 = math.rsqrt %170 : vector<17x1xf32>
    %172 = vector.broadcast %171 : vector<17x1xf32> to vector<17x32xf32>
    %173 = arith.mulf %168, %172 : vector<17x32xf32>
    %174 = vector.broadcast %153 : vector<1x32xf32> to vector<17x32xf32>
    %175 = arith.mulf %173, %174 : vector<17x32xf32>
    %176 = vector.broadcast %154 : vector<1x32xf32> to vector<17x32xf32>
    %177 = arith.addf %175, %176 : vector<17x32xf32>
    %178 = arith.truncf %177 : vector<17x32xf32> to vector<17x32xbf16>
    %cst_75 = arith.constant dense<0.000000e+00> : vector<17x64xf32>
    %179 = tpu.matmul %178, %0, %cst_75 {dimension_numbers = #tpu.dot_dimension_numbers<[1], [0], [0], [1], [0, 0, 1, 1], [], []>} : vector<17x32xbf16>, vector<32x64xbf16>, vector<17x64xf32> -> vector<17x64xf32>
    %180 = vector.broadcast %1 : vector<1x64xf32> to vector<17x64xf32>
    %181 = arith.addf %179, %180 : vector<17x64xf32>
    %cst_76 = arith.constant 5.000000e-01 : f32
    %182 = vector.broadcast %cst_76 : f32 to vector<17x64xf32>
    %183 = arith.mulf %182, %181 : vector<17x64xf32>
    %cst_77 = arith.constant 0.707106769 : f32
    %184 = vector.broadcast %cst_77 : f32 to vector<17x64xf32>
    %185 = arith.mulf %181, %184 : vector<17x64xf32>
    %186 = math.erf %185 : vector<17x64xf32>
    %cst_78 = arith.constant 1.000000e+00 : f32
    %187 = vector.broadcast %cst_78 : f32 to vector<17x64xf32>
    %188 = arith.addf %187, %186 : vector<17x64xf32>
    %189 = arith.mulf %183, %188 : vector<17x64xf32>
    %190 = arith.truncf %189 : vector<17x64xf32> to vector<17x64xbf16>
    %cst_79 = arith.constant dense<0.000000e+00> : vector<17x32xf32>
    %191 = tpu.matmul %190, %2, %cst_79 {dimension_numbers = #tpu.dot_dimension_numbers<[1], [0], [0], [1], [0, 0, 1, 1], [], []>} : vector<17x64xbf16>, vector<64x32xbf16>, vector<17x32xf32> -> vector<17x32xf32>
    %192 = vector.broadcast %3 : vector<1x32xf32> to vector<17x32xf32>
    %193 = arith.addf %191, %192 : vector<17x32xf32>
    %194 = arith.extf %152 : vector<17x32xbf16> to vector<17x32xf32>
    %195 = arith.addf %193, %194 : vector<17x32xf32>
    %196 = arith.truncf %195 : vector<17x32xf32> to vector<17x32xbf16>
    %c3_80 = arith.constant 3 : index
    %c0_81 = arith.constant 0 : index
    %c0_82 = arith.constant 0 : index
    %197 = vector.load %arg8[%c3_80, %c0_81, %c0_82] : memref<4x17x32xbf16, #tpu.memory_space<vmem>>, vector<1x17x32xbf16>
    %198 = vector.shape_cast %197 : vector<1x17x32xbf16> to vector<17x32xbf16>
    %199 = vector.shape_cast %196 : vector<17x32xbf16> to vector<1x17x32xbf16>
    tpu.vector_store %arg8[%c3_80, %c0_81, %c0_82], %199 {strides = array<i32>} : memref<4x17x32xbf16, #tpu.memory_space<vmem>>, vector<1x17x32xbf16>,
    return
  }
  func.func @transform_0(%arg0: i32) -> (i32, i32, i32) {
    %c0_i32 = arith.constant 0 : i32
    %c0_i32_0 = arith.constant 0 : i32
    %c0_i32_1 = arith.constant 0 : i32
    return %arg0, %c0_i32, %c0_i32_0 : i32, i32, i32
  }
  func.func @transform_1(%arg0: i32) -> (i32, i32) {
    %c0_i32 = arith.constant 0 : i32
    %c0_i32_0 = arith.constant 0 : i32
    %c0_i32_1 = arith.constant 0 : i32
    return %c0_i32, %c0_i32_0 : i32, i32
  }
  func.func @transform_2(%arg0: i32) -> (i32, i32) {
    %c0_i32 = arith.constant 0 : i32
    %c0_i32_0 = arith.constant 0 : i32
    %c0_i32_1 = arith.constant 0 : i32
    return %c0_i32, %c0_i32_0 : i32, i32
  }
  func.func @transform_3(%arg0: i32) -> (i32, i32) {
    %c0_i32 = arith.constant 0 : i32
    %c0_i32_0 = arith.constant 0 : i32
    %c0_i32_1 = arith.constant 0 : i32
    return %c0_i32, %c0_i32_0 : i32, i32
  }
  func.func @transform_4(%arg0: i32) -> (i32, i32) {
    %c0_i32 = arith.constant 0 : i32
    %c0_i32_0 = arith.constant 0 : i32
    %c0_i32_1 = arith.constant 0 : i32
    return %c0_i32, %c0_i32_0 : i32, i32
  }
  func.func @transform_5(%arg0: i32) -> (i32, i32) {
    %c0_i32 = arith.constant 0 : i32
    %c0_i32_0 = arith.constant 0 : i32
    %c0_i32_1 = arith.constant 0 : i32
    return %c0_i32, %c0_i32_0 : i32, i32
  }
  func.func @transform_6(%arg0: i32) -> (i32, i32) {
    %c0_i32 = arith.constant 0 : i32
    %c0_i32_0 = arith.constant 0 : i32
    %c0_i32_1 = arith.constant 0 : i32
    return %c0_i32, %c0_i32_0 : i32, i32
  }
  func.func @transform_7(%arg0: i32) -> (i32, i32, i32) {
    %c0_i32 = arith.constant 0 : i32
    %c0_i32_0 = arith.constant 0 : i32
    %c0_i32_1 = arith.constant 0 : i32
    return %arg0, %c0_i32, %c0_i32_0 : i32, i32, i32
  }
}

module attributes {stable_mosaic.version = 11 : i64} {
  func.func @_final_pool_kernel(%arg0: i32, %arg1: memref<4x17x32xbf16, #tpu.memory_space<vmem>>, %arg2: memref<1x32xf32, #tpu.memory_space<vmem>>, %arg3: memref<1x32xf32, #tpu.memory_space<vmem>>, %arg4: memref<4x1x32xf32, #tpu.memory_space<vmem>>) attributes {dimension_semantics = [#tpu.dimension_semantics<parallel>], iteration_bounds = array<i64: 1>, scalar_prefetch = 0 : i64, scratch_operands = 0 : i64, tpu.core_type = #tpu.core_type<tc>, window_params = [{transform_indices = @transform_0, window_bounds = array<i64: 4, 17, 32>}, {pipeline_mode = #tpu.pipeline_mode<synchronous>, transform_indices = @transform_1, window_bounds = array<i64: 1, 32>}, {pipeline_mode = #tpu.pipeline_mode<synchronous>, transform_indices = @transform_2, window_bounds = array<i64: 1, 32>}, {transform_indices = @transform_3, window_bounds = array<i64: 4, 1, 32>}]} {
    %c0 = arith.constant 0 : index
    %c0_0 = arith.constant 0 : index
    %c0_1 = arith.constant 0 : index
    %0 = vector.load %arg1[%c0, %c0_0, %c0_1] : memref<4x17x32xbf16, #tpu.memory_space<vmem>>, vector<1x17x32xbf16>
    %1 = vector.shape_cast %0 : vector<1x17x32xbf16> to vector<17x32xbf16>
    %c0_2 = arith.constant 0 : index
    %c0_3 = arith.constant 0 : index
    %2 = vector.load %arg2[%c0_2, %c0_3] : memref<1x32xf32, #tpu.memory_space<vmem>>, vector<1x32xf32>
    %c0_4 = arith.constant 0 : index
    %c0_5 = arith.constant 0 : index
    %3 = vector.load %arg3[%c0_4, %c0_5] : memref<1x32xf32, #tpu.memory_space<vmem>>, vector<1x32xf32>
    %4 = arith.extf %1 : vector<17x32xbf16> to vector<17x32xf32>
    %cst = arith.constant dense<0.000000e+00> : vector<17xf32>
    %5 = vector.multi_reduction <add>, %4, %cst [1] : vector<17x32xf32> to vector<17xf32>
    %6 = vector.shape_cast %5 : vector<17xf32> to vector<17x1xf32>
    %cst_6 = arith.constant 3.200000e+01 : f32
    %7 = vector.broadcast %cst_6 : f32 to vector<17x1xf32>
    %8 = arith.divf %6, %7 : vector<17x1xf32>
    %9 = vector.broadcast %8 : vector<17x1xf32> to vector<17x32xf32>
    %10 = arith.subf %4, %9 : vector<17x32xf32>
    %11 = arith.mulf %10, %10 : vector<17x32xf32>
    %cst_7 = arith.constant dense<0.000000e+00> : vector<17xf32>
    %12 = vector.multi_reduction <add>, %11, %cst_7 [1] : vector<17x32xf32> to vector<17xf32>
    %13 = vector.shape_cast %12 : vector<17xf32> to vector<17x1xf32>
    %cst_8 = arith.constant 3.200000e+01 : f32
    %14 = vector.broadcast %cst_8 : f32 to vector<17x1xf32>
    %15 = arith.divf %13, %14 : vector<17x1xf32>
    %16 = vector.broadcast %8 : vector<17x1xf32> to vector<17x32xf32>
    %17 = arith.subf %4, %16 : vector<17x32xf32>
    %cst_9 = arith.constant 9.99999996E-13 : f32
    %18 = vector.broadcast %cst_9 : f32 to vector<17x1xf32>
    %19 = arith.addf %15, %18 : vector<17x1xf32>
    %20 = math.rsqrt %19 : vector<17x1xf32>
    %21 = vector.broadcast %20 : vector<17x1xf32> to vector<17x32xf32>
    %22 = arith.mulf %17, %21 : vector<17x32xf32>
    %23 = vector.broadcast %2 : vector<1x32xf32> to vector<17x32xf32>
    %24 = arith.mulf %22, %23 : vector<17x32xf32>
    %25 = vector.broadcast %3 : vector<1x32xf32> to vector<17x32xf32>
    %26 = arith.addf %24, %25 : vector<17x32xf32>
    %27 = vector.extract_strided_slice %26 {offsets = [1, 0], sizes = [16, 32], strides = [1, 1]} : vector<17x32xf32> to vector<16x32xf32>
    %cst_10 = arith.constant dense<0.000000e+00> : vector<32xf32>
    %28 = vector.multi_reduction <add>, %27, %cst_10 [0] : vector<16x32xf32> to vector<32xf32>
    %29 = vector.shape_cast %28 : vector<32xf32> to vector<1x32xf32>
    %cst_11 = arith.constant 1.600000e+01 : f32
    %30 = vector.broadcast %cst_11 : f32 to vector<1x32xf32>
    %31 = arith.divf %29, %30 : vector<1x32xf32>
    %c0_12 = arith.constant 0 : index
    %c0_13 = arith.constant 0 : index
    %c0_14 = arith.constant 0 : index
    %32 = vector.load %arg4[%c0_12, %c0_13, %c0_14] : memref<4x1x32xf32, #tpu.memory_space<vmem>>, vector<1x1x32xf32>
    %33 = vector.shape_cast %32 : vector<1x1x32xf32> to vector<1x32xf32>
    %34 = vector.shape_cast %31 : vector<1x32xf32> to vector<1x1x32xf32>
    tpu.vector_store %arg4[%c0_12, %c0_13, %c0_14], %34 {strides = array<i32>} : memref<4x1x32xf32, #tpu.memory_space<vmem>>, vector<1x1x32xf32>,
    %c1 = arith.constant 1 : index
    %c0_15 = arith.constant 0 : index
    %c0_16 = arith.constant 0 : index
    %35 = vector.load %arg1[%c1, %c0_15, %c0_16] : memref<4x17x32xbf16, #tpu.memory_space<vmem>>, vector<1x17x32xbf16>
    %36 = vector.shape_cast %35 : vector<1x17x32xbf16> to vector<17x32xbf16>
    %c0_17 = arith.constant 0 : index
    %c0_18 = arith.constant 0 : index
    %37 = vector.load %arg2[%c0_17, %c0_18] : memref<1x32xf32, #tpu.memory_space<vmem>>, vector<1x32xf32>
    %c0_19 = arith.constant 0 : index
    %c0_20 = arith.constant 0 : index
    %38 = vector.load %arg3[%c0_19, %c0_20] : memref<1x32xf32, #tpu.memory_space<vmem>>, vector<1x32xf32>
    %39 = arith.extf %36 : vector<17x32xbf16> to vector<17x32xf32>
    %cst_21 = arith.constant dense<0.000000e+00> : vector<17xf32>
    %40 = vector.multi_reduction <add>, %39, %cst_21 [1] : vector<17x32xf32> to vector<17xf32>
    %41 = vector.shape_cast %40 : vector<17xf32> to vector<17x1xf32>
    %cst_22 = arith.constant 3.200000e+01 : f32
    %42 = vector.broadcast %cst_22 : f32 to vector<17x1xf32>
    %43 = arith.divf %41, %42 : vector<17x1xf32>
    %44 = vector.broadcast %43 : vector<17x1xf32> to vector<17x32xf32>
    %45 = arith.subf %39, %44 : vector<17x32xf32>
    %46 = arith.mulf %45, %45 : vector<17x32xf32>
    %cst_23 = arith.constant dense<0.000000e+00> : vector<17xf32>
    %47 = vector.multi_reduction <add>, %46, %cst_23 [1] : vector<17x32xf32> to vector<17xf32>
    %48 = vector.shape_cast %47 : vector<17xf32> to vector<17x1xf32>
    %cst_24 = arith.constant 3.200000e+01 : f32
    %49 = vector.broadcast %cst_24 : f32 to vector<17x1xf32>
    %50 = arith.divf %48, %49 : vector<17x1xf32>
    %51 = vector.broadcast %43 : vector<17x1xf32> to vector<17x32xf32>
    %52 = arith.subf %39, %51 : vector<17x32xf32>
    %cst_25 = arith.constant 9.99999996E-13 : f32
    %53 = vector.broadcast %cst_25 : f32 to vector<17x1xf32>
    %54 = arith.addf %50, %53 : vector<17x1xf32>
    %55 = math.rsqrt %54 : vector<17x1xf32>
    %56 = vector.broadcast %55 : vector<17x1xf32> to vector<17x32xf32>
    %57 = arith.mulf %52, %56 : vector<17x32xf32>
    %58 = vector.broadcast %37 : vector<1x32xf32> to vector<17x32xf32>
    %59 = arith.mulf %57, %58 : vector<17x32xf32>
    %60 = vector.broadcast %38 : vector<1x32xf32> to vector<17x32xf32>
    %61 = arith.addf %59, %60 : vector<17x32xf32>
    %62 = vector.extract_strided_slice %61 {offsets = [1, 0], sizes = [16, 32], strides = [1, 1]} : vector<17x32xf32> to vector<16x32xf32>
    %cst_26 = arith.constant dense<0.000000e+00> : vector<32xf32>
    %63 = vector.multi_reduction <add>, %62, %cst_26 [0] : vector<16x32xf32> to vector<32xf32>
    %64 = vector.shape_cast %63 : vector<32xf32> to vector<1x32xf32>
    %cst_27 = arith.constant 1.600000e+01 : f32
    %65 = vector.broadcast %cst_27 : f32 to vector<1x32xf32>
    %66 = arith.divf %64, %65 : vector<1x32xf32>
    %c1_28 = arith.constant 1 : index
    %c0_29 = arith.constant 0 : index
    %c0_30 = arith.constant 0 : index
    %67 = vector.load %arg4[%c1_28, %c0_29, %c0_30] : memref<4x1x32xf32, #tpu.memory_space<vmem>>, vector<1x1x32xf32>
    %68 = vector.shape_cast %67 : vector<1x1x32xf32> to vector<1x32xf32>
    %69 = vector.shape_cast %66 : vector<1x32xf32> to vector<1x1x32xf32>
    tpu.vector_store %arg4[%c1_28, %c0_29, %c0_30], %69 {strides = array<i32>} : memref<4x1x32xf32, #tpu.memory_space<vmem>>, vector<1x1x32xf32>,
    %c2 = arith.constant 2 : index
    %c0_31 = arith.constant 0 : index
    %c0_32 = arith.constant 0 : index
    %70 = vector.load %arg1[%c2, %c0_31, %c0_32] : memref<4x17x32xbf16, #tpu.memory_space<vmem>>, vector<1x17x32xbf16>
    %71 = vector.shape_cast %70 : vector<1x17x32xbf16> to vector<17x32xbf16>
    %c0_33 = arith.constant 0 : index
    %c0_34 = arith.constant 0 : index
    %72 = vector.load %arg2[%c0_33, %c0_34] : memref<1x32xf32, #tpu.memory_space<vmem>>, vector<1x32xf32>
    %c0_35 = arith.constant 0 : index
    %c0_36 = arith.constant 0 : index
    %73 = vector.load %arg3[%c0_35, %c0_36] : memref<1x32xf32, #tpu.memory_space<vmem>>, vector<1x32xf32>
    %74 = arith.extf %71 : vector<17x32xbf16> to vector<17x32xf32>
    %cst_37 = arith.constant dense<0.000000e+00> : vector<17xf32>
    %75 = vector.multi_reduction <add>, %74, %cst_37 [1] : vector<17x32xf32> to vector<17xf32>
    %76 = vector.shape_cast %75 : vector<17xf32> to vector<17x1xf32>
    %cst_38 = arith.constant 3.200000e+01 : f32
    %77 = vector.broadcast %cst_38 : f32 to vector<17x1xf32>
    %78 = arith.divf %76, %77 : vector<17x1xf32>
    %79 = vector.broadcast %78 : vector<17x1xf32> to vector<17x32xf32>
    %80 = arith.subf %74, %79 : vector<17x32xf32>
    %81 = arith.mulf %80, %80 : vector<17x32xf32>
    %cst_39 = arith.constant dense<0.000000e+00> : vector<17xf32>
    %82 = vector.multi_reduction <add>, %81, %cst_39 [1] : vector<17x32xf32> to vector<17xf32>
    %83 = vector.shape_cast %82 : vector<17xf32> to vector<17x1xf32>
    %cst_40 = arith.constant 3.200000e+01 : f32
    %84 = vector.broadcast %cst_40 : f32 to vector<17x1xf32>
    %85 = arith.divf %83, %84 : vector<17x1xf32>
    %86 = vector.broadcast %78 : vector<17x1xf32> to vector<17x32xf32>
    %87 = arith.subf %74, %86 : vector<17x32xf32>
    %cst_41 = arith.constant 9.99999996E-13 : f32
    %88 = vector.broadcast %cst_41 : f32 to vector<17x1xf32>
    %89 = arith.addf %85, %88 : vector<17x1xf32>
    %90 = math.rsqrt %89 : vector<17x1xf32>
    %91 = vector.broadcast %90 : vector<17x1xf32> to vector<17x32xf32>
    %92 = arith.mulf %87, %91 : vector<17x32xf32>
    %93 = vector.broadcast %72 : vector<1x32xf32> to vector<17x32xf32>
    %94 = arith.mulf %92, %93 : vector<17x32xf32>
    %95 = vector.broadcast %73 : vector<1x32xf32> to vector<17x32xf32>
    %96 = arith.addf %94, %95 : vector<17x32xf32>
    %97 = vector.extract_strided_slice %96 {offsets = [1, 0], sizes = [16, 32], strides = [1, 1]} : vector<17x32xf32> to vector<16x32xf32>
    %cst_42 = arith.constant dense<0.000000e+00> : vector<32xf32>
    %98 = vector.multi_reduction <add>, %97, %cst_42 [0] : vector<16x32xf32> to vector<32xf32>
    %99 = vector.shape_cast %98 : vector<32xf32> to vector<1x32xf32>
    %cst_43 = arith.constant 1.600000e+01 : f32
    %100 = vector.broadcast %cst_43 : f32 to vector<1x32xf32>
    %101 = arith.divf %99, %100 : vector<1x32xf32>
    %c2_44 = arith.constant 2 : index
    %c0_45 = arith.constant 0 : index
    %c0_46 = arith.constant 0 : index
    %102 = vector.load %arg4[%c2_44, %c0_45, %c0_46] : memref<4x1x32xf32, #tpu.memory_space<vmem>>, vector<1x1x32xf32>
    %103 = vector.shape_cast %102 : vector<1x1x32xf32> to vector<1x32xf32>
    %104 = vector.shape_cast %101 : vector<1x32xf32> to vector<1x1x32xf32>
    tpu.vector_store %arg4[%c2_44, %c0_45, %c0_46], %104 {strides = array<i32>} : memref<4x1x32xf32, #tpu.memory_space<vmem>>, vector<1x1x32xf32>,
    %c3 = arith.constant 3 : index
    %c0_47 = arith.constant 0 : index
    %c0_48 = arith.constant 0 : index
    %105 = vector.load %arg1[%c3, %c0_47, %c0_48] : memref<4x17x32xbf16, #tpu.memory_space<vmem>>, vector<1x17x32xbf16>
    %106 = vector.shape_cast %105 : vector<1x17x32xbf16> to vector<17x32xbf16>
    %c0_49 = arith.constant 0 : index
    %c0_50 = arith.constant 0 : index
    %107 = vector.load %arg2[%c0_49, %c0_50] : memref<1x32xf32, #tpu.memory_space<vmem>>, vector<1x32xf32>
    %c0_51 = arith.constant 0 : index
    %c0_52 = arith.constant 0 : index
    %108 = vector.load %arg3[%c0_51, %c0_52] : memref<1x32xf32, #tpu.memory_space<vmem>>, vector<1x32xf32>
    %109 = arith.extf %106 : vector<17x32xbf16> to vector<17x32xf32>
    %cst_53 = arith.constant dense<0.000000e+00> : vector<17xf32>
    %110 = vector.multi_reduction <add>, %109, %cst_53 [1] : vector<17x32xf32> to vector<17xf32>
    %111 = vector.shape_cast %110 : vector<17xf32> to vector<17x1xf32>
    %cst_54 = arith.constant 3.200000e+01 : f32
    %112 = vector.broadcast %cst_54 : f32 to vector<17x1xf32>
    %113 = arith.divf %111, %112 : vector<17x1xf32>
    %114 = vector.broadcast %113 : vector<17x1xf32> to vector<17x32xf32>
    %115 = arith.subf %109, %114 : vector<17x32xf32>
    %116 = arith.mulf %115, %115 : vector<17x32xf32>
    %cst_55 = arith.constant dense<0.000000e+00> : vector<17xf32>
    %117 = vector.multi_reduction <add>, %116, %cst_55 [1] : vector<17x32xf32> to vector<17xf32>
    %118 = vector.shape_cast %117 : vector<17xf32> to vector<17x1xf32>
    %cst_56 = arith.constant 3.200000e+01 : f32
    %119 = vector.broadcast %cst_56 : f32 to vector<17x1xf32>
    %120 = arith.divf %118, %119 : vector<17x1xf32>
    %121 = vector.broadcast %113 : vector<17x1xf32> to vector<17x32xf32>
    %122 = arith.subf %109, %121 : vector<17x32xf32>
    %cst_57 = arith.constant 9.99999996E-13 : f32
    %123 = vector.broadcast %cst_57 : f32 to vector<17x1xf32>
    %124 = arith.addf %120, %123 : vector<17x1xf32>
    %125 = math.rsqrt %124 : vector<17x1xf32>
    %126 = vector.broadcast %125 : vector<17x1xf32> to vector<17x32xf32>
    %127 = arith.mulf %122, %126 : vector<17x32xf32>
    %128 = vector.broadcast %107 : vector<1x32xf32> to vector<17x32xf32>
    %129 = arith.mulf %127, %128 : vector<17x32xf32>
    %130 = vector.broadcast %108 : vector<1x32xf32> to vector<17x32xf32>
    %131 = arith.addf %129, %130 : vector<17x32xf32>
    %132 = vector.extract_strided_slice %131 {offsets = [1, 0], sizes = [16, 32], strides = [1, 1]} : vector<17x32xf32> to vector<16x32xf32>
    %cst_58 = arith.constant dense<0.000000e+00> : vector<32xf32>
    %133 = vector.multi_reduction <add>, %132, %cst_58 [0] : vector<16x32xf32> to vector<32xf32>
    %134 = vector.shape_cast %133 : vector<32xf32> to vector<1x32xf32>
    %cst_59 = arith.constant 1.600000e+01 : f32
    %135 = vector.broadcast %cst_59 : f32 to vector<1x32xf32>
    %136 = arith.divf %134, %135 : vector<1x32xf32>
    %c3_60 = arith.constant 3 : index
    %c0_61 = arith.constant 0 : index
    %c0_62 = arith.constant 0 : index
    %137 = vector.load %arg4[%c3_60, %c0_61, %c0_62] : memref<4x1x32xf32, #tpu.memory_space<vmem>>, vector<1x1x32xf32>
    %138 = vector.shape_cast %137 : vector<1x1x32xf32> to vector<1x32xf32>
    %139 = vector.shape_cast %136 : vector<1x32xf32> to vector<1x1x32xf32>
    tpu.vector_store %arg4[%c3_60, %c0_61, %c0_62], %139 {strides = array<i32>} : memref<4x1x32xf32, #tpu.memory_space<vmem>>, vector<1x1x32xf32>,
    return
  }
  func.func @transform_0(%arg0: i32) -> (i32, i32, i32) {
    %c0_i32 = arith.constant 0 : i32
    %c0_i32_0 = arith.constant 0 : i32
    %c0_i32_1 = arith.constant 0 : i32
    return %arg0, %c0_i32, %c0_i32_0 : i32, i32, i32
  }
  func.func @transform_1(%arg0: i32) -> (i32, i32) {
    %c0_i32 = arith.constant 0 : i32
    %c0_i32_0 = arith.constant 0 : i32
    %c0_i32_1 = arith.constant 0 : i32
    return %c0_i32, %c0_i32_0 : i32, i32
  }
  func.func @transform_2(%arg0: i32) -> (i32, i32) {
    %c0_i32 = arith.constant 0 : i32
    %c0_i32_0 = arith.constant 0 : i32
    %c0_i32_1 = arith.constant 0 : i32
    return %c0_i32, %c0_i32_0 : i32, i32
  }
  func.func @transform_3(%arg0: i32) -> (i32, i32, i32) {
    %c0_i32 = arith.constant 0 : i32
    %c0_i32_0 = arith.constant 0 : i32
    %c0_i32_1 = arith.constant 0 : i32
    return %arg0, %c0_i32, %c0_i32_0 : i32, i32, i32
  }
}

</mosaic_0001>

<bundles_post_ra>
// kernel: vit_encoder_with_attn_forward.10
= control target key start
LH: loop header
LB: loop body
LE: loop exit
PB: predicated region body
PF: predicated region fallthrough
CT: control target
= control target key end

     0   :  { %v335_v0 = vmov 0.0   ;;  %vm336_vm0 = vmmov 0   ;;  %vm49_vm1 = vcmask 392192   ;;  %vm94_vm2 = vcmask 261120   ;;  %s433_s1 = inlined_call_operand.vmem [shape: bf16[48,32], index: 1, kind: input, shape index: {}]   ;;  %s434_s0 = inlined_call_operand.vmem [shape: f32[4,16,48], index: 0, kind: input, shape index: {}]   ;;  %s435_s2 = inlined_call_operand.vmem [shape: f32[1,32], index: 2, kind: input, shape index: {}]   ;;  %s436_s3 = inlined_call_operand.vmem [shape: f32[4,16,32], index: 3, kind: output, shape index: {}]  }
   0x1   :  { %290 = vmatprep.subr.bf16.mxu0 %v335_v0  ;;  %300 = vmatprep.subr.bf16.mxu1 %v335_v0  ;;  %v332_v1 = vld [vmem:[%s433_s1 + $0x10] sm:$0xff]   ;;  %v333_v2 = vld [vmem:[%s433_s1 + $0x8] sm:$0xff]   ;;  %v334_v3 = vld [vmem:[%s433_s1] sm:$0xff]  }
   0x2   :  { %296 = vmatprep.mubr.msk.bf16.mxu0 %vm336_vm0, %v335_v0  ;;  %306 = vmatprep.mubr.msk.bf16.mxu1 %vm336_vm0, %v335_v0  ;;  %v22_v4 = vld [vmem:[%s434_s0] sm:$0xff]  ;;  %v23_v5 = vld [vmem:[%s434_s0 + $0x8] sm:$0xff]  ;;  %v259_v6 = vld [vmem:[%s434_s0 + $0x10] sm:$0xff] }
   0x3   :  { %291 = vmatpush3.bf16.msra.mxu0 %v332_v1  ;;  %301 = vmatpush3.bf16.msra.mxu1 %v332_v1  ;;  %v260_v7 = vld [vmem:[%s434_s0 + $0x18] sm:$0xff]  ;;  %v24_v8 = vpack.c.bf16 %v23_v5, %v22_v4  ;;  %v264_v10 = vld [vmem:[%s434_s0 + $0x20] sm:$0xff]  ;;  %v265_v11 = vld [vmem:[%s434_s0 + $0x28] sm:$0xff] }
   0x4   :  { %292 = vmatprep.subr.bf16.mxu0 %v335_v0  ;;  %302 = vmatprep.subr.bf16.mxu1 %v335_v0  ;;  %v100_v9 = vpack.c.bf16 %v260_v7, %v259_v6  ;;  %v269_v12 = vld [vmem:[%s434_s0 + $0x30] sm:$0xff]  ;;  %v270_v13 = vld [vmem:[%s434_s0 + $0x38] sm:$0xff]  ;;  %v151_v14 = vpack.c.bf16 %v265_v11, %v264_v10  ;;  %v254_v16 = vld [vmem:[%s435_s2] ss:$0 sm:$0xff] }
   0x5   :  { %v202_v15 = vpack.c.bf16 %v270_v13, %v269_v12 }
   0x7   :  { %293 = vmatpush3.bf16.msra.mxu0 %v333_v2  ;;  %303 = vmatpush3.bf16.msra.mxu1 %v333_v2 }
   0x8   :  { %294 = vmatprep.subr.bf16.mxu0 %v335_v0  ;;  %304 = vmatprep.subr.bf16.mxu1 %v335_v0 }
   0xb   :  { %295 = vmatpush3.bf16.msra.mxu0 %v334_v3  ;;  %305 = vmatpush3.bf16.msra.mxu1 %v334_v3 }
   0xc   :  { %310 = vmatprep.subr.bf16.mxu0 %v335_v0  ;;  %320 = vmatprep.subr.bf16.mxu1 %v335_v0 }
   0xe   :  { %297 = vmatmul.mubr.msk.bf16.vlgmr.msra.gmra.mxu0 %vm49_vm1, %v24_v8  ;;  %307 = vmatmul.mubr.msk.bf16.vlgmr.msra.gmra.mxu1 %vm49_vm1, %v100_v9 }
   0xf   :  { %311 = vmatpush3.bf16.msra.mxu0 %v332_v1  ;;  %321 = vmatpush3.bf16.msra.mxu1 %v332_v1 }
  0x10   :  { %312 = vmatprep.subr.bf16.mxu0 %v335_v0  ;;  %322 = vmatprep.subr.bf16.mxu1 %v335_v0 }
  0x11   :  { %316 = vmatprep.mubr.msk.bf16.mxu0 %vm336_vm0, %v335_v0  ;;  %326 = vmatprep.mubr.msk.bf16.mxu1 %vm336_vm0, %v335_v0 }
  0x13   :  { %313 = vmatpush3.bf16.msra.mxu0 %v333_v2  ;;  %323 = vmatpush3.bf16.msra.mxu1 %v333_v2 }
  0x14   :  { %314 = vmatprep.subr.bf16.mxu0 %v335_v0  ;;  %324 = vmatprep.subr.bf16.mxu1 %v335_v0 }
  0x17   :  { %315 = vmatpush3.bf16.msra.mxu0 %v334_v3  ;;  %325 = vmatpush3.bf16.msra.mxu1 %v334_v3 }
  0x1a   :  { %317 = vmatmul.mubr.msk.bf16.vlgmr.msra.gmra.mxu0 %vm49_vm1, %v151_v14  ;;  %327 = vmatmul.mubr.msk.bf16.vlgmr.msra.gmra.mxu1 %vm49_vm1, %v202_v15 }
  0xce   :  { %v87_v17 = vpop.f32.mrf.mxu0  ;;  %v138_v18 = vpop.f32.mrf.mxu1 }
  0xcf   :  { %v88_v19 = vadd.f32 %v254_v16, %v87_v17  ;;  %v139_v20 = vadd.f32 %v254_v16, %v138_v18 }
  0xd0   :  { %v298_v21 = vpop.f32.mrf.mxu0  ;;  %v308_v22 = vpop.f32.mrf.mxu1 }
  0xd1   :  { %95 = vst.msk [vmem:[%s436_s3] sm:$0xff] %vm94_vm2, %v88_v19  ;;  %262 = vst.msk [vmem:[%s436_s3 + $0x10] sm:$0xff] %vm94_vm2, %v139_v20 }
  0xd2   :  { %v90_v23 = vpop.f32.mrf.mxu0  ;;  %v141_v24 = vpop.f32.mrf.mxu1 }
  0xd3   :  { %v91_v25 = vadd.f32 %v254_v16, %v90_v23  ;;  %v142_v26 = vadd.f32 %v254_v16, %v141_v24 }
  0xd4   :  { %v299_v27 = vpop.f32.mrf.mxu0  ;;  %v309_v28 = vpop.f32.mrf.mxu1 }
  0xd5   :  { %96 = vst.msk [vmem:[%s436_s3 + $0x8] sm:$0xff] %vm94_vm2, %v91_v25  ;;  %263 = vst.msk [vmem:[%s436_s3 + $0x18] sm:$0xff] %vm94_vm2, %v142_v26 }
  0xda   :  { %v189_v29 = vpop.f32.mrf.mxu0  ;;  %v240_v30 = vpop.f32.mrf.mxu1 }
  0xdb   :  { %v190_v31 = vadd.f32 %v254_v16, %v189_v29  ;;  %v241_v32 = vadd.f32 %v254_v16, %v240_v30 }
  0xdc   :  { %v318_v33 = vpop.f32.mrf.mxu0  ;;  %v328_v34 = vpop.f32.mrf.mxu1 }
  0xdd   :  { %267 = vst.msk [vmem:[%s436_s3 + $0x20] sm:$0xff] %vm94_vm2, %v190_v31  ;;  %272 = vst.msk [vmem:[%s436_s3 + $0x30] sm:$0xff] %vm94_vm2, %v241_v32 }
  0xde   :  { %v192_v35 = vpop.f32.mrf.mxu0  ;;  %v243_v36 = vpop.f32.mrf.mxu1 }
  0xdf   :  { %v193_v37 = vadd.f32 %v254_v16, %v192_v35  ;;  %v244_v38 = vadd.f32 %v254_v16, %v243_v36 }
  0xe0   :  { %v319_v39 = vpop.f32.mrf.mxu0  ;;  %v329_v40 = vpop.f32.mrf.mxu1 }
  0xe1   :  { %268 = vst.msk [vmem:[%s436_s3 + $0x28] sm:$0xff] %vm94_vm2, %v193_v37  ;;  %273 = vst.msk [vmem:[%s436_s3 + $0x38] sm:$0xff] %vm94_vm2, %v244_v38 }

// kernel: vit_encoder_with_attn_forward.12
= control target key start
LH: loop header
LB: loop body
LE: loop exit
PB: predicated region body
PF: predicated region fallthrough
CT: control target
= control target key end

     0   :  { %s840_s9 = smov 0   ;;  %s952_s0 = inlined_call_operand.vmem [shape: bf16[4,17,96], index: 0, kind: input, shape index: {}]   ;;  %s953_s1 = inlined_call_operand.vmem [shape: bf16[4,17,32], index: 1, kind: output, shape index: {0}]   ;;  %s954_s2 = inlined_call_operand.vmem [shape: f32[4,2,17,16], index: 2, kind: output, shape index: {1}]  }
   0x1 LB: > { %s675_s10 = sadd.s32 4294967295, %s815_s9   ;;  %p679_p0 = scmp.ge.s32.totalorder %s815_s9, 1  ;;  %s815_s9 = sphi %s840_s9, %s13_s9  }
   0x2   : > { %p115_p1 = scmp.lt.s32.totalorder %s815_s9, 5 }
   0x4   : > { %p116_p2 = pnand %p679_p0, %p115_p1 }
   0x5   : > { %p142_p3 = scmp.lt.s32.totalorder (!%p116_p2), %s675_s10, 3  ;;  %s817_s15 = smov (!%p116_p2), 96  }
   0x6   : > { %119 = sbr.rel (%p116_p2) target bundleno = 1522 (0x5f2), region = 24  ;;  %s818_s16 = smov (!%p116_p2), 64  }
   0x7   : > { %s819_s17 = smov (!%p116_p2), 80   ;;  %s821_s18 = smov (!%p116_p2), 112  }
   0x8   : > { %s822_s19 = smov (!%p116_p2), 48   ;;  %s823_s20 = smov (!%p116_p2), 127  }
   0x9   : > { %s824_s25 = smov (!%p116_p2), 16  }
   0xb   : > { %s956_s10 = smov (!%p142_p3, %s675_s10), 3  ;;  %vm173_vm0 = vcmask 130048   ;;  %vm244_vm1 = vcmask 131072   ;;  %vm237_vm2 = vcmask 138240   ;;  %vm301_vm3 = vcmask 1040384  }
   0xc   : > { %s758_s11 = smul.u32 12, %s956_s10  ;;  %v820_v25 = vmov 0   ;;  %vm286_vm4 = vcmask 122880   ;;  %vm581_vm5 = vcmask 253952   ;;  %vm582_vm6 = vsmask.f32 256 }
   0xd   : > { %v875_v26 = vsel %vm301_vm3, 65535, %v820_v25  ;;  %s759_s21 = smul.u32 48, %s956_s10  ;;  %vm578_vm7 = vcmask 257024   ;;  %vm583_vm8 = vmand %vm581_vm5, %vm582_vm6 }
   0xe   : > { %s856_s14 = scalar_lea.vmem %s952_s0, %s758_s11  ;;  %s151_s28 = scalar_lea.vmem %s953_s1, %s758_s11 }
   0xf   : > { %v781_v0 = vld [vmem:[%s856_s14 + $0x8] ss:$0 sps:$4 sm:$0x11]   ;;  %v782_v1 = vld [vmem:[%s856_s14] sm:$0xff]   ;;  %s919_s24 = scalar_lea.vmem %s954_s2, %s759_s21 }
  0x10   : > { %171 = vrot.lane.b32.xlu0 %v781_v0, %s817_s15  ;;  %726 = vmatprep.mubr.msk.bf16.mxu0 %vm173_vm0, %v782_v1  ;;  %v871_v16 = vld [vmem:[%s856_s14 + $0x8] ss:$0 sps:$4 sm:$0x11]   ;;  %v883_v36 = vld [vmem:[%s856_s14] sm:$0xff]  }
  0x14   : > { %169 = vrot.lane.b32.xlu0 %v782_v1, %s817_s15 }
  0x82   : > { %v172_v2 = vpop.permute.xlu0 %171 }
  0x83   : > { %754 = vmatprep.subr.msk.bf16.mxu0 %vm173_vm0, %v172_v2  ;;  %v184_v3 = vsel %vm173_vm0, %v172_v2, 0 }
  0x84   : > { %723 = vmatpush3.bf16.xpose.msra.mxu0 %v184_v3 }
  0x86   : > { %v170_v4 = vpop.permute.xlu0 %169 }
  0x87   : > { %755 = vmatprep.subr.msk.bf16.mxu0 %vm173_vm0, %v170_v4  ;;  %v181_v5 = vsel %vm173_vm0, %v170_v4, 0 }
  0x8c   : > { %725 = vmatpush3.bf16.xpose.msra.mxu0 %v181_v5 }
  0x93   : > { %727 = vmatmul.mubr.msk.bf16.vlgmr.msra.gmra.mxu0 %vm173_vm0, %v781_v0 }
 0x153   : > { %v728_v6 = vpop.f32.mrf.mxu0 }
 0x154   : > { %v236_v7 = vmul.f32 0.25, %v728_v6 }
 0x155   : > { %v220_v8 = vpop.f32.mrf.mxu0 }
 0x156   : > { %v234_v9 = vmul.f32 0.25, %v220_v8  ;;  %v245_v10 = vsel %vm244_vm1, %v236_v7, -inf }
 0x157   : > { %246 = vmax.xlane.f32.xlu0 %v245_v10  ;;  %v729_v11 = vpop.f32.mrf.mxu0 }
 0x158   : > { %v238_v12 = vsel %vm237_vm2, %v234_v9, -inf }
 0x159   : > { %239 = vmax.xlane.f32.xlu1 %v238_v12  ;;  %v223_v13 = vpop.f32.mrf.mxu0 }
 0x15a   : > { %v235_v14 = vmul.f32 0.25, %v223_v13 }
 0x15c   : > { %v241_v15 = vsel %vm237_vm2, %v235_v14, -inf }
 0x15d   : > { %242 = vmax.xlane.f32.xlu1 %v241_v15 }
 0x16d   : > { %372 = vrot.lane.b32.xlu0 %v871_v16, %s819_s17 }
 0x16e   : > { %292 = vrot.lane.b32.xlu1 %v781_v0, %s818_s16 }
 0x1e0   : > { %v247_v17 = vpop.xlane.xlu0 %246 }
 0x1e1   : > { %v250_v18 = vsub.f32 %v236_v7, %v247_v17 }
 0x1e2   : > { %v240_v19 = vpop.xlane.xlu1 %239 }
 0x1e3   : > { %v255_v20 = vmul.f32 1.442695, %v250_v18  ;;  %v248_v21 = vsub.f32 %v234_v9, %v240_v19 }
 0x1e4   : > { %v373_v41 = vpop.permute.xlu0 %372 }
 0x1e5   : > { %785 = vpow2.f32 %v255_v20  ;;  %v251_v22 = vmul.f32 1.442695, %v248_v21  ;;  %v384_v50 = vsel %vm173_vm0, %v373_v41, 0 }
 0x1e6   : > { %v243_v23 = vpop.xlane.xlu1 %242 }
 0x1e7   : > { %787 = vpow2.f32 %v251_v22  ;;  %v249_v24 = vsub.f32 %v235_v14, %v243_v23 }
 0x1e9   : > { %v253_v27 = vmul.f32 1.442695, %v249_v24 }
 0x1ea   : > { %v293_v28 = vpop.permute.xlu1 %292 }
 0x1eb   : > { %789 = vpow2.f32 %v253_v27  ;;  %v305_v29 = vand.u32 %v875_v26, %v293_v28 }
 0x1ed   : > { %730 = vmatprep.subr.bf16.mxu1 %v305_v29 }
 0x1ee   : > { %731 = vmatpush3.bf16.msra.mxu1 %v305_v29 }
 0x1f2   : > { %v786_v30 = vpop.eup %785 }
 0x1f3   : > { %v263_v31 = vsel %vm244_vm1, %v786_v30, 0.0 }
 0x1f4   : > { %v788_v32 = vpop.eup %787  ;;  %264 = vadd.xlane.f32.xlu1 %v263_v31 }
 0x1f5   : > { %v257_v33 = vsel %vm237_vm2, %v788_v32, 0.0 }
 0x1f8   : > { %v790_v34 = vpop.eup %789  ;;  %258 = vadd.xlane.f32.xlu1 %v257_v33 }
 0x1f9   : > { %v260_v35 = vsel %vm237_vm2, %v790_v34, 0.0 }
 0x1fc   : > { %261 = vadd.xlane.f32.xlu1 %v260_v35 }
 0x20d   : > { %290 = vrot.lane.b32.xlu1 %v782_v1, %s818_s16 }
 0x211   : > { %370 = vrot.lane.b32.xlu1 %v883_v36, %s819_s17 }
 0x215   : > { %366 = vrot.lane.b32.xlu1 %v883_v36, %s821_s18 }
 0x219   : > { %368 = vrot.lane.b32.xlu1 %v871_v16, %s821_s18 }
 0x27d   : > { %v265_v37 = vpop.xlane.xlu1 %264 }
 0x27e   : > { %791 = vrcp.f32 %v265_v37 }
 0x281   : > { %v259_v38 = vpop.xlane.xlu1 %258 }
 0x282   : > { %793 = vrcp.f32 %v259_v38 }
 0x285   : > { %v262_v39 = vpop.xlane.xlu1 %261 }
 0x286   : > { %795 = vrcp.f32 %v262_v39 }
 0x289   : > { %v291_v40 = vpop.permute.xlu1 %290 }
 0x28a   : > { %732 = vmatprep.subr.bf16.mxu1 %v291_v40 }
 0x28b   : > { %733 = vmatpush3.bf16.msra.mxu1 %v291_v40  ;;  %v792_v42 = vpop.eup %791 }
 0x28c   : > { %756 = vmatprep.subr.msk.bf16.mxu1 %vm173_vm0, %v373_v41  ;;  %v271_v46 = vmul.f32 %v792_v42, %v786_v30 }
 0x28d   : > { %v371_v44 = vpop.permute.xlu1 %370 }
 0x28e   : > { %v289_v51 = vpack.c.bf16 %v271_v46, %v271_v46  ;;  %v381_v53 = vsel %vm173_vm0, %v371_v44, 0 }
 0x28f   : > { %v794_v43 = vpop.eup %793 }
 0x290   : > { %v269_v47 = vmul.f32 %v794_v43, %v788_v32 }
 0x291   : > { %v367_v52 = vpop.permute.xlu1 %366 }
 0x293   : > { %v796_v45 = vpop.eup %795 }
 0x294   : > { %v270_v48 = vmul.f32 %v796_v45, %v790_v34 }
 0x295   : > { %v369_v54 = vpop.permute.xlu1 %368 }
 0x296   : > { %v288_v49 = vpack.c.bf16 %v270_v48, %v269_v47 }
 0x298   : > { %734 = vmatprep.mubr.msk.bf16.mxu1 %vm237_vm2, %v288_v49  ;;  %v584_v49 = vld [vmem:[%s151_s28 + $0x8] sm:$0x1] }
 0x299   : > { %735 = vmatmul.mubr.msk.bf16.vlgmr.msra.gmra.mxu1 %vm237_vm2, %v289_v51 }
 0x29a   : > { %739 = vmatpush3.bf16.xpose.msra.mxu1 %v384_v50  ;;  %742 = vmatprep.mubr.msk.bf16.mxu1 %vm173_vm0, %v367_v52 }
 0x29b   : > { %757 = vmatprep.subr.msk.bf16.mxu1 %vm173_vm0, %v371_v44 }
 0x2a2   : > { %741 = vmatpush3.bf16.xpose.msra.mxu1 %v381_v53 }
 0x2a9   : > { %743 = vmatmul.mubr.msk.bf16.vlgmr.msra.gmra.mxu1 %vm173_vm0, %v369_v54 }
 0x359   : > { %v897_v55 = vpop.f32.mrf.mxu1 }
 0x35b   : > { %v899_v56 = vpop.f32.mrf.mxu1 }
 0x35d   : > { %v737_v57 = vpop.f32.mrf.mxu1 }
 0x35f   : > { %v901_v58 = vpop.f32.mrf.mxu1 }
 0x369   : > { %v744_v59 = vpop.f32.mrf.mxu1 }
 0x36a   : > { %v436_v63 = vmul.f32 0.25, %v744_v59 }
 0x36b   : > { %v420_v60 = vpop.f32.mrf.mxu1 }
 0x36c   : > { %v434_v61 = vmul.f32 0.25, %v420_v60  ;;  %v443_v3 = vsel %vm244_vm1, %v436_v63, -inf }
 0x36d   : > { %v745_v62 = vpop.f32.mrf.mxu1 }
 0x36e   : > { %v437_v0 = vsel %vm237_vm2, %v434_v61, -inf }
 0x36f   : > { %438 = vmax.xlane.f32.xlu1 %v437_v0  ;;  %v423_v1 = vpop.f32.mrf.mxu1 }
 0x370   : > { %v435_v2 = vmul.f32 0.25, %v423_v1 }
 0x372   : > { %v440_v4 = vsel %vm237_vm2, %v435_v2, -inf }
 0x373   : > { %444 = vmax.xlane.f32.xlu1 %v443_v3  ;;  %441 = vmax.xlane.f32.xlu0 %v440_v4 }
 0x3f8   : > { %v439_v5 = vpop.xlane.xlu1 %438 }
 0x3f9   : > { %v446_v6 = vsub.f32 %v434_v61, %v439_v5 }
 0x3fb   : > { %v449_v11 = vmul.f32 1.442695, %v446_v6 }
 0x3fc   : > { %v445_v7 = vpop.xlane.xlu1 %444  ;;  %v442_v8 = vpop.xlane.xlu0 %441 }
 0x3fd   : > { %v448_v9 = vsub.f32 %v436_v63, %v445_v7  ;;  %v447_v10 = vsub.f32 %v435_v2, %v442_v8 }
 0x3ff   : > { %v453_v12 = vmul.f32 1.442695, %v448_v9  ;;  %v451_v13 = vmul.f32 1.442695, %v447_v10 }
 0x401   : > { %797 = vpow2.f32 %v453_v12 }
 0x402   : > { %799 = vpow2.f32 %v451_v13 }
 0x403   : > { %801 = vpow2.f32 %v449_v11 }
 0x40e   : > { %v798_v14 = vpop.eup %797 }
 0x40f   : > { %v800_v15 = vpop.eup %799  ;;  %v461_v17 = vsel %vm244_vm1, %v798_v14, 0.0 }
 0x410   : > { %v802_v18 = vpop.eup %801  ;;  %462 = vadd.xlane.f32.xlu0 %v461_v17  ;;  %v458_v19 = vsel %vm237_vm2, %v800_v15, 0.0 }
 0x411   : > { %459 = vadd.xlane.f32.xlu1 %v458_v19  ;;  %v455_v20 = vsel %vm237_vm2, %v802_v18, 0.0 }
 0x414   : > { %456 = vadd.xlane.f32.xlu0 %v455_v20 }
 0x422   : > { %490 = vrot.lane.b32.xlu1 %v871_v16, %s822_s19 }
 0x426   : > { %277 = vrot.lane.b32.xlu1 %v270_v48, %s823_s20 }
 0x42a   : > { %488 = vrot.lane.b32.xlu0 %v883_v36, %s822_s19 }
 0x42e   : > { %275 = vrot.lane.b32.xlu0 %v269_v47, %s823_s20 }
 0x432   : > { %279 = vrot.lane.b32.xlu0 %v271_v46, %s823_s20 }
 0x499   : > { %v463_v21 = vpop.xlane.xlu0 %462 }
 0x49a   : > { %v460_v22 = vpop.xlane.xlu1 %459  ;;  %803 = vrcp.f32 %v463_v21 }
 0x49b   : > { %805 = vrcp.f32 %v460_v22 }
 0x49d   : > { %v457_v23 = vpop.xlane.xlu0 %456 }
 0x49e   : > { %v491_v24 = vpop.permute.xlu1 %490  ;;  %807 = vrcp.f32 %v457_v23 }
 0x49f   : > { %v500_v25 = vand.u32 %v491_v24, %v875_v26 }
 0x4a1   : > { %v489_v16 = vpop.permute.xlu0 %488  ;;  %746 = vmatprep.subr.bf16.mxu0 %v500_v25 }
 0x4a2   : > { %v278_v27 = vpop.permute.xlu1 %277  ;;  %747 = vmatpush3.bf16.msra.mxu0 %v500_v25 }
 0x4a3   : > { %285 = vst.msk [vmem:[%s919_s24 + $0x8] sm:$0xff] %vm173_vm0, %v278_v27  ;;  %748 = vmatprep.subr.bf16.mxu0 %v489_v16 }
 0x4a5   : > { %v276_v28 = vpop.permute.xlu0 %275 }
 0x4a6   : > { %284 = vst.msk [vmem:[%s919_s24] sm:$0xff] %vm173_vm0, %v276_v28  ;;  %749 = vmatpush3.bf16.msra.mxu0 %v489_v16 }
 0x4a7   : > { %v804_v26 = vpop.eup %803 }
 0x4a8   : > { %v806_v29 = vpop.eup %805  ;;  %v469_v33 = vmul.f32 %v804_v26, %v798_v14 }
 0x4a9   : > { %v280_v30 = vpop.permute.xlu0 %279  ;;  %v468_v31 = vmul.f32 %v806_v29, %v800_v15 }
 0x4aa   : > { %287 = vst.msk [vmem:[%s919_s24 + $0x10] sm:$0x1] %vm286_vm4, %v280_v30  ;;  %v487_v36 = vpack.c.bf16 %v469_v33, %v469_v33 }
 0x4ab   : > { %v808_v32 = vpop.eup %807  ;;  %475 = vrot.lane.b32.xlu0 %v468_v31, %s823_s20 }
 0x4ac   : > { %v467_v34 = vmul.f32 %v808_v32, %v802_v18 }
 0x4ae   : > { %473 = vrot.lane.b32.xlu1 %v467_v34, %s823_s20  ;;  %v486_v35 = vpack.c.bf16 %v468_v31, %v467_v34 }
 0x4b0   : > { %750 = vmatprep.mubr.msk.bf16.mxu0 %vm237_vm2, %v486_v35 }
 0x4b1   : > { %751 = vmatmul.mubr.msk.bf16.vlgmr.msra.gmra.mxu0 %vm237_vm2, %v487_v36 }
 0x51d   : > { %v476_v37 = vpop.permute.xlu0 %475 }
 0x51e   : > { %694 = vst.msk [vmem:[%s919_s24 + $0x20] sm:$0xff] %vm173_vm0, %v476_v37 }
 0x520   : > { %v474_v38 = vpop.permute.xlu1 %473 }
 0x521   : > { %693 = vst.msk [vmem:[%s919_s24 + $0x18] sm:$0xff] %vm173_vm0, %v474_v38 }
 0x571   : > { %v752_v39 = vpop.f32.mrf.mxu0 }
 0x573   : > { %v536_v40 = vpop.f32.mrf.mxu0 }
 0x574   : > { %v776_v41 = vpack.i.bf16 %v536_v40, %v752_v39 }
 0x575   : > { %v753_v42 = vpop.f32.mrf.mxu0 }
 0x576   : > { %777 = vrot.lane.b32.xlu1 %v776_v41, %s824_s25 }
 0x577   : > { %v539_v43 = vpop.f32.mrf.mxu0 }
 0x57a   : > { %555 = vrot.lane.b32.xlu1 %v539_v43, %s824_s25 }
 0x57e   : > { %477 = vrot.lane.b32.xlu1 %v469_v33, %s823_s20 }
 0x5e8   : > { %v778_v44 = vpop.permute.xlu1 %777 }
 0x5e9   : > { %v780_v45 = vunpack.i.h.bf16 %v778_v44  ;;  %v779_v46 = vunpack.i.l.bf16 %v778_v44 }
 0x5eb   : > { %v562_v47 = vsel %vm173_vm0, %v899_v56, %v780_v45  ;;  %v564_v48 = vsel %vm173_vm0, %v897_v55, %v779_v46 }
 0x5ec   : > { %v703_v50 = vpack.c.bf16 %v562_v47, %v562_v47  ;;  %v705_v51 = vpack.c.bf16 %v564_v48, %v564_v48  ;;  %v556_v52 = vpop.permute.xlu1 %555 }
 0x5ed   : > { %v563_v53 = vsel %vm173_vm0, %v901_v58, %v556_v52 }
 0x5ee   : > { %579 = vst.msk [vmem:[%s151_s28] sm:$0xf] %vm578_vm7, %v703_v50  ;;  %v585_v54 = vsel %vm583_vm8, %v705_v51, %v584_v49  ;;  %v704_v57 = vpack.c.bf16 %v563_v53, %v563_v53 }
 0x5ef   : > { %586 = vst [vmem:[%s151_s28 + $0x8] sm:$0x1] %v585_v54 }
 0x5f0   : > { %580 = vst.msk [vmem:[%s151_s28 + $0x4] sm:$0xf] %vm578_vm7, %v704_v57  ;;  %v478_v59 = vpop.permute.xlu1 %477 }
 0x5f1   : > { %695 = vst.msk [vmem:[%s919_s24 + $0x28] sm:$0x1] %vm286_vm4, %v478_v59 }
 0x5f2 PF: > { %s13_s9 = sadd.s32 1, %s815_s9  }
 0x5f3   : > { %p10_p4 = scmp.ge.s32.totalorder %s13_s9, 6  }
 0x5f5   :  { %12 = sbr.rel (!%p10_p4) target bundleno = 1 (0x1), region = 67 }

// kernel: vit_encoder_with_attn_forward.13
= control target key start
LH: loop header
LB: loop body
LE: loop exit
PB: predicated region body
PF: predicated region fallthrough
CT: control target
= control target key end

     0   :  { %vm52_vm0 = vcmask 261120   ;;  %vm132_vm1 = vcmask 253952   ;;  %vm133_vm2 = vsmask.f32 256  ;;  %vm129_vm4 = vcmask 257024   ;;  %s739_s1 = inlined_call_operand.vmem [shape: bf16[32,32], index: 1, kind: input, shape index: {}]   ;;  %s740_s0 = inlined_call_operand.vmem [shape: bf16[4,17,32], index: 0, kind: input, shape index: {}]   ;;  %s741_s3 = inlined_call_operand.vmem [shape: bf16[4,17,32], index: 3, kind: input, shape index: {}]   ;;  %s742_s2 = inlined_call_operand.vmem [shape: f32[1,32], index: 2, kind: input, shape index: {}]   ;;  %s743_s4 = inlined_call_operand.vmem [shape: bf16[4,17,32], index: 4, kind: output, shape index: {}]  }
   0x1   :  { %v557_v0 = vld [vmem:[%s739_s1 + $0x8] sm:$0xff]   ;;  %v558_v1 = vld [vmem:[%s739_s1] sm:$0xff]   ;;  %v562_v5 = vld [vmem:[%s740_s0 + $0x14] ss:$0 sps:$4 sm:$0x11]  }
   0x2   :  { %525 = vmatprep.subr.bf16.mxu0 %v557_v0  ;;  %533 = vmatprep.subr.bf16.mxu1 %v557_v0  ;;  %v559_v2 = vld [vmem:[%s740_s0] sm:$0xff]   ;;  %v560_v3 = vld [vmem:[%s740_s0 + $0xc] sm:$0xff]   ;;  %v561_v4 = vld [vmem:[%s740_s0 + $0x8] ss:$0 sps:$4 sm:$0x11]  }
   0x3   :  { %526 = vmatpush3.bf16.msra.mxu0 %v557_v0  ;;  %534 = vmatpush3.bf16.msra.mxu1 %v557_v0  ;;  %v563_v6 = vld [vmem:[%s740_s0 + $0x18] sm:$0xff]   ;;  %v564_v7 = vld [vmem:[%s740_s0 + $0x24] sm:$0xff]   ;;  %v565_v8 = vld [vmem:[%s740_s0 + $0x20] ss:$0 sps:$4 sm:$0x11]  }
   0x4   :  { %527 = vmatprep.subr.bf16.mxu0 %v558_v1  ;;  %535 = vmatprep.subr.bf16.mxu1 %v558_v1  ;;  %v566_v9 = vld [vmem:[%s740_s0 + $0x2c] ss:$0 sps:$4 sm:$0x11]   ;;  %v109_v10 = vld [vmem:[%s741_s3 + $0x8] sm:$0x1]  ;;  %v501_v12 = vld [vmem:[%s741_s3] sm:$0xff]  }
   0x5   :  { %529 = vmatprep.mubr.msk.bf16.mxu0 %vm52_vm0, %v559_v2  ;;  %537 = vmatprep.mubr.msk.bf16.mxu1 %vm52_vm0, %v560_v3  ;;  %v446_v11 = vld [vmem:[%s741_s3 + $0x14] sm:$0x1]  ;;  %v444_v13 = vld [vmem:[%s741_s3 + $0xc] sm:$0xff]   ;;  %v645_v14 = vld [vmem:[%s742_s2] ss:$0 sm:$0xff]  ;;  %v112_v15 = vunpack.c.l.bf16 %v109_v10  ;;  %v502_v19 = vunpack.c.l.bf16 %v501_v12  ;;  %v503_v41 = vunpack.c.h.bf16 %v501_v12 }
   0x6   :  { %v210_v16 = vunpack.c.l.bf16 %v446_v11  ;;  %v208_v20 = vunpack.c.l.bf16 %v444_v13  ;;  %v463_v29 = vld [vmem:[%s741_s3 + $0x20] sm:$0x1]  ;;  %v480_v30 = vld [vmem:[%s741_s3 + $0x2c] sm:$0x1]  ;;  %vm657_vm3 = vmand %vm132_vm1, %vm133_vm2  ;;  %v209_v43 = vunpack.c.h.bf16 %v444_v13 }
   0x7   :  { %528 = vmatpush3.bf16.msra.mxu0 %v558_v1  ;;  %536 = vmatpush3.bf16.msra.mxu1 %v558_v1  ;;  %v135_v32 = vld [vmem:[%s743_s4 + $0x8] sm:$0x1]  ;;  %v452_v33 = vld [vmem:[%s743_s4 + $0x14] sm:$0x1]  ;;  %v305_v44 = vunpack.c.l.bf16 %v463_v29  ;;  %v400_v45 = vunpack.c.l.bf16 %v480_v30  ;;  %v508_v46 = vld [vmem:[%s741_s3 + $0x18] sm:$0xff]  }
   0x8   :  { %541 = vmatprep.subr.bf16.mxu0 %v557_v0  ;;  %549 = vmatprep.subr.bf16.mxu1 %v557_v0  ;;  %v478_v47 = vld [vmem:[%s741_s3 + $0x24] sm:$0xff]   ;;  %v506_v58 = vunpack.c.l.bf16 %v508_v46 }
   0x9   :  { %v398_v59 = vunpack.c.l.bf16 %v478_v47 }
   0xa   :  { %530 = vmatmul.mubr.msk.bf16.vlgmr.msra.gmra.mxu0 %vm52_vm0, %v561_v4  ;;  %538 = vmatmul.mubr.msk.bf16.vlgmr.msra.gmra.mxu1 %vm52_vm0, %v562_v5 }
   0xb   :  { %542 = vmatpush3.bf16.msra.mxu0 %v557_v0  ;;  %550 = vmatpush3.bf16.msra.mxu1 %v557_v0 }
   0xc   :  { %543 = vmatprep.subr.bf16.mxu0 %v558_v1  ;;  %551 = vmatprep.subr.bf16.mxu1 %v558_v1 }
   0xd   :  { %545 = vmatprep.mubr.msk.bf16.mxu0 %vm52_vm0, %v563_v6  ;;  %553 = vmatprep.mubr.msk.bf16.mxu1 %vm52_vm0, %v564_v7  ;;  %v469_v6 = vld [vmem:[%s743_s4 + $0x20] sm:$0x1]  ;;  %v486_v7 = vld [vmem:[%s743_s4 + $0x2c] sm:$0x1] }
   0xf   :  { %544 = vmatpush3.bf16.msra.mxu0 %v558_v1  ;;  %552 = vmatpush3.bf16.msra.mxu1 %v558_v1 }
  0x12   :  { %546 = vmatmul.mubr.msk.bf16.vlgmr.msra.gmra.mxu0 %vm52_vm0, %v565_v8  ;;  %554 = vmatmul.mubr.msk.bf16.vlgmr.msra.gmra.mxu1 %vm52_vm0, %v566_v9 }
  0xca   :  { %v531_v17 = vpop.f32.mrf.mxu0  ;;  %v539_v18 = vpop.f32.mrf.mxu1 }
  0xcb   :  { %v102_v21 = vadd.f32 %v531_v17, %v645_v14  ;;  %v199_v22 = vadd.f32 %v539_v18, %v645_v14  ;;  %v399_v18 = vunpack.c.h.bf16 %v478_v47 }
  0xcc   :  { %v93_v23 = vpop.f32.mrf.mxu0  ;;  %v190_v24 = vpop.f32.mrf.mxu1 }
  0xcd   :  { %v115_v25 = vadd.f32 %v112_v15, %v102_v21  ;;  %v213_v26 = vadd.f32 %v210_v16, %v199_v22  ;;  %v94_v27 = vadd.f32 %v645_v14, %v93_v23  ;;  %v191_v28 = vadd.f32 %v645_v14, %v190_v24 }
  0xce   :  { %v532_v34 = vpop.f32.mrf.mxu0  ;;  %v540_v35 = vpop.f32.mrf.mxu1  ;;  %v507_v16 = vunpack.c.h.bf16 %v508_v46 }
  0xcf   :  { %v490_v36 = vpack.c.bf16 %v115_v25, %v115_v25  ;;  %v493_v37 = vpack.c.bf16 %v213_v26, %v213_v26  ;;  %v113_v38 = vadd.f32 %v502_v19, %v94_v27  ;;  %v211_v39 = vadd.f32 %v208_v20, %v191_v28 }
  0xd0   :  { %v96_v40 = vpop.f32.mrf.mxu0  ;;  %v193_v42 = vpop.f32.mrf.mxu1 }
  0xd1   :  { %v136_v48 = vsel %vm657_vm3, %v490_v36, %v135_v32  ;;  %v231_v49 = vsel %vm657_vm3, %v493_v37, %v452_v33  ;;  %v488_v50 = vpack.c.bf16 %v113_v38, %v113_v38  ;;  %v491_v51 = vpack.c.bf16 %v211_v39, %v211_v39 }
  0xd2   :  { %137 = vst [vmem:[%s743_s4 + $0x8] sm:$0x1] %v136_v48  ;;  %453 = vst [vmem:[%s743_s4 + $0x14] sm:$0x1] %v231_v49  ;;  %v97_v52 = vadd.f32 %v645_v14, %v96_v40  ;;  %v194_v53 = vadd.f32 %v645_v14, %v193_v42  ;;  %v547_v54 = vpop.f32.mrf.mxu0  ;;  %v555_v55 = vpop.f32.mrf.mxu1 }
  0xd3   :  { %130 = vst.msk [vmem:[%s743_s4] sm:$0xf] %vm129_vm4, %v488_v50  ;;  %450 = vst.msk [vmem:[%s743_s4 + $0xc] sm:$0xf] %vm129_vm4, %v491_v51  ;;  %v294_v56 = vadd.f32 %v547_v54, %v645_v14  ;;  %v389_v57 = vadd.f32 %v555_v55, %v645_v14 }
  0xd4   :  { %v114_v60 = vadd.f32 %v503_v41, %v97_v52  ;;  %v212_v61 = vadd.f32 %v209_v43, %v194_v53  ;;  %v285_v62 = vpop.f32.mrf.mxu0  ;;  %v380_v63 = vpop.f32.mrf.mxu1 }
  0xd5   :  { %v308_v0 = vadd.f32 %v305_v44, %v294_v56  ;;  %v403_v1 = vadd.f32 %v400_v45, %v389_v57  ;;  %v286_v2 = vadd.f32 %v645_v14, %v285_v62  ;;  %v381_v3 = vadd.f32 %v645_v14, %v380_v63 }
  0xd6   :  { %v489_v4 = vpack.c.bf16 %v114_v60, %v114_v60  ;;  %v492_v5 = vpack.c.bf16 %v212_v61, %v212_v61  ;;  %v548_v8 = vpop.f32.mrf.mxu0  ;;  %v556_v9 = vpop.f32.mrf.mxu1 }
  0xd7   :  { %v496_v10 = vpack.c.bf16 %v308_v0, %v308_v0  ;;  %v499_v11 = vpack.c.bf16 %v403_v1, %v403_v1  ;;  %v306_v12 = vadd.f32 %v506_v58, %v286_v2  ;;  %v401_v13 = vadd.f32 %v398_v59, %v381_v3 }
  0xd8   :  { %131 = vst.msk [vmem:[%s743_s4 + $0x4] sm:$0xf] %vm129_vm4, %v489_v4  ;;  %451 = vst.msk [vmem:[%s743_s4 + $0x10] sm:$0xf] %vm129_vm4, %v492_v5  ;;  %v288_v15 = vpop.f32.mrf.mxu0  ;;  %v383_v17 = vpop.f32.mrf.mxu1 }
  0xd9   :  { %v326_v19 = vsel %vm657_vm3, %v496_v10, %v469_v6  ;;  %v421_v20 = vsel %vm657_vm3, %v499_v11, %v486_v7  ;;  %v494_v21 = vpack.c.bf16 %v306_v12, %v306_v12  ;;  %v497_v22 = vpack.c.bf16 %v401_v13, %v401_v13 }
  0xda   :  { %470 = vst [vmem:[%s743_s4 + $0x20] sm:$0x1] %v326_v19  ;;  %487 = vst [vmem:[%s743_s4 + $0x2c] sm:$0x1] %v421_v20  ;;  %v289_v23 = vadd.f32 %v645_v14, %v288_v15  ;;  %v384_v24 = vadd.f32 %v645_v14, %v383_v17 }
  0xdb   :  { %467 = vst.msk [vmem:[%s743_s4 + $0x18] sm:$0xf] %vm129_vm4, %v494_v21  ;;  %484 = vst.msk [vmem:[%s743_s4 + $0x24] sm:$0xf] %vm129_vm4, %v497_v22 }
  0xdc   :  { %v307_v25 = vadd.f32 %v507_v16, %v289_v23  ;;  %v402_v26 = vadd.f32 %v399_v18, %v384_v24 }
  0xde   :  { %v495_v27 = vpack.c.bf16 %v307_v25, %v307_v25  ;;  %v498_v28 = vpack.c.bf16 %v402_v26, %v402_v26 }
  0xe0   :  { %468 = vst.msk [vmem:[%s743_s4 + $0x1c] sm:$0xf] %vm129_vm4, %v495_v27  ;;  %485 = vst.msk [vmem:[%s743_s4 + $0x28] sm:$0xf] %vm129_vm4, %v498_v28 }

// kernel: vit_encoder_with_attn_forward.11
= control target key start
LH: loop header
LB: loop body
LE: loop exit
PB: predicated region body
PF: predicated region fallthrough
CT: control target
= control target key end

     0   :  { %vm34_vm0 = vcmask 261120   ;;  %vm41_vm1 = vcmask 253952   ;;  %vm184_vm2 = vcmask 778240   ;;  %vm185_vm3 = vsmask.f32 256  ;;  %s1077_s0 = inlined_call_operand.vmem [shape: bf16[4,17,32], index: 0, kind: input, shape index: {}]   ;;  %s1078_s3 = inlined_call_operand.vmem [shape: bf16[32,96], index: 3, kind: input, shape index: {}]   ;;  %s1079_s1 = inlined_call_operand.vmem [shape: f32[1,32], index: 1, kind: input, shape index: {}]   ;;  %s1080_s2 = inlined_call_operand.vmem [shape: f32[1,32], index: 2, kind: input, shape index: {}]   ;;  %s1081_s4 = inlined_call_operand.vmem [shape: f32[1,96], index: 4, kind: input, shape index: {}]   ;;  %s1082_s5 = inlined_call_operand.vmem [shape: bf16[4,17,96], index: 5, kind: output, shape index: {}]  }
   0x1   :  { %v682_v0 = vld [vmem:[%s1077_s0] sm:$0xff]   ;;  %v627_v1 = vld [vmem:[%s1077_s0 + $0xc] sm:$0xff]   ;;  %v803_v6 = vld [vmem:[%s1077_s0 + $0x8] sm:$0x1]  ;;  %vm181_vm5 = vcmask 781312  }
   0x2   :  { %v683_v2 = vunpack.c.l.bf16 %v682_v0  ;;  %v196_v3 = vunpack.c.l.bf16 %v627_v1  ;;  %v684_v4 = vunpack.c.h.bf16 %v682_v0  ;;  %v197_v5 = vunpack.c.h.bf16 %v627_v1  ;;  %v808_v7 = vld [vmem:[%s1077_s0 + $0x14] sm:$0x1]  ;;  %v819_v14 = vld [vmem:[%s1077_s0 + $0x18] sm:$0xff]   ;;  %v828_v19 = vld [vmem:[%s1077_s0 + $0x24] sm:$0xff]  }
   0x3   :  { %v33_v12 = vunpack.c.l.bf16 %v803_v6  ;;  %v198_v13 = vunpack.c.l.bf16 %v808_v7  ;;  %v687_v17 = vunpack.c.l.bf16 %v819_v14  ;;  %v688_v18 = vunpack.c.h.bf16 %v819_v14  ;;  %v837_v24 = vld [vmem:[%s1077_s0 + $0x20] sm:$0x1]  ;;  %v842_v25 = vld [vmem:[%s1077_s0 + $0x2c] sm:$0x1]  ;;  %vm1009_vm4 = vmand %vm184_vm2, %vm185_vm3 }
   0x4   :  { %v35_v8 = vsel %vm34_vm0, %v683_v2, 0.0  ;;  %v199_v9 = vsel %vm34_vm0, %v196_v3, 0.0  ;;  %v38_v10 = vsel %vm34_vm0, %v684_v4, 0.0  ;;  %v202_v11 = vsel %vm34_vm0, %v197_v5, 0.0 }
   0x5   :  { %36 = vadd.xlane.f32.xlu0 %v35_v8  ;;  %200 = vadd.xlane.f32.xlu1 %v199_v9  ;;  %v42_v15 = vsel %vm41_vm1, %v33_v12, 0.0  ;;  %v205_v16 = vsel %vm41_vm1, %v198_v13, 0.0  ;;  %v340_v20 = vsel %vm34_vm0, %v687_v17, 0.0  ;;  %v343_v21 = vsel %vm34_vm0, %v688_v18, 0.0 }
   0x6   :  { %v478_v22 = vunpack.c.l.bf16 %v828_v19  ;;  %v479_v23 = vunpack.c.h.bf16 %v828_v19  ;;  %v339_v28 = vunpack.c.l.bf16 %v837_v24  ;;  %v480_v29 = vunpack.c.l.bf16 %v842_v25 }
   0x8   :  { %v481_v26 = vsel %vm34_vm0, %v478_v22, 0.0  ;;  %v484_v27 = vsel %vm34_vm0, %v479_v23, 0.0  ;;  %v346_v30 = vsel %vm41_vm1, %v339_v28, 0.0  ;;  %v487_v31 = vsel %vm41_vm1, %v480_v29, 0.0 }
   0x9   :  { %39 = vadd.xlane.f32.xlu0 %v38_v10  ;;  %203 = vadd.xlane.f32.xlu1 %v202_v11 }
   0xd   :  { %43 = vadd.xlane.f32.xlu0 %v42_v15  ;;  %206 = vadd.xlane.f32.xlu1 %v205_v16 }
  0x11   :  { %341 = vadd.xlane.f32.xlu0 %v340_v20  ;;  %344 = vadd.xlane.f32.xlu1 %v343_v21 }
  0x15   :  { %482 = vadd.xlane.f32.xlu0 %v481_v26  ;;  %485 = vadd.xlane.f32.xlu1 %v484_v27 }
  0x19   :  { %347 = vadd.xlane.f32.xlu0 %v346_v30  ;;  %488 = vadd.xlane.f32.xlu1 %v487_v31 }
  0x8e   :  { %v37_v32 = vpop.xlane.xlu0 %36  ;;  %v201_v33 = vpop.xlane.xlu1 %200 }
  0x8f   :  { %v46_v34 = vmul.f32 0.03125, %v37_v32  ;;  %v208_v35 = vmul.f32 0.03125, %v201_v33 }
  0x91   :  { %v858_v36 = vsub.f32 %v683_v2, %v46_v34  ;;  %v860_v37 = vsub.f32 %v196_v3, %v208_v35 }
  0x92   :  { %v40_v38 = vpop.xlane.xlu0 %39  ;;  %v204_v39 = vpop.xlane.xlu1 %203 }
  0x93   :  { %v47_v40 = vmul.f32 0.03125, %v40_v38  ;;  %v209_v41 = vmul.f32 0.03125, %v204_v39  ;;  %v52_v42 = vmul.f32 %v858_v36, %v858_v36  ;;  %v214_v43 = vmul.f32 %v860_v37, %v860_v37 }
  0x95   :  { %v866_v44 = vsub.f32 %v684_v4, %v47_v40  ;;  %v868_v45 = vsub.f32 %v197_v5, %v209_v41  ;;  %v55_v46 = vsel %vm34_vm0, %v52_v42, 0.0  ;;  %v217_v49 = vsel %vm34_vm0, %v214_v43, 0.0 }
  0x96   :  { %56 = vadd.xlane.f32.xlu0 %v55_v46  ;;  %v44_v47 = vpop.xlane.xlu0 %43  ;;  %v207_v48 = vpop.xlane.xlu1 %206 }
  0x97   :  { %v48_v50 = vmul.f32 0.03125, %v44_v47  ;;  %v210_v51 = vmul.f32 0.03125, %v207_v48  ;;  %v53_v52 = vmul.f32 %v866_v44, %v866_v44  ;;  %v215_v53 = vmul.f32 %v868_v45, %v868_v45 }
  0x99   :  { %v876_v54 = vsub.f32 %v33_v12, %v48_v50  ;;  %v878_v55 = vsub.f32 %v198_v13, %v210_v51  ;;  %v58_v56 = vsel %vm34_vm0, %v53_v52, 0.0  ;;  %v220_v59 = vsel %vm34_vm0, %v215_v53, 0.0 }
  0x9a   :  { %218 = vadd.xlane.f32.xlu0 %v217_v49  ;;  %59 = vadd.xlane.f32.xlu1 %v58_v56  ;;  %v342_v57 = vpop.xlane.xlu0 %341  ;;  %v345_v58 = vpop.xlane.xlu1 %344 }
  0x9b   :  { %v349_v60 = vmul.f32 0.03125, %v342_v57  ;;  %v350_v61 = vmul.f32 0.03125, %v345_v58  ;;  %v54_v62 = vmul.f32 %v876_v54, %v876_v54  ;;  %v216_v63 = vmul.f32 %v878_v55, %v878_v55 }
  0x9d   :  { %v886_v0 = vsub.f32 %v687_v17, %v349_v60  ;;  %v888_v1 = vsub.f32 %v688_v18, %v350_v61  ;;  %v61_v2 = vsel %vm41_vm1, %v54_v62, 0.0  ;;  %v223_v5 = vsel %vm41_vm1, %v216_v63, 0.0 }
  0x9e   :  { %221 = vadd.xlane.f32.xlu1 %v220_v59  ;;  %62 = vadd.xlane.f32.xlu0 %v61_v2  ;;  %v483_v3 = vpop.xlane.xlu0 %482  ;;  %v486_v4 = vpop.xlane.xlu1 %485  ;;  %v949_v2 = vld [vmem:[%s1079_s1] ss:$0 sm:$0xff] }
  0x9f   :  { %v490_v6 = vmul.f32 0.03125, %v483_v3  ;;  %v491_v7 = vmul.f32 0.03125, %v486_v4  ;;  %v355_v8 = vmul.f32 %v886_v0, %v886_v0  ;;  %v356_v9 = vmul.f32 %v888_v1, %v888_v1 }
  0xa1   :  { %v898_v10 = vsub.f32 %v478_v22, %v490_v6  ;;  %v902_v11 = vsub.f32 %v479_v23, %v491_v7  ;;  %v358_v12 = vsel %vm34_vm0, %v355_v8, 0.0  ;;  %v361_v15 = vsel %vm34_vm0, %v356_v9, 0.0 }
  0xa2   :  { %224 = vadd.xlane.f32.xlu1 %v223_v5  ;;  %359 = vadd.xlane.f32.xlu0 %v358_v12  ;;  %v348_v13 = vpop.xlane.xlu0 %347  ;;  %v489_v14 = vpop.xlane.xlu1 %488 }
  0xa3   :  { %v351_v16 = vmul.f32 0.03125, %v348_v13  ;;  %v492_v17 = vmul.f32 0.03125, %v489_v14  ;;  %v496_v18 = vmul.f32 %v898_v10, %v898_v10  ;;  %v497_v20 = vmul.f32 %v902_v11, %v902_v11 }
  0xa5   :  { %v912_v19 = vsub.f32 %v339_v28, %v351_v16  ;;  %v916_v21 = vsub.f32 %v480_v29, %v492_v17  ;;  %v499_v22 = vsel %vm34_vm0, %v496_v18, 0.0  ;;  %v502_v23 = vsel %vm34_vm0, %v497_v20, 0.0  ;;  %v929_v28 = vld [vmem:[%s1078_s3 + $0x8] sm:$0xff]   ;;  %v938_v29 = vld [vmem:[%s1078_s3] sm:$0xff]  }
  0xa6   :  { %362 = vadd.xlane.f32.xlu1 %v361_v15  ;;  %500 = vadd.xlane.f32.xlu0 %v499_v22  ;;  %v956_v15 = vld [vmem:[%s1080_s2] ss:$0 sm:$0xff] }
  0xa7   :  { %v357_v26 = vmul.f32 %v912_v19, %v912_v19  ;;  %v498_v27 = vmul.f32 %v916_v21, %v916_v21  ;;  %706 = vmatprep.subr.bf16.mxu0 %v929_v28  ;;  %714 = vmatprep.subr.bf16.mxu1 %v929_v28 }
  0xa8   :  { %707 = vmatpush3.bf16.msra.mxu0 %v929_v28  ;;  %715 = vmatpush3.bf16.msra.mxu1 %v929_v28 }
  0xa9   :  { %v364_v24 = vsel %vm41_vm1, %v357_v26, 0.0  ;;  %v505_v25 = vsel %vm41_vm1, %v498_v27, 0.0  ;;  %708 = vmatprep.subr.bf16.mxu0 %v938_v29  ;;  %716 = vmatprep.subr.bf16.mxu1 %v938_v29 }
  0xaa   :  { %503 = vadd.xlane.f32.xlu1 %v502_v23  ;;  %365 = vadd.xlane.f32.xlu0 %v364_v24 }
  0xac   :  { %709 = vmatpush3.bf16.msra.mxu0 %v938_v29  ;;  %717 = vmatpush3.bf16.msra.mxu1 %v938_v29 }
  0xad   :  { %722 = vmatprep.subr.bf16.mxu0 %v929_v28  ;;  %730 = vmatprep.subr.bf16.mxu1 %v929_v28 }
  0xae   :  { %506 = vadd.xlane.f32.xlu1 %v505_v25 }
 0x11f   :  { %v57_v30 = vpop.xlane.xlu0 %56 }
 0x120   :  { %v64_v31 = vmul.f32 0.03125, %v57_v30 }
 0x122   :  { %v67_v32 = vadd.f32 1e-12, %v64_v31 }
 0x123   :  { %v60_v33 = vpop.xlane.xlu1 %59  ;;  %v219_v34 = vpop.xlane.xlu0 %218 }
 0x124   :  { %740 = vrsqrt.f32 %v67_v32  ;;  %v65_v35 = vmul.f32 0.03125, %v60_v33  ;;  %v226_v38 = vmul.f32 0.03125, %v219_v34 }
 0x126   :  { %v68_v39 = vadd.f32 1e-12, %v65_v35  ;;  %v229_v40 = vadd.f32 1e-12, %v226_v38 }
 0x127   :  { %v222_v41 = vpop.xlane.xlu1 %221  ;;  %v63_v42 = vpop.xlane.xlu0 %62 }
 0x128   :  { %742 = vrsqrt.f32 %v68_v39  ;;  %v227_v43 = vmul.f32 0.03125, %v222_v41  ;;  %v66_v46 = vmul.f32 0.03125, %v63_v42 }
 0x129   :  { %744 = vrsqrt.f32 %v229_v40 }
 0x12a   :  { %v230_v47 = vadd.f32 1e-12, %v227_v43  ;;  %v69_v48 = vadd.f32 1e-12, %v66_v46 }
 0x12b   :  { %v225_v49 = vpop.xlane.xlu1 %224  ;;  %v360_v50 = vpop.xlane.xlu0 %359 }
 0x12c   :  { %746 = vrsqrt.f32 %v230_v47  ;;  %v228_v51 = vmul.f32 0.03125, %v225_v49  ;;  %v367_v52 = vmul.f32 0.03125, %v360_v50 }
 0x12d   :  { %748 = vrsqrt.f32 %v69_v48 }
 0x12e   :  { %v231_v53 = vadd.f32 1e-12, %v228_v51  ;;  %v370_v56 = vadd.f32 1e-12, %v367_v52 }
 0x12f   :  { %v363_v57 = vpop.xlane.xlu1 %362  ;;  %v501_v58 = vpop.xlane.xlu0 %500 }
 0x130   :  { %750 = vrsqrt.f32 %v231_v53  ;;  %v368_v59 = vmul.f32 0.03125, %v363_v57  ;;  %v508_v60 = vmul.f32 0.03125, %v501_v58 }
 0x131   :  { %v741_v61 = vpop.eup %740  ;;  %752 = vrsqrt.f32 %v370_v56 }
 0x132   :  { %v371_v62 = vadd.f32 1e-12, %v368_v59  ;;  %v511_v63 = vadd.f32 1e-12, %v508_v60  ;;  %v73_v3 = vmul.f32 %v741_v61, %v858_v36 }
 0x133   :  { %v504_v4 = vpop.xlane.xlu1 %503  ;;  %v366_v5 = vpop.xlane.xlu0 %365 }
 0x134   :  { %754 = vrsqrt.f32 %v371_v62  ;;  %v509_v6 = vmul.f32 0.03125, %v504_v4  ;;  %v369_v7 = vmul.f32 0.03125, %v366_v5  ;;  %v82_v9 = vmul.f32 %v949_v2, %v73_v3 }
 0x135   :  { %v743_v8 = vpop.eup %742  ;;  %756 = vrsqrt.f32 %v511_v63 }
 0x136   :  { %v745_v12 = vpop.eup %744  ;;  %v512_v13 = vadd.f32 1e-12, %v509_v6  ;;  %v372_v14 = vadd.f32 1e-12, %v369_v7  ;;  %v74_v16 = vmul.f32 %v743_v8, %v866_v44  ;;  %v91_v23 = vadd.f32 %v956_v15, %v82_v9  ;;  %v619_v6 = vld [vmem:[%s1081_s4] ss:$0 sm:$0xff] }
 0x137   :  { %v507_v36 = vpop.xlane.xlu1 %506  ;;  %v235_v17 = vmul.f32 %v745_v12, %v860_v37  ;;  %v187_v8 = vld [vmem:[%s1082_s5 + $0x8] sm:$0x1] }
 0x138   :  { %758 = vrsqrt.f32 %v512_v13  ;;  %v510_v18 = vmul.f32 0.03125, %v507_v36  ;;  %v83_v20 = vmul.f32 %v949_v2, %v74_v16 }
 0x139   :  { %v747_v22 = vpop.eup %746  ;;  %760 = vrsqrt.f32 %v372_v14  ;;  %v244_v30 = vmul.f32 %v949_v2, %v235_v17 }
 0x13a   :  { %v749_v26 = vpop.eup %748  ;;  %v513_v27 = vadd.f32 1e-12, %v510_v18  ;;  %v92_v24 = vadd.f32 %v956_v15, %v83_v20  ;;  %v236_v25 = vmul.f32 %v747_v22, %v868_v45  ;;  %v639_v18 = vld [vmem:[%s1082_s5 + $0x14] sm:$0x1] }
 0x13b   :  { %v75_v44 = vmul.f32 %v749_v26, %v876_v54  ;;  %v253_v35 = vadd.f32 %v956_v15, %v244_v30 }
 0x13c   :  { %762 = vrsqrt.f32 %v513_v27  ;;  %v94_v37 = vpack.c.bf16 %v92_v24, %v91_v23  ;;  %v245_v31 = vmul.f32 %v949_v2, %v236_v25 }
 0x13d   :  { %v751_v32 = vpop.eup %750  ;;  %v84_v33 = vmul.f32 %v949_v2, %v75_v44 }
 0x13e   :  { %v753_v34 = vpop.eup %752  ;;  %710 = vmatprep.mubr.msk.bf16.mxu0 %vm34_vm0, %v94_v37  ;;  %v254_v38 = vadd.f32 %v956_v15, %v245_v31  ;;  %v237_v45 = vmul.f32 %v751_v32, %v878_v55 }
 0x13f   :  { %v93_v39 = vadd.f32 %v956_v15, %v84_v33  ;;  %v376_v54 = vmul.f32 %v753_v34, %v886_v0 }
 0x140   :  { %v256_v40 = vpack.c.bf16 %v254_v38, %v253_v35  ;;  %v246_v41 = vmul.f32 %v949_v2, %v237_v45  ;;  %v653_v35 = vld [vmem:[%s1082_s5 + $0x20] sm:$0x1] }
 0x141   :  { %v755_v42 = vpop.eup %754  ;;  %v95_v43 = vpack.c.bf16 %v93_v39, %v93_v39  ;;  %v385_v49 = vmul.f32 %v949_v2, %v376_v54 }
 0x142   :  { %v757_v46 = vpop.eup %756  ;;  %718 = vmatprep.mubr.msk.bf16.mxu1 %vm34_vm0, %v256_v40  ;;  %v255_v47 = vadd.f32 %v956_v15, %v246_v41  ;;  %v377_v48 = vmul.f32 %v755_v42, %v888_v1 }
 0x143   :  { %711 = vmatmul.mubr.msk.bf16.vlgmr.msra.gmra.mxu0 %vm34_vm0, %v95_v43  ;;  %v517_v55 = vmul.f32 %v757_v46, %v898_v10  ;;  %v394_v53 = vadd.f32 %v956_v15, %v385_v49  ;;  %v667_v46 = vld [vmem:[%s1082_s5 + $0x2c] sm:$0x1] }
 0x144   :  { %v257_v50 = vpack.c.bf16 %v255_v47, %v255_v47  ;;  %723 = vmatpush3.bf16.msra.mxu0 %v929_v28  ;;  %v386_v0 = vmul.f32 %v949_v2, %v377_v48 }
 0x145   :  { %v759_v51 = vpop.eup %758  ;;  %724 = vmatprep.subr.bf16.mxu0 %v938_v29  ;;  %v526_v57 = vmul.f32 %v949_v2, %v517_v55 }
 0x146   :  { %v761_v52 = vpop.eup %760  ;;  %719 = vmatmul.mubr.msk.bf16.vlgmr.msra.gmra.mxu1 %vm34_vm0, %v257_v50  ;;  %v395_v1 = vadd.f32 %v956_v15, %v386_v0  ;;  %v518_v56 = vmul.f32 %v759_v51, %v902_v11 }
 0x147   :  { %v378_v10 = vmul.f32 %v761_v52, %v912_v19  ;;  %731 = vmatpush3.bf16.msra.mxu1 %v929_v28  ;;  %v535_v11 = vadd.f32 %v956_v15, %v526_v57 }
 0x148   :  { %v397_v58 = vpack.c.bf16 %v395_v1, %v394_v53  ;;  %725 = vmatpush3.bf16.msra.mxu0 %v938_v29  ;;  %732 = vmatprep.subr.bf16.mxu1 %v938_v29  ;;  %v527_v59 = vmul.f32 %v949_v2, %v518_v56 }
 0x149   :  { %v763_v60 = vpop.eup %762  ;;  %v387_v61 = vmul.f32 %v949_v2, %v378_v10 }
 0x14a   :  { %v519_v62 = vmul.f32 %v763_v60, %v916_v21  ;;  %726 = vmatprep.mubr.msk.bf16.mxu0 %vm34_vm0, %v397_v58  ;;  %v536_v19 = vadd.f32 %v956_v15, %v527_v59 }
 0x14b   :  { %v396_v28 = vadd.f32 %v956_v15, %v387_v61  ;;  %733 = vmatpush3.bf16.msra.mxu1 %v938_v29 }
 0x14c   :  { %v538_v63 = vpack.c.bf16 %v536_v19, %v535_v11  ;;  %v528_v3 = vmul.f32 %v949_v2, %v519_v62 }
 0x14d   :  { %v398_v4 = vpack.c.bf16 %v396_v28, %v396_v28 }
 0x14e   :  { %734 = vmatprep.mubr.msk.bf16.mxu1 %vm34_vm0, %v538_v63  ;;  %v537_v5 = vadd.f32 %v956_v15, %v528_v3 }
 0x14f   :  { %727 = vmatmul.mubr.msk.bf16.vlgmr.msra.gmra.mxu0 %vm34_vm0, %v398_v4 }
 0x150   :  { %v539_v21 = vpack.c.bf16 %v537_v5, %v537_v5 }
 0x152   :  { %735 = vmatmul.mubr.msk.bf16.vlgmr.msra.gmra.mxu1 %vm34_vm0, %v539_v21 }
 0x203   :  { %v712_v29 = vpop.f32.mrf.mxu0 }
 0x204   :  { %v163_v7 = vadd.f32 %v712_v29, %v619_v6 }
 0x205   :  { %v154_v9 = vpop.f32.mrf.mxu0 }
 0x206   :  { %v671_v12 = vpack.c.bf16 %v163_v7, %v163_v7  ;;  %v155_v13 = vadd.f32 %v619_v6, %v154_v9  ;;  %v720_v14 = vpop.f32.mrf.mxu1 }
 0x207   :  { %v713_v15 = vpop.f32.mrf.mxu0  ;;  %v307_v16 = vadd.f32 %v720_v14, %v619_v6 }
 0x208   :  { %v188_v36 = vsel %vm1009_vm4, %v671_v12, %v187_v8  ;;  %v669_v17 = vpack.c.bf16 %v155_v13, %v155_v13  ;;  %v298_v20 = vpop.f32.mrf.mxu1 }
 0x209   :  { %189 = vst [vmem:[%s1082_s5 + $0x8] sm:$0x1] %v188_v36  ;;  %v674_v22 = vpack.c.bf16 %v307_v16, %v307_v16  ;;  %v157_v23 = vpop.f32.mrf.mxu0  ;;  %v299_v26 = vadd.f32 %v619_v6, %v298_v20 }
 0x20a   :  { %182 = vst.msk [vmem:[%s1082_s5] sm:$0xf] %vm181_vm5, %v669_v17  ;;  %v158_v27 = vadd.f32 %v619_v6, %v157_v23  ;;  %v721_v24 = vpop.f32.mrf.mxu1 }
 0x20b   :  { %v329_v25 = vsel %vm1009_vm4, %v674_v22, %v639_v18  ;;  %v672_v30 = vpack.c.bf16 %v299_v26, %v299_v26 }
 0x20c   :  { %640 = vst [vmem:[%s1082_s5 + $0x14] sm:$0x1] %v329_v25  ;;  %v670_v44 = vpack.c.bf16 %v158_v27, %v158_v27  ;;  %v301_v37 = vpop.f32.mrf.mxu1 }
 0x20d   :  { %637 = vst.msk [vmem:[%s1082_s5 + $0xc] sm:$0xf] %vm181_vm5, %v672_v30  ;;  %v302_v31 = vadd.f32 %v619_v6, %v301_v37 }
 0x20e   :  { %183 = vst.msk [vmem:[%s1082_s5 + $0x4] sm:$0xf] %vm181_vm5, %v670_v44 }
 0x20f   :  { %v673_v32 = vpack.c.bf16 %v302_v31, %v302_v31  ;;  %v728_v33 = vpop.f32.mrf.mxu0 }
 0x210   :  { %v448_v34 = vadd.f32 %v728_v33, %v619_v6 }
 0x211   :  { %638 = vst.msk [vmem:[%s1082_s5 + $0x10] sm:$0xf] %vm181_vm5, %v673_v32  ;;  %v439_v38 = vpop.f32.mrf.mxu0 }
 0x212   :  { %v677_v45 = vpack.c.bf16 %v448_v34, %v448_v34  ;;  %v440_v39 = vadd.f32 %v619_v6, %v439_v38  ;;  %v736_v54 = vpop.f32.mrf.mxu1 }
 0x213   :  { %v729_v40 = vpop.f32.mrf.mxu0  ;;  %v589_v41 = vadd.f32 %v736_v54, %v619_v6 }
 0x214   :  { %v470_v42 = vsel %vm1009_vm4, %v677_v45, %v653_v35  ;;  %v675_v43 = vpack.c.bf16 %v440_v39, %v440_v39  ;;  %v580_v47 = vpop.f32.mrf.mxu1 }
 0x215   :  { %654 = vst [vmem:[%s1082_s5 + $0x20] sm:$0x1] %v470_v42  ;;  %v680_v48 = vpack.c.bf16 %v589_v41, %v589_v41  ;;  %v442_v49 = vpop.f32.mrf.mxu0  ;;  %v581_v55 = vadd.f32 %v619_v6, %v580_v47 }
 0x216   :  { %651 = vst.msk [vmem:[%s1082_s5 + $0x18] sm:$0xf] %vm181_vm5, %v675_v43  ;;  %v443_v50 = vadd.f32 %v619_v6, %v442_v49  ;;  %v737_v0 = vpop.f32.mrf.mxu1 }
 0x217   :  { %v611_v51 = vsel %vm1009_vm4, %v680_v48, %v667_v46  ;;  %v678_v52 = vpack.c.bf16 %v581_v55, %v581_v55 }
 0x218   :  { %668 = vst [vmem:[%s1082_s5 + $0x2c] sm:$0x1] %v611_v51  ;;  %v676_v53 = vpack.c.bf16 %v443_v50, %v443_v50  ;;  %v583_v1 = vpop.f32.mrf.mxu1 }
 0x219   :  { %665 = vst.msk [vmem:[%s1082_s5 + $0x24] sm:$0xf] %vm181_vm5, %v678_v52  ;;  %v584_v56 = vadd.f32 %v619_v6, %v583_v1 }
 0x21a   :  { %652 = vst.msk [vmem:[%s1082_s5 + $0x1c] sm:$0xf] %vm181_vm5, %v676_v53 }
 0x21b   :  { %v679_v57 = vpack.c.bf16 %v584_v56, %v584_v56 }
 0x21d   :  { %666 = vst.msk [vmem:[%s1082_s5 + $0x28] sm:$0xf] %vm181_vm5, %v679_v57 }

// kernel: vit_encoder_with_attn_forward.19
= control target key start
LH: loop header
LB: loop body
LE: loop exit
PB: predicated region body
PF: predicated region fallthrough
CT: control target
= control target key end

     0   :  { %vm23_vm0 = vcmask 261120   ;;  %vm30_vm1 = vcmask 253952   ;;  %s678_s0 = inlined_call_operand.vmem [shape: bf16[4,17,32], index: 0, kind: input, shape index: {}]   ;;  %s679_s1 = inlined_call_operand.vmem [shape: f32[1,32], index: 1, kind: input, shape index: {}]   ;;  %s680_s2 = inlined_call_operand.vmem [shape: f32[1,32], index: 2, kind: input, shape index: {}]   ;;  %s681_s3 = inlined_call_operand.hbm [shape: f32[4,1,32], index: 3, kind: output, shape index: {}]  }
   0x1   :  { %v404_v0 = vld [vmem:[%s678_s0] sm:$0xff]   ;;  %v17_v1 = vld [vmem:[%s678_s0 + $0x8] sm:$0x1]  ;;  %v493_v2 = vld [vmem:[%s678_s0 + $0xc] sm:$0xff]  }
   0x2   :  { %v405_v3 = vunpack.c.l.bf16 %v404_v0  ;;  %v22_v4 = vunpack.c.l.bf16 %v17_v1  ;;  %v406_v5 = vunpack.c.h.bf16 %v404_v0  ;;  %v112_v6 = vunpack.c.l.bf16 %v493_v2  ;;  %v499_v7 = vld [vmem:[%s678_s0 + $0x14] sm:$0x1] }
   0x3   :  { %8 = vsyncpa [#allocation3], 0  ;;  %v113_v12 = vunpack.c.h.bf16 %v493_v2  ;;  %v114_v13 = vunpack.c.l.bf16 %v499_v7  ;;  %v510_v14 = vld [vmem:[%s678_s0 + $0x18] sm:$0xff]   ;;  %v519_v19 = vld [vmem:[%s678_s0 + $0x20] sm:$0x1]  ;;  %vm86_vm2 = vcmask 1046528  }
   0x4   :  { %v24_v8 = vsel %vm23_vm0, %v405_v3, 0.0  ;;  %v31_v9 = vsel %vm30_vm1, %v22_v4, 0.0  ;;  %v27_v10 = vsel %vm23_vm0, %v406_v5, 0.0  ;;  %v115_v11 = vsel %vm23_vm0, %v112_v6, 0.0  ;;  %v524_v20 = vld [vmem:[%s678_s0 + $0x24] sm:$0xff]  }
   0x5   :  { %25 = vadd.xlane.f32.xlu0 %v24_v8  ;;  %32 = vadd.xlane.f32.xlu1 %v31_v9  ;;  %v118_v15 = vsel %vm23_vm0, %v113_v12, 0.0  ;;  %v121_v16 = vsel %vm30_vm1, %v114_v13, 0.0  ;;  %v409_v17 = vunpack.c.l.bf16 %v510_v14  ;;  %v410_v18 = vunpack.c.h.bf16 %v510_v14  ;;  %v533_v25 = vld [vmem:[%s678_s0 + $0x2c] sm:$0x1] }
   0x6   :  { %v202_v23 = vunpack.c.l.bf16 %v519_v19  ;;  %v288_v24 = vunpack.c.l.bf16 %v524_v20  ;;  %v289_v28 = vunpack.c.h.bf16 %v524_v20  ;;  %v290_v29 = vunpack.c.l.bf16 %v533_v25 }
   0x7   :  { %v203_v21 = vsel %vm23_vm0, %v409_v17, 0.0  ;;  %v206_v22 = vsel %vm23_vm0, %v410_v18, 0.0 }
   0x8   :  { %v209_v26 = vsel %vm30_vm1, %v202_v23, 0.0  ;;  %v291_v27 = vsel %vm23_vm0, %v288_v24, 0.0  ;;  %v294_v30 = vsel %vm23_vm0, %v289_v28, 0.0  ;;  %v297_v31 = vsel %vm30_vm1, %v290_v29, 0.0 }
   0x9   :  { %28 = vadd.xlane.f32.xlu0 %v27_v10  ;;  %116 = vadd.xlane.f32.xlu1 %v115_v11 }
   0xd   :  { %119 = vadd.xlane.f32.xlu0 %v118_v15  ;;  %122 = vadd.xlane.f32.xlu1 %v121_v16 }
  0x11   :  { %204 = vadd.xlane.f32.xlu0 %v203_v21  ;;  %207 = vadd.xlane.f32.xlu1 %v206_v22 }
  0x15   :  { %210 = vadd.xlane.f32.xlu0 %v209_v26  ;;  %292 = vadd.xlane.f32.xlu1 %v291_v27 }
  0x19   :  { %295 = vadd.xlane.f32.xlu0 %v294_v30  ;;  %298 = vadd.xlane.f32.xlu1 %v297_v31 }
  0x8e   :  { %v26_v32 = vpop.xlane.xlu0 %25  ;;  %v33_v33 = vpop.xlane.xlu1 %32 }
  0x8f   :  { %v35_v34 = vmul.f32 0.03125, %v26_v32  ;;  %v37_v35 = vmul.f32 0.03125, %v33_v33 }
  0x91   :  { %v545_v36 = vsub.f32 %v405_v3, %v35_v34  ;;  %v547_v37 = vsub.f32 %v22_v4, %v37_v35 }
  0x92   :  { %v29_v38 = vpop.xlane.xlu0 %28  ;;  %v117_v39 = vpop.xlane.xlu1 %116 }
  0x93   :  { %v36_v40 = vmul.f32 0.03125, %v29_v38  ;;  %v124_v41 = vmul.f32 0.03125, %v117_v39  ;;  %v41_v42 = vmul.f32 %v545_v36, %v545_v36  ;;  %v43_v43 = vmul.f32 %v547_v37, %v547_v37 }
  0x95   :  { %v553_v44 = vsub.f32 %v406_v5, %v36_v40  ;;  %v555_v45 = vsub.f32 %v112_v6, %v124_v41  ;;  %v44_v46 = vsel %vm23_vm0, %v41_v42, 0.0  ;;  %v50_v49 = vsel %vm30_vm1, %v43_v43, 0.0 }
  0x96   :  { %45 = vadd.xlane.f32.xlu0 %v44_v46  ;;  %v120_v47 = vpop.xlane.xlu0 %119  ;;  %v123_v48 = vpop.xlane.xlu1 %122 }
  0x97   :  { %v125_v50 = vmul.f32 0.03125, %v120_v47  ;;  %v126_v51 = vmul.f32 0.03125, %v123_v48  ;;  %v42_v52 = vmul.f32 %v553_v44, %v553_v44  ;;  %v130_v53 = vmul.f32 %v555_v45, %v555_v45 }
  0x99   :  { %v563_v54 = vsub.f32 %v113_v12, %v125_v50  ;;  %v565_v55 = vsub.f32 %v114_v13, %v126_v51  ;;  %v47_v56 = vsel %vm23_vm0, %v42_v52, 0.0  ;;  %v133_v59 = vsel %vm23_vm0, %v130_v53, 0.0 }
  0x9a   :  { %51 = vadd.xlane.f32.xlu0 %v50_v49  ;;  %48 = vadd.xlane.f32.xlu1 %v47_v56  ;;  %v205_v57 = vpop.xlane.xlu0 %204  ;;  %v208_v58 = vpop.xlane.xlu1 %207 }
  0x9b   :  { %v212_v60 = vmul.f32 0.03125, %v205_v57  ;;  %v213_v61 = vmul.f32 0.03125, %v208_v58  ;;  %v131_v62 = vmul.f32 %v563_v54, %v563_v54  ;;  %v132_v63 = vmul.f32 %v565_v55, %v565_v55 }
  0x9d   :  { %v573_v0 = vsub.f32 %v409_v17, %v212_v60  ;;  %v575_v1 = vsub.f32 %v410_v18, %v213_v61  ;;  %v136_v2 = vsel %vm23_vm0, %v131_v62, 0.0  ;;  %v139_v5 = vsel %vm30_vm1, %v132_v63, 0.0  ;;  %v612_v60 = vld [vmem:[%s679_s1] ss:$0 sm:$0xff]  ;;  %s461_s1 = smov [#allocation2]  }
  0x9e   :  { %134 = vadd.xlane.f32.xlu1 %v133_v59  ;;  %137 = vadd.xlane.f32.xlu0 %v136_v2  ;;  %v211_v3 = vpop.xlane.xlu0 %210  ;;  %v293_v4 = vpop.xlane.xlu1 %292 }
  0x9f   :  { %v214_v6 = vmul.f32 0.03125, %v211_v3  ;;  %v300_v7 = vmul.f32 0.03125, %v293_v4  ;;  %v218_v8 = vmul.f32 %v573_v0, %v573_v0  ;;  %v219_v9 = vmul.f32 %v575_v1, %v575_v1 }
  0xa1   :  { %v583_v10 = vsub.f32 %v202_v23, %v214_v6  ;;  %v585_v11 = vsub.f32 %v288_v24, %v300_v7  ;;  %v221_v12 = vsel %vm23_vm0, %v218_v8, 0.0  ;;  %v224_v15 = vsel %vm23_vm0, %v219_v9, 0.0  ;;  %v619_v8 = vld [vmem:[%s680_s2] ss:$0 sm:$0xff]  ;;  %s375_s2 = sshll.u32 %s461_s1, 4  ;;  %s376_s2 = int_to_ptr.vmem [resolvable:$true] %s375_s2 }
  0xa2   :  { %140 = vadd.xlane.f32.xlu1 %v139_v5  ;;  %222 = vadd.xlane.f32.xlu0 %v221_v12  ;;  %v296_v13 = vpop.xlane.xlu0 %295  ;;  %v299_v14 = vpop.xlane.xlu1 %298  ;;  %s439_s4 = scalar_lea.vmem %s376_s2, 64  ;;  %p444_p1 = scmp.lt.s32.totalorder %s376_s2, %s376_s2 }
  0xa3   :  { %v301_v16 = vmul.f32 0.03125, %v296_v13  ;;  %v302_v17 = vmul.f32 0.03125, %v299_v14  ;;  %v220_v18 = vmul.f32 %v583_v10, %v583_v10  ;;  %v306_v19 = vmul.f32 %v585_v11, %v585_v11  ;;  %p440_p0 = scmp.ne.s32.totalorder %s376_s2, %s439_s4  ;;  %p445_p2 = scmp.lt.s32.totalorder %s439_s4, %s439_s4 }
  0xa5   :  { %v595_v21 = vsub.f32 %v289_v28, %v301_v16  ;;  %v599_v22 = vsub.f32 %v290_v29, %v302_v17  ;;  %v227_v23 = vsel %vm30_vm1, %v220_v18, 0.0  ;;  %v309_v24 = vsel %vm23_vm0, %v306_v19, 0.0  ;;  %p446_p3 = por %p445_p2, %p444_p1 }
  0xa6   :  { %225 = vadd.xlane.f32.xlu1 %v224_v15  ;;  %228 = vadd.xlane.f32.xlu0 %v227_v23 }
  0xa7   :  { %v307_v26 = vmul.f32 %v595_v21, %v595_v21  ;;  %v308_v27 = vmul.f32 %v599_v22, %v599_v22  ;;  %p447_p4 = pnand %p446_p3, %p440_p0 }
  0xa9   :  { %v312_v20 = vsel %vm23_vm0, %v307_v26, 0.0  ;;  %v315_v25 = vsel %vm30_vm1, %v308_v27, 0.0 }
  0xaa   :  { %310 = vadd.xlane.f32.xlu1 %v309_v24  ;;  %313 = vadd.xlane.f32.xlu0 %v312_v20 }
  0xae   :  { %316 = vadd.xlane.f32.xlu1 %v315_v25 }
 0x11f   :  { %v46_v28 = vpop.xlane.xlu0 %45 }
 0x120   :  { %v53_v29 = vmul.f32 0.03125, %v46_v28 }
 0x122   :  { %v56_v30 = vadd.f32 1e-12, %v53_v29 }
 0x123   :  { %v49_v31 = vpop.xlane.xlu1 %48  ;;  %v52_v32 = vpop.xlane.xlu0 %51 }
 0x124   :  { %415 = vrsqrt.f32 %v56_v30  ;;  %v54_v33 = vmul.f32 0.03125, %v49_v31  ;;  %v55_v34 = vmul.f32 0.03125, %v52_v32 }
 0x126   :  { %v57_v35 = vadd.f32 1e-12, %v54_v33  ;;  %v58_v38 = vadd.f32 1e-12, %v55_v34 }
 0x127   :  { %v135_v39 = vpop.xlane.xlu1 %134  ;;  %v138_v40 = vpop.xlane.xlu0 %137 }
 0x128   :  { %417 = vrsqrt.f32 %v57_v35  ;;  %v142_v41 = vmul.f32 0.03125, %v135_v39  ;;  %v143_v42 = vmul.f32 0.03125, %v138_v40 }
 0x129   :  { %419 = vrsqrt.f32 %v58_v38 }
 0x12a   :  { %v145_v43 = vadd.f32 1e-12, %v142_v41  ;;  %v146_v46 = vadd.f32 1e-12, %v143_v42 }
 0x12b   :  { %v141_v47 = vpop.xlane.xlu1 %140  ;;  %v223_v48 = vpop.xlane.xlu0 %222 }
 0x12c   :  { %421 = vrsqrt.f32 %v145_v43  ;;  %v144_v49 = vmul.f32 0.03125, %v141_v47  ;;  %v230_v50 = vmul.f32 0.03125, %v223_v48 }
 0x12d   :  { %423 = vrsqrt.f32 %v146_v46 }
 0x12e   :  { %v147_v51 = vadd.f32 1e-12, %v144_v49  ;;  %v233_v52 = vadd.f32 1e-12, %v230_v50 }
 0x12f   :  { %v226_v53 = vpop.xlane.xlu1 %225  ;;  %v229_v56 = vpop.xlane.xlu0 %228 }
 0x130   :  { %425 = vrsqrt.f32 %v147_v51  ;;  %v231_v57 = vmul.f32 0.03125, %v226_v53  ;;  %v232_v58 = vmul.f32 0.03125, %v229_v56 }
 0x131   :  { %v416_v59 = vpop.eup %415  ;;  %427 = vrsqrt.f32 %v233_v52 }
 0x132   :  { %v62_v61 = vmul.f32 %v416_v59, %v545_v36  ;;  %v234_v62 = vadd.f32 1e-12, %v231_v57  ;;  %v235_v63 = vadd.f32 1e-12, %v232_v58 }
 0x133   :  { %v311_v2 = vpop.xlane.xlu1 %310  ;;  %v314_v3 = vpop.xlane.xlu0 %313 }
 0x134   :  { %v71_v4 = vmul.f32 %v612_v60, %v62_v61  ;;  %429 = vrsqrt.f32 %v234_v62  ;;  %v318_v5 = vmul.f32 0.03125, %v311_v2  ;;  %v319_v6 = vmul.f32 0.03125, %v314_v3 }
 0x135   :  { %v418_v7 = vpop.eup %417  ;;  %431 = vrsqrt.f32 %v235_v63 }
 0x136   :  { %v420_v9 = vpop.eup %419  ;;  %v63_v12 = vmul.f32 %v418_v7, %v553_v44  ;;  %v321_v36 = vadd.f32 1e-12, %v318_v5  ;;  %v322_v13 = vadd.f32 1e-12, %v319_v6  ;;  %v80_v16 = vadd.f32 %v619_v8, %v71_v4 }
 0x137   :  { %v64_v14 = vmul.f32 %v420_v9, %v547_v37  ;;  %v317_v15 = vpop.xlane.xlu1 %316 }
 0x138   :  { %v72_v17 = vmul.f32 %v612_v60, %v63_v12  ;;  %433 = vrsqrt.f32 %v321_v36  ;;  %v320_v18 = vmul.f32 0.03125, %v317_v15  ;;  %v87_v25 = vrot.slane %v80_v16, 1 }
 0x139   :  { %v422_v19 = vpop.eup %421  ;;  %v73_v23 = vmul.f32 %v612_v60, %v64_v14  ;;  %435 = vrsqrt.f32 %v322_v13 }
 0x13a   :  { %v424_v24 = vpop.eup %423  ;;  %v81_v26 = vadd.f32 %v619_v8, %v72_v17  ;;  %v151_v44 = vmul.f32 %v422_v19, %v555_v45  ;;  %v323_v27 = vadd.f32 1e-12, %v320_v18 }
 0x13b   :  { %v82_v37 = vadd.f32 %v619_v8, %v73_v23  ;;  %v152_v20 = vmul.f32 %v424_v24, %v563_v54 }
 0x13c   :  { %v88_v28 = vrot.slane %v81_v26, 1  ;;  %v160_v29 = vmul.f32 %v612_v60, %v151_v44  ;;  %437 = vrsqrt.f32 %v323_v27 }
 0x13d   :  { %v426_v30 = vpop.eup %425  ;;  %v90_v31 = vrot.slane %v82_v37, 1  ;;  %v161_v32 = vmul.f32 %v612_v60, %v152_v20 }
 0x13e   :  { %v428_v33 = vpop.eup %427  ;;  %v89_v34 = vsel %vm86_vm2, %v87_v25, %v88_v28  ;;  %v169_v45 = vadd.f32 %v619_v8, %v160_v29  ;;  %v153_v35 = vmul.f32 %v426_v30, %v565_v55 }
 0x13f   :  { %v91_v38 = vsel %vm86_vm2, %v88_v28, %v90_v31  ;;  %v170_v54 = vadd.f32 %v619_v8, %v161_v32  ;;  %v239_v39 = vmul.f32 %v428_v33, %v573_v0  ;;  %v94_v40 = vsel %vm23_vm0, %v89_v34, 0.0 }
 0x140   :  { %v175_v41 = vrot.slane %v169_v45, 1  ;;  %v162_v42 = vmul.f32 %v612_v60, %v153_v35  ;;  %v95_v43 = vsel %vm23_vm0, %v91_v38, 0.0 }
 0x141   :  { %v430_v46 = vpop.eup %429  ;;  %v176_v47 = vrot.slane %v170_v54, 1  ;;  %v248_v48 = vmul.f32 %v612_v60, %v239_v39  ;;  %v96_v49 = vadd.f32 %v95_v43, %v94_v40 }
 0x142   :  { %v432_v50 = vpop.eup %431  ;;  %v171_v55 = vadd.f32 %v619_v8, %v162_v42  ;;  %v240_v51 = vmul.f32 %v430_v46, %v575_v1 }
 0x143   :  { %v177_v52 = vsel %vm86_vm2, %v175_v41, %v176_v47  ;;  %v241_v0 = vmul.f32 %v432_v50, %v583_v10  ;;  %v97_v53 = vrot.slane %v96_v49, 4  ;;  %v257_v57 = vadd.f32 %v619_v8, %v248_v48 }
 0x144   :  { %v178_v56 = vrot.slane %v171_v55, 1  ;;  %v249_v58 = vmul.f32 %v612_v60, %v240_v51  ;;  %v182_v4 = vsel %vm23_vm0, %v177_v52, 0.0 }
 0x145   :  { %v434_v59 = vpop.eup %433  ;;  %v250_v61 = vmul.f32 %v612_v60, %v241_v0  ;;  %v98_v62 = vadd.f32 %v97_v53, %v96_v49  ;;  %v263_v9 = vrot.slane %v257_v57, 1 }
 0x146   :  { %v436_v63 = vpop.eup %435  ;;  %v179_v2 = vsel %vm86_vm2, %v176_v47, %v178_v56  ;;  %v258_v3 = vadd.f32 %v619_v8, %v249_v58  ;;  %v327_v1 = vmul.f32 %v434_v59, %v585_v11 }
 0x147   :  { %v259_v10 = vadd.f32 %v619_v8, %v250_v61  ;;  %v328_v5 = vmul.f32 %v436_v63, %v595_v21  ;;  %v99_v6 = vrot.slane %v98_v62, 2  ;;  %v183_v7 = vsel %vm23_vm0, %v179_v2, 0.0 }
 0x148   :  { %v264_v12 = vrot.slane %v258_v3, 1  ;;  %v336_v36 = vmul.f32 %v612_v60, %v327_v1  ;;  %v184_v13 = vadd.f32 %v183_v7, %v182_v4 }
 0x149   :  { %v438_v14 = vpop.eup %437  ;;  %v266_v15 = vrot.slane %v259_v10, 1  ;;  %v337_v16 = vmul.f32 %v612_v60, %v328_v5  ;;  %v100_v17 = vadd.f32 %v99_v6, %v98_v62 }
 0x14a   :  { %v265_v11 = vsel %vm86_vm2, %v263_v9, %v264_v12  ;;  %v345_v18 = vadd.f32 %v619_v8, %v336_v36  ;;  %v329_v19 = vmul.f32 %v438_v14, %v599_v22  ;;  %v185_v21 = vrot.slane %v184_v13, 4 }
 0x14b   :  { %v267_v23 = vsel %vm86_vm2, %v264_v12, %v266_v15  ;;  %v346_v24 = vadd.f32 %v619_v8, %v337_v16  ;;  %v101_v26 = vrot.slane %v100_v17, 1  ;;  %v270_v44 = vsel %vm23_vm0, %v265_v11, 0.0 }
 0x14c   :  { %v351_v27 = vrot.slane %v345_v18, 1  ;;  %v338_v37 = vmul.f32 %v612_v60, %v329_v19  ;;  %v186_v20 = vadd.f32 %v185_v21, %v184_v13  ;;  %v271_v25 = vsel %vm23_vm0, %v267_v23, 0.0 }
 0x14d   :  { %v352_v28 = vrot.slane %v346_v24, 1  ;;  %v102_v29 = vadd.f32 %v101_v26, %v100_v17  ;;  %v272_v30 = vadd.f32 %v271_v25, %v270_v44 }
 0x14e   :  { %v347_v31 = vadd.f32 %v619_v8, %v338_v37  ;;  %v187_v22 = vrot.slane %v186_v20, 2 }
 0x14f   :  { %v104_v32 = vmul.f32 0.0625, %v102_v29  ;;  %v273_v33 = vrot.slane %v272_v30, 4  ;;  %v353_v34 = vsel %vm86_vm2, %v351_v27, %v352_v28 }
 0x150   :  { %v354_v45 = vrot.slane %v347_v31, 1  ;;  %v188_v35 = vadd.f32 %v187_v22, %v186_v20  ;;  %v358_v39 = vsel %vm23_vm0, %v353_v34, 0.0 }
 0x151   :  { %105 = vst.msk [vmem:[#allocation2] sm:$0x1] %vm30_vm1, %v104_v32  ;;  %v274_v38 = vadd.f32 %v273_v33, %v272_v30 }
 0x152   :  { %v355_v60 = vsel %vm86_vm2, %v352_v28, %v354_v45  ;;  %v189_v54 = vrot.slane %v188_v35, 1 }
 0x153   :  { %v359_v40 = vsel %vm23_vm0, %v355_v60, 0.0  ;;  %v275_v41 = vrot.slane %v274_v38, 2 }
 0x154   :  { %v190_v42 = vadd.f32 %v189_v54, %v188_v35  ;;  %v360_v8 = vadd.f32 %v359_v40, %v358_v39 }
 0x155   :  { %v276_v43 = vadd.f32 %v275_v41, %v274_v38 }
 0x156   :  { %v191_v46 = vmul.f32 0.0625, %v190_v42  ;;  %v361_v47 = vrot.slane %v360_v8, 4 }
 0x157   :  { %v277_v48 = vrot.slane %v276_v43, 1 }
 0x158   :  { %193 = vst.msk [vmem:[#allocation2 + $0x1] sm:$0x1] %vm30_vm1, %v191_v46  ;;  %v362_v49 = vadd.f32 %v361_v47, %v360_v8 }
 0x159   :  { %v278_v50 = vadd.f32 %v277_v48, %v276_v43 }
 0x15a   :  { %v363_v55 = vrot.slane %v362_v49, 2 }
 0x15b   :  { %v279_v51 = vmul.f32 0.0625, %v278_v50 }
 0x15c   :  { %v364_v52 = vadd.f32 %v363_v55, %v362_v49 }
 0x15d   :  { %281 = vst.msk [vmem:[#allocation2 + $0x2] sm:$0x1] %vm30_vm1, %v279_v51 }
 0x15e   :  { %v365_v0 = vrot.slane %v364_v52, 1 }
 0x160   :  { %v366_v53 = vadd.f32 %v365_v0, %v364_v52 }
 0x162   :  { %v367_v56 = vmul.f32 0.0625, %v366_v53 }
 0x164   :  { %369 = vst.msk [vmem:[#allocation2 + $0x3] sm:$0x1] %vm30_vm1, %v367_v56 }
 0x165   :  { %450 = shalt.err (!%p447_p4)
}
 0x166   :  { %s462_s5 = smov 16   ;;  %s463_s6 = smov 1  }
 0x167   :  { %381 = dma.vmem_to_hbm [thread:$0]  %s376_s2, 64, %s681_s3, [#allocation3], %s462_s5, %s462_s5, %s463_s6  }
 0x168   :  { %459 = dma.done.wait [#allocation3], 64  }
 0x169   :  { %460 = vsyncadd [#allocation3], 4294967232 }
 0x16a   :  { %385 = vsyncpa [#allocation3], 1 }

// kernel: vit_encoder_with_attn_forward.14
= control target key start
LH: loop header
LB: loop body
LE: loop exit
PB: predicated region body
PF: predicated region fallthrough
CT: control target
= control target key end

     0   :  { %vm49_vm0 = vcmask 261120   ;;  %vm56_vm1 = vcmask 253952   ;;  %vm230_vm2 = vcmask 523264   ;;  %vm305_vm3 = vsmask.f32 256  ;;  %s1658_s0 = inlined_call_operand.vmem [shape: bf16[4,17,32], index: 0, kind: input, shape index: {}]   ;;  %s1659_s3 = inlined_call_operand.vmem [shape: bf16[32,64], index: 3, kind: input, shape index: {}]   ;;  %s1660_s1 = inlined_call_operand.vmem [shape: f32[1,32], index: 1, kind: input, shape index: {}]   ;;  %s1661_s2 = inlined_call_operand.vmem [shape: f32[1,32], index: 2, kind: input, shape index: {}]   ;;  %s1662_s5 = inlined_call_operand.vmem [shape: bf16[64,32], index: 5, kind: input, shape index: {}]   ;;  %s1663_s4 = inlined_call_operand.vmem [shape: f32[1,64], index: 4, kind: input, shape index: {}]   ;;  %s1664_s6 = inlined_call_operand.vmem [shape: f32[1,32], index: 6, kind: input, shape index: {}]   ;;  %s1665_s7 = inlined_call_operand.vmem [shape: bf16[4,17,32], index: 7, kind: output, shape index: {}]  }
   0x1   :  { %v1037_v0 = vld [vmem:[%s1658_s0] sm:$0xff]   ;;  %v976_v1 = vld [vmem:[%s1658_s0 + $0xc] sm:$0xff]   ;;  %v43_v6 = vld [vmem:[%s1658_s0 + $0x8] sm:$0x1]  ;;  %vm301_vm5 = vcmask 257024  }
   0x2   :  { %v1265_v2 = vunpack.c.l.bf16 %v1037_v0  ;;  %v1267_v3 = vunpack.c.l.bf16 %v976_v1  ;;  %v1269_v4 = vunpack.c.h.bf16 %v1037_v0  ;;  %v1271_v5 = vunpack.c.h.bf16 %v976_v1  ;;  %v978_v7 = vld [vmem:[%s1658_s0 + $0x14] sm:$0x1]  ;;  %v1044_v38 = vld [vmem:[%s1658_s0 + $0x18] sm:$0xff]   ;;  %v1008_v46 = vld [vmem:[%s1658_s0 + $0x24] sm:$0xff]  }
   0x3   :  { %v1287_v12 = vunpack.c.l.bf16 %v43_v6  ;;  %v1289_v13 = vunpack.c.l.bf16 %v978_v7  ;;  %v1332_v45 = vunpack.c.l.bf16 %v1044_v38  ;;  %v1341_v50 = vunpack.c.h.bf16 %v1044_v38  ;;  %v994_v52 = vld [vmem:[%s1658_s0 + $0x20] sm:$0x1]  ;;  %v1010_v57 = vld [vmem:[%s1658_s0 + $0x2c] sm:$0x1]  ;;  %vm1559_vm4 = vmand %vm56_vm1, %vm305_vm3 }
   0x4   :  { %v50_v8 = vsel %vm49_vm0, %v1265_v2, 0.0  ;;  %v319_v9 = vsel %vm49_vm0, %v1267_v3, 0.0  ;;  %v53_v10 = vsel %vm49_vm0, %v1269_v4, 0.0  ;;  %v322_v11 = vsel %vm49_vm0, %v1271_v5, 0.0  ;;  %v1370_v62 = vld [vmem:[%s1659_s3 + $0x8] sm:$0xff]   ;;  %v1376_v63 = vld [vmem:[%s1659_s3] sm:$0xff]  }
   0x5   :  { %51 = vadd.xlane.f32.xlu0 %v50_v8  ;;  %320 = vadd.xlane.f32.xlu1 %v319_v9  ;;  %v57_v14 = vsel %vm56_vm1, %v1287_v12, 0.0  ;;  %v325_v15 = vsel %vm56_vm1, %v1289_v13, 0.0  ;;  %v534_v49 = vsel %vm49_vm0, %v1332_v45, 0.0  ;;  %v1343_v51 = vunpack.c.l.bf16 %v1008_v46 }
   0x6   :  { %v537_v53 = vsel %vm49_vm0, %v1341_v50, 0.0  ;;  %v1352_v55 = vunpack.c.h.bf16 %v1008_v46  ;;  %v1354_v56 = vunpack.c.l.bf16 %v994_v52  ;;  %v1363_v60 = vunpack.c.l.bf16 %v1010_v57  ;;  %1085 = vmatprep.subr.bf16.mxu1 %v1370_v62  ;;  %1105 = vmatprep.subr.bf16.mxu0 %v1370_v62  ;;  %v1405_v52 = vld [vmem:[%s1660_s1] ss:$0 sm:$0xff] }
   0x7   :  { %v749_v54 = vsel %vm49_vm0, %v1343_v51, 0.0  ;;  %1086 = vmatpush3.bf16.msra.mxu1 %v1370_v62  ;;  %1106 = vmatpush3.bf16.msra.mxu0 %v1370_v62 }
   0x8   :  { %v752_v58 = vsel %vm49_vm0, %v1352_v55, 0.0  ;;  %v540_v59 = vsel %vm56_vm1, %v1354_v56, 0.0  ;;  %v755_v61 = vsel %vm56_vm1, %v1363_v60, 0.0  ;;  %1087 = vmatprep.subr.bf16.mxu1 %v1376_v63  ;;  %1107 = vmatprep.subr.bf16.mxu0 %v1376_v63 }
   0x9   :  { %54 = vadd.xlane.f32.xlu0 %v53_v10  ;;  %323 = vadd.xlane.f32.xlu1 %v322_v11 }
   0xb   :  { %1088 = vmatpush3.bf16.msra.mxu1 %v1376_v63  ;;  %1108 = vmatpush3.bf16.msra.mxu0 %v1376_v63 }
   0xd   :  { %58 = vadd.xlane.f32.xlu0 %v57_v14  ;;  %326 = vadd.xlane.f32.xlu1 %v325_v15 }
  0x8e   :  { %v52_v16 = vpop.xlane.xlu0 %51  ;;  %v321_v17 = vpop.xlane.xlu1 %320 }
  0x8f   :  { %v61_v18 = vmul.f32 0.03125, %v52_v16  ;;  %v328_v19 = vmul.f32 0.03125, %v321_v17 }
  0x91   :  { %v1296_v20 = vsub.f32 %v1265_v2, %v61_v18  ;;  %v1299_v21 = vsub.f32 %v1267_v3, %v328_v19 }
  0x92   :  { %v55_v22 = vpop.xlane.xlu0 %54  ;;  %v324_v23 = vpop.xlane.xlu1 %323 }
  0x93   :  { %v62_v24 = vmul.f32 0.03125, %v55_v22  ;;  %v329_v25 = vmul.f32 0.03125, %v324_v23  ;;  %v67_v26 = vmul.f32 %v1296_v20, %v1296_v20  ;;  %v334_v27 = vmul.f32 %v1299_v21, %v1299_v21 }
  0x95   :  { %v1306_v28 = vsub.f32 %v1269_v4, %v62_v24  ;;  %v1309_v29 = vsub.f32 %v1271_v5, %v329_v25  ;;  %v70_v30 = vsel %vm49_vm0, %v67_v26, 0.0  ;;  %v337_v33 = vsel %vm49_vm0, %v334_v27, 0.0 }
  0x96   :  { %71 = vadd.xlane.f32.xlu0 %v70_v30  ;;  %v59_v31 = vpop.xlane.xlu0 %58  ;;  %v327_v32 = vpop.xlane.xlu1 %326 }
  0x97   :  { %v63_v34 = vmul.f32 0.03125, %v59_v31  ;;  %v330_v35 = vmul.f32 0.03125, %v327_v32  ;;  %v68_v36 = vmul.f32 %v1306_v28, %v1306_v28  ;;  %v335_v37 = vmul.f32 %v1309_v29, %v1309_v29 }
  0x99   :  { %v1321_v39 = vsub.f32 %v1287_v12, %v63_v34  ;;  %v1324_v40 = vsub.f32 %v1289_v13, %v330_v35  ;;  %v73_v41 = vsel %vm49_vm0, %v68_v36, 0.0  ;;  %v340_v42 = vsel %vm49_vm0, %v335_v37, 0.0 }
  0x9a   :  { %338 = vadd.xlane.f32.xlu0 %v337_v33  ;;  %74 = vadd.xlane.f32.xlu1 %v73_v41 }
  0x9b   :  { %v69_v43 = vmul.f32 %v1321_v39, %v1321_v39  ;;  %v336_v44 = vmul.f32 %v1324_v40, %v1324_v40 }
  0x9d   :  { %v76_v47 = vsel %vm56_vm1, %v69_v43, 0.0  ;;  %v343_v48 = vsel %vm56_vm1, %v336_v44, 0.0 }
  0x9e   :  { %341 = vadd.xlane.f32.xlu1 %v340_v42  ;;  %77 = vadd.xlane.f32.xlu0 %v76_v47 }
  0xa2   :  { %344 = vadd.xlane.f32.xlu1 %v343_v48  ;;  %535 = vadd.xlane.f32.xlu0 %v534_v49 }
  0xa6   :  { %538 = vadd.xlane.f32.xlu1 %v537_v53  ;;  %750 = vadd.xlane.f32.xlu0 %v749_v54 }
  0xaa   :  { %753 = vadd.xlane.f32.xlu1 %v752_v58  ;;  %541 = vadd.xlane.f32.xlu0 %v540_v59 }
  0xae   :  { %756 = vadd.xlane.f32.xlu1 %v755_v61 }
 0x11f   :  { %v72_v0 = vpop.xlane.xlu0 %71 }
 0x120   :  { %v79_v1 = vmul.f32 0.03125, %v72_v0 }
 0x122   :  { %v82_v6 = vadd.f32 1e-12, %v79_v1 }
 0x123   :  { %v75_v7 = vpop.xlane.xlu1 %74  ;;  %v339_v8 = vpop.xlane.xlu0 %338 }
 0x124   :  { %1171 = vrsqrt.f32 %v82_v6  ;;  %v80_v9 = vmul.f32 0.03125, %v75_v7  ;;  %v346_v10 = vmul.f32 0.03125, %v339_v8 }
 0x126   :  { %v83_v11 = vadd.f32 1e-12, %v80_v9  ;;  %v349_v14 = vadd.f32 1e-12, %v346_v10  ;;  %v1425_v10 = vld [vmem:[%s1661_s2] ss:$0 sm:$0xff] }
 0x127   :  { %v342_v15 = vpop.xlane.xlu1 %341  ;;  %v78_v16 = vpop.xlane.xlu0 %77 }
 0x128   :  { %1173 = vrsqrt.f32 %v83_v11  ;;  %v347_v17 = vmul.f32 0.03125, %v342_v15  ;;  %v81_v18 = vmul.f32 0.03125, %v78_v16 }
 0x129   :  { %1175 = vrsqrt.f32 %v349_v14 }
 0x12a   :  { %v350_v19 = vadd.f32 1e-12, %v347_v17  ;;  %v84_v22 = vadd.f32 1e-12, %v81_v18 }
 0x12b   :  { %v345_v23 = vpop.xlane.xlu1 %344  ;;  %v536_v24 = vpop.xlane.xlu0 %535 }
 0x12c   :  { %1177 = vrsqrt.f32 %v350_v19  ;;  %v348_v25 = vmul.f32 0.03125, %v345_v23  ;;  %v543_v26 = vmul.f32 0.03125, %v536_v24 }
 0x12d   :  { %1179 = vrsqrt.f32 %v84_v22 }
 0x12e   :  { %v351_v27 = vadd.f32 1e-12, %v348_v25  ;;  %v1386_v30 = vsub.f32 %v1332_v45, %v543_v26 }
 0x12f   :  { %v539_v31 = vpop.xlane.xlu1 %538  ;;  %v751_v32 = vpop.xlane.xlu0 %750 }
 0x130   :  { %1181 = vrsqrt.f32 %v351_v27  ;;  %v544_v33 = vmul.f32 0.03125, %v539_v31  ;;  %v758_v34 = vmul.f32 0.03125, %v751_v32  ;;  %v549_v35 = vmul.f32 %v1386_v30, %v1386_v30 }
 0x131   :  { %v1172_v36 = vpop.eup %1171 }
 0x132   :  { %v1391_v37 = vsub.f32 %v1341_v50, %v544_v33  ;;  %v1394_v38 = vsub.f32 %v1343_v51, %v758_v34  ;;  %v552_v41 = vsel %vm49_vm0, %v549_v35, 0.0  ;;  %v88_v44 = vmul.f32 %v1172_v36, %v1296_v20 }
 0x133   :  { %v754_v42 = vpop.xlane.xlu1 %753  ;;  %553 = vadd.xlane.f32.xlu0 %v552_v41  ;;  %v542_v43 = vpop.xlane.xlu0 %541 }
 0x134   :  { %v759_v46 = vmul.f32 0.03125, %v754_v42  ;;  %v545_v47 = vmul.f32 0.03125, %v542_v43  ;;  %v550_v48 = vmul.f32 %v1391_v37, %v1391_v37  ;;  %v764_v49 = vmul.f32 %v1394_v38, %v1394_v38 }
 0x135   :  { %v1174_v53 = vpop.eup %1173  ;;  %v97_v1 = vmul.f32 %v1405_v52, %v88_v44  ;;  %v1465_v44 = vld [vmem:[%s1662_s5 + $0x10] sm:$0xff]  }
 0x136   :  { %v1176_v54 = vpop.eup %1175  ;;  %v1408_v57 = vsub.f32 %v1352_v55, %v759_v46  ;;  %v1411_v20 = vsub.f32 %v1354_v56, %v545_v47  ;;  %v555_v58 = vsel %vm49_vm0, %v550_v48, 0.0  ;;  %v767_v59 = vsel %vm49_vm0, %v764_v49, 0.0  ;;  %v1474_v46 = vld [vmem:[%s1662_s5 + $0x8] sm:$0xff]   ;;  %v1483_v47 = vld [vmem:[%s1662_s5] sm:$0xff]  }
 0x137   :  { %556 = vadd.xlane.f32.xlu1 %v555_v58  ;;  %v757_v61 = vpop.xlane.xlu1 %756  ;;  %768 = vadd.xlane.f32.xlu0 %v767_v59  ;;  %v89_v0 = vmul.f32 %v1174_v53, %v1306_v28  ;;  %v355_v6 = vmul.f32 %v1176_v54, %v1299_v21  ;;  %v106_v19 = vadd.f32 %v1425_v10, %v97_v1 }
 0x138   :  { %v760_v7 = vmul.f32 0.03125, %v757_v61  ;;  %v765_v8 = vmul.f32 %v1408_v57, %v1408_v57  ;;  %v551_v9 = vmul.f32 %v1411_v20, %v1411_v20 }
 0x139   :  { %v1178_v11 = vpop.eup %1177  ;;  %v98_v14 = vmul.f32 %v1405_v52, %v89_v0  ;;  %v364_v28 = vmul.f32 %v1405_v52, %v355_v6 }
 0x13a   :  { %v1180_v15 = vpop.eup %1179  ;;  %v1430_v21 = vsub.f32 %v1363_v60, %v760_v7  ;;  %v770_v16 = vsel %vm49_vm0, %v765_v8, 0.0  ;;  %v558_v17 = vsel %vm56_vm1, %v551_v9, 0.0  ;;  %v356_v18 = vmul.f32 %v1178_v11, %v1309_v29  ;;  %v1494_v7 = vld [vmem:[%s1663_s4] ss:$0 sm:$0xff] }
 0x13b   :  { %771 = vadd.xlane.f32.xlu1 %v770_v16  ;;  %559 = vadd.xlane.f32.xlu0 %v558_v17  ;;  %v107_v22 = vadd.f32 %v1425_v10, %v98_v14  ;;  %v90_v23 = vmul.f32 %v1180_v15, %v1321_v39  ;;  %v373_v29 = vadd.f32 %v1425_v10, %v364_v28 }
 0x13c   :  { %v766_v24 = vmul.f32 %v1430_v21, %v1430_v21  ;;  %v365_v25 = vmul.f32 %v1405_v52, %v356_v18 }
 0x13d   :  { %v1182_v26 = vpop.eup %1181  ;;  %v109_v27 = vpack.c.bf16 %v107_v22, %v106_v19  ;;  %v99_v31 = vmul.f32 %v1405_v52, %v90_v23 }
 0x13e   :  { %v773_v32 = vsel %vm56_vm1, %v766_v24, 0.0  ;;  %v374_v33 = vadd.f32 %v1425_v10, %v365_v25  ;;  %v357_v34 = vmul.f32 %v1182_v26, %v1324_v40  ;;  %v1456_v40 = vld [vmem:[%s1662_s5 + $0x18] sm:$0xff]  }
 0x13f   :  { %1089 = vmatprep.mubr.msk.bf16.mxu1 %vm49_vm0, %v109_v27  ;;  %774 = vadd.xlane.f32.xlu1 %v773_v32  ;;  %v108_v39 = vadd.f32 %v1425_v10, %v99_v31 }
 0x140   :  { %v376_v35 = vpack.c.bf16 %v374_v33, %v373_v29  ;;  %v366_v36 = vmul.f32 %v1405_v52, %v357_v34  ;;  %1093 = vmatprep.subr.bf16.mxu1 %v1456_v40  ;;  %1113 = vmatprep.subr.bf16.mxu0 %v1456_v40 }
 0x141   :  { %v110_v41 = vpack.c.bf16 %v108_v39, %v108_v39 }
 0x142   :  { %1109 = vmatprep.mubr.msk.bf16.mxu0 %vm49_vm0, %v376_v35  ;;  %v375_v42 = vadd.f32 %v1425_v10, %v366_v36 }
 0x143   :  { %1090 = vmatmul.mubr.msk.bf16.vlgmr.msra.gmra.mxu1 %vm49_vm0, %v110_v41 }
 0x144   :  { %v377_v43 = vpack.c.bf16 %v375_v42, %v375_v42  ;;  %1094 = vmatpush3.bf16.msra.mxu1 %v1456_v40 }
 0x145   :  { %1095 = vmatprep.subr.bf16.mxu1 %v1465_v44 }
 0x146   :  { %1110 = vmatmul.mubr.msk.bf16.vlgmr.msra.gmra.mxu0 %vm49_vm0, %v377_v43 }
 0x147   :  { %1114 = vmatpush3.bf16.msra.mxu0 %v1456_v40 }
 0x148   :  { %1115 = vmatprep.subr.bf16.mxu0 %v1465_v44  ;;  %1096 = vmatpush3.bf16.msra.mxu1 %v1465_v44 }
 0x149   :  { %1097 = vmatprep.subr.bf16.mxu1 %v1474_v46 }
 0x14b   :  { %1116 = vmatpush3.bf16.msra.mxu0 %v1465_v44 }
 0x14c   :  { %1117 = vmatprep.subr.bf16.mxu0 %v1474_v46  ;;  %1098 = vmatpush3.bf16.msra.mxu1 %v1474_v46 }
 0x14d   :  { %1099 = vmatprep.subr.bf16.mxu1 %v1483_v47 }
 0x14f   :  { %1118 = vmatpush3.bf16.msra.mxu0 %v1474_v46 }
 0x150   :  { %1119 = vmatprep.subr.bf16.mxu0 %v1483_v47  ;;  %1100 = vmatpush3.bf16.msra.mxu1 %v1483_v47 }
 0x151   :  { %1125 = vmatprep.subr.bf16.mxu1 %v1370_v62 }
 0x153   :  { %1120 = vmatpush3.bf16.msra.mxu0 %v1483_v47 }
 0x154   :  { %1145 = vmatprep.subr.bf16.mxu0 %v1370_v62 }
 0x1bc   :  { %v554_v48 = vpop.xlane.xlu0 %553 }
 0x1bd   :  { %v561_v54 = vmul.f32 0.03125, %v554_v48 }
 0x1bf   :  { %v564_v6 = vadd.f32 1e-12, %v561_v54 }
 0x1c0   :  { %v557_v49 = vpop.xlane.xlu1 %556  ;;  %v769_v53 = vpop.xlane.xlu0 %768 }
 0x1c1   :  { %v562_v59 = vmul.f32 0.03125, %v557_v49  ;;  %v776_v61 = vmul.f32 0.03125, %v769_v53  ;;  %1183 = vrsqrt.f32 %v564_v6 }
 0x1c3   :  { %v565_v8 = vadd.f32 1e-12, %v562_v59  ;;  %v779_v9 = vadd.f32 1e-12, %v776_v61 }
 0x1c4   :  { %v772_v58 = vpop.xlane.xlu1 %771  ;;  %v560_v1 = vpop.xlane.xlu0 %559 }
 0x1c5   :  { %v777_v0 = vmul.f32 0.03125, %v772_v58  ;;  %v563_v11 = vmul.f32 0.03125, %v560_v1  ;;  %1185 = vrsqrt.f32 %v565_v8 }
 0x1c6   :  { %1187 = vrsqrt.f32 %v779_v9 }
 0x1c7   :  { %v780_v28 = vadd.f32 1e-12, %v777_v0  ;;  %v566_v23 = vadd.f32 1e-12, %v563_v11 }
 0x1c8   :  { %v775_v16 = vpop.xlane.xlu1 %774 }
 0x1c9   :  { %1189 = vrsqrt.f32 %v780_v28  ;;  %v778_v26 = vmul.f32 0.03125, %v775_v16 }
 0x1cb   :  { %v781_v36 = vadd.f32 1e-12, %v778_v26 }
 0x1ce   :  { %v1184_v49 = vpop.eup %1183 }
 0x1cf   :  { %v570_v59 = vmul.f32 %v1184_v49, %v1386_v30 }
 0x1d1   :  { %v579_v11 = vmul.f32 %v1405_v52, %v570_v59 }
 0x1d2   :  { %v1186_v53 = vpop.eup %1185 }
 0x1d3   :  { %v1188_v54 = vpop.eup %1187  ;;  %v571_v0 = vmul.f32 %v1186_v53, %v1391_v37 }
 0x1d4   :  { %v785_v30 = vmul.f32 %v1188_v54, %v1394_v38 }
 0x1d6   :  { %v1190_v58 = vpop.eup %1189 }
 0x203   :  { %v1091_v14 = vpop.f32.mrf.mxu1 }
 0x204   :  { %v178_v15 = vadd.f32 %v1091_v14, %v1494_v7  ;;  %v786_v14 = vmul.f32 %v1190_v58, %v1408_v57  ;;  %v588_v57 = vadd.f32 %v1425_v10, %v579_v11 }
 0x205   :  { %v169_v17 = vpop.f32.mrf.mxu1 }
 0x206   :  { %v188_v18 = vmul.f32 0.70710677, %v178_v15  ;;  %v170_v19 = vadd.f32 %v1494_v7, %v169_v17  ;;  %v1111_v22 = vpop.f32.mrf.mxu0  ;;  %v580_v17 = vmul.f32 %v1405_v52, %v571_v0 }
 0x207   :  { %v1092_v24 = vpop.f32.mrf.mxu1  ;;  %v427_v25 = vadd.f32 %v1111_v22, %v1494_v7 }
 0x208   :  { %v186_v27 = vmul.f32 0.70710677, %v170_v19  ;;  %v418_v31 = vpop.f32.mrf.mxu0  ;;  %1191 = verf.f32 %v188_v18  ;;  %v183_v37 = vmul.f32 0.5, %v170_v19  ;;  %v794_v19 = vmul.f32 %v1405_v52, %v785_v30 }
 0x209   :  { %v437_v32 = vmul.f32 0.70710677, %v427_v25  ;;  %v172_v29 = vpop.f32.mrf.mxu1  ;;  %v419_v33 = vadd.f32 %v1494_v7, %v418_v31 }
 0x20a   :  { %1193 = verf.f32 %v186_v27  ;;  %v173_v34 = vadd.f32 %v1494_v7, %v172_v29  ;;  %v1112_v39 = vpop.f32.mrf.mxu0 }
 0x20b   :  { %1195 = vrsqrt.f32 %v566_v23  ;;  %v435_v35 = vmul.f32 0.70710677, %v419_v33  ;;  %v185_v23 = vmul.f32 0.5, %v178_v15  ;;  %v795_v39 = vmul.f32 %v1405_v52, %v786_v14 }
 0x20c   :  { %1197 = verf.f32 %v437_v32  ;;  %v187_v41 = vmul.f32 0.70710677, %v173_v34  ;;  %v421_v42 = vpop.f32.mrf.mxu0  ;;  %v184_v26 = vmul.f32 0.5, %v173_v34  ;;  %v432_v15 = vmul.f32 0.5, %v419_v33 }
 0x20d   :  { %1199 = verf.f32 %v435_v35  ;;  %v422_v43 = vadd.f32 %v1494_v7, %v421_v42  ;;  %v804_v0 = vadd.f32 %v1425_v10, %v795_v39  ;;  %v803_v33 = vadd.f32 %v1425_v10, %v794_v19 }
 0x20e   :  { %1201 = verf.f32 %v187_v41  ;;  %v434_v41 = vmul.f32 0.5, %v427_v25 }
 0x20f   :  { %v436_v48 = vmul.f32 0.70710677, %v422_v43  ;;  %1203 = vrsqrt.f32 %v781_v36 }
 0x211   :  { %1205 = verf.f32 %v436_v48  ;;  %v433_v48 = vmul.f32 0.5, %v422_v43 }
 0x215   :  { %v1192_v61 = vpop.eup %1191 }
 0x216   :  { %v194_v9 = vadd.f32 1.0, %v1192_v61 }
 0x217   :  { %v1194_v1 = vpop.eup %1193 }
 0x218   :  { %v1196_v6 = vpop.eup %1195  ;;  %v192_v16 = vadd.f32 1.0, %v1194_v1  ;;  %v197_v32 = vmul.f32 %v194_v9, %v185_v23 }
 0x219   :  { %v1198_v8 = vpop.eup %1197  ;;  %v572_v22 = vmul.f32 %v1196_v6, %v1411_v20  ;;  %v589_v20 = vadd.f32 %v1425_v10, %v580_v17  ;;  %v806_v6 = vpack.c.bf16 %v804_v0, %v803_v33 }
 0x21a   :  { %v1200_v28 = vpop.eup %1199  ;;  %v443_v24 = vadd.f32 1.0, %v1198_v8  ;;  %v195_v36 = vmul.f32 %v192_v16, %v183_v37  ;;  %v199_v58 = vpack.c.bf16 %v197_v32, %v197_v32 }
 0x21b   :  { %v1202_v18 = vpop.eup %1201  ;;  %v441_v29 = vadd.f32 1.0, %v1200_v28  ;;  %v581_v54 = vmul.f32 %v1405_v52, %v572_v22  ;;  %v591_v25 = vpack.c.bf16 %v589_v20, %v588_v57 }
 0x21c   :  { %v193_v27 = vadd.f32 1.0, %v1202_v18  ;;  %v1204_v31 = vpop.eup %1203  ;;  %v446_v49 = vmul.f32 %v443_v24, %v434_v41 }
 0x21d   :  { %v787_v34 = vmul.f32 %v1204_v31, %v1430_v21  ;;  %v444_v59 = vmul.f32 %v441_v29, %v432_v15  ;;  %v590_v8 = vadd.f32 %v1425_v10, %v581_v54 }
 0x21e   :  { %v1206_v35 = vpop.eup %1205  ;;  %v196_v42 = vmul.f32 %v193_v27, %v184_v26  ;;  %v448_v43 = vpack.c.bf16 %v446_v49, %v446_v49  ;;  %v990_v27 = vld [vmem:[%s1665_s7 + $0x14] sm:$0x1] }
 0x21f   :  { %v442_v38 = vadd.f32 1.0, %v1206_v35  ;;  %v796_v21 = vmul.f32 %v1405_v52, %v787_v34  ;;  %v592_v52 = vpack.c.bf16 %v590_v8, %v590_v8 }
 0x220   :  { %v198_v53 = vpack.c.bf16 %v196_v42, %v195_v36 }
 0x221   :  { %v445_v61 = vmul.f32 %v442_v38, %v433_v48  ;;  %v805_v9 = vadd.f32 %v1425_v10, %v796_v21 }
 0x222   :  { %1101 = vmatprep.mubr.msk.bf16.mxu1 %vm230_vm2, %v198_v53 }
 0x223   :  { %v447_v1 = vpack.c.bf16 %v445_v61, %v444_v59  ;;  %1102 = vmatmul.mubr.msk.bf16.vlgmr.msra.gmra.mxu1 %vm230_vm2, %v199_v58  ;;  %v807_v11 = vpack.c.bf16 %v805_v9, %v805_v9 }
 0x224   :  { %1126 = vmatpush3.bf16.msra.mxu1 %v1370_v62  ;;  %1129 = vmatprep.mubr.msk.bf16.mxu1 %vm49_vm0, %v591_v25 }
 0x225   :  { %1121 = vmatprep.mubr.msk.bf16.mxu0 %vm230_vm2, %v447_v1  ;;  %1127 = vmatprep.subr.bf16.mxu1 %v1376_v63 }
 0x226   :  { %1122 = vmatmul.mubr.msk.bf16.vlgmr.msra.gmra.mxu0 %vm230_vm2, %v448_v43 }
 0x227   :  { %1146 = vmatpush3.bf16.msra.mxu0 %v1370_v62  ;;  %1149 = vmatprep.mubr.msk.bf16.mxu0 %vm49_vm0, %v806_v6  ;;  %v1553_v62 = vld [vmem:[%s1664_s6] ss:$0 sm:$0xff] }
 0x228   :  { %1128 = vmatpush3.bf16.msra.mxu1 %v1376_v63  ;;  %1147 = vmatprep.subr.bf16.mxu0 %v1376_v63 }
 0x229   :  { %1133 = vmatprep.subr.bf16.mxu1 %v1456_v40 }
 0x22b   :  { %1130 = vmatmul.mubr.msk.bf16.vlgmr.msra.gmra.mxu1 %vm49_vm0, %v592_v52  ;;  %1148 = vmatpush3.bf16.msra.mxu0 %v1376_v63 }
 0x22c   :  { %1134 = vmatpush3.bf16.msra.mxu1 %v1456_v40  ;;  %1153 = vmatprep.subr.bf16.mxu0 %v1456_v40 }
 0x22d   :  { %1135 = vmatprep.subr.bf16.mxu1 %v1465_v44 }
 0x22e   :  { %1150 = vmatmul.mubr.msk.bf16.vlgmr.msra.gmra.mxu0 %vm49_vm0, %v807_v11 }
 0x22f   :  { %1154 = vmatpush3.bf16.msra.mxu0 %v1456_v40 }
 0x230   :  { %1136 = vmatpush3.bf16.msra.mxu1 %v1465_v44  ;;  %1155 = vmatprep.subr.bf16.mxu0 %v1465_v44 }
 0x231   :  { %1137 = vmatprep.subr.bf16.mxu1 %v1474_v46 }
 0x233   :  { %1156 = vmatpush3.bf16.msra.mxu0 %v1465_v44 }
 0x234   :  { %1138 = vmatpush3.bf16.msra.mxu1 %v1474_v46  ;;  %1157 = vmatprep.subr.bf16.mxu0 %v1474_v46 }
 0x235   :  { %1139 = vmatprep.subr.bf16.mxu1 %v1483_v47 }
 0x237   :  { %1158 = vmatpush3.bf16.msra.mxu0 %v1474_v46 }
 0x238   :  { %1140 = vmatpush3.bf16.msra.mxu1 %v1483_v47  ;;  %1159 = vmatprep.subr.bf16.mxu0 %v1483_v47 }
 0x23b   :  { %1160 = vmatpush3.bf16.msra.mxu0 %v1483_v47  ;;  %v307_v47 = vld [vmem:[%s1665_s7 + $0x8] sm:$0x1] }
 0x2e3   :  { %v1103_v63 = vpop.f32.mrf.mxu1 }
 0x2e4   :  { %v280_v10 = vadd.f32 %v1103_v63, %v1553_v62 }
 0x2e5   :  { %v271_v40 = vpop.f32.mrf.mxu1 }
 0x2e6   :  { %v287_v44 = vadd.f32 %v280_v10, %v1287_v12  ;;  %v272_v46 = vadd.f32 %v1553_v62, %v271_v40  ;;  %v1123_v14 = vpop.f32.mrf.mxu0 }
 0x2e7   :  { %v1104_v16 = vpop.f32.mrf.mxu1  ;;  %v498_v17 = vadd.f32 %v1123_v14, %v1553_v62 }
 0x2e8   :  { %v1026_v18 = vpack.c.bf16 %v287_v44, %v287_v44  ;;  %v285_v22 = vadd.f32 %v1265_v2, %v272_v46  ;;  %v489_v23 = vpop.f32.mrf.mxu0 }
 0x2e9   :  { %v505_v12 = vadd.f32 %v498_v17, %v1289_v13  ;;  %v274_v30 = vpop.f32.mrf.mxu1  ;;  %v490_v37 = vadd.f32 %v1553_v62, %v489_v23 }
 0x2ea   :  { %v308_v24 = vsel %vm1559_vm4, %v1026_v18, %v307_v47  ;;  %v1024_v26 = vpack.c.bf16 %v285_v22, %v285_v22  ;;  %v275_v31 = vadd.f32 %v1553_v62, %v274_v30  ;;  %v1124_v32 = vpop.f32.mrf.mxu0 }
 0x2eb   :  { %309 = vst [vmem:[%s1665_s7 + $0x8] sm:$0x1] %v308_v24  ;;  %v1029_v2 = vpack.c.bf16 %v505_v12, %v505_v12  ;;  %v503_v13 = vadd.f32 %v490_v37, %v1267_v3  ;;  %v1131_v29 = vpop.f32.mrf.mxu1 }
 0x2ec   :  { %302 = vst.msk [vmem:[%s1665_s7] sm:$0xf] %vm301_vm5, %v1024_v26  ;;  %v286_v57 = vadd.f32 %v1269_v4, %v275_v31  ;;  %v642_v39 = vadd.f32 %v1131_v29, %v1494_v7  ;;  %v492_v35 = vpop.f32.mrf.mxu0 }
 0x2ed   :  { %v523_v36 = vsel %vm1559_vm4, %v1029_v2, %v990_v27  ;;  %v1027_v41 = vpack.c.bf16 %v503_v13, %v503_v13  ;;  %v493_v42 = vadd.f32 %v1553_v62, %v492_v35  ;;  %v633_v20 = vpop.f32.mrf.mxu1 }
 0x2ee   :  { %991 = vst [vmem:[%s1665_s7 + $0x14] sm:$0x1] %v523_v36  ;;  %v1025_v3 = vpack.c.bf16 %v286_v57, %v286_v57  ;;  %v652_v15 = vmul.f32 0.70710677, %v642_v39  ;;  %v634_v48 = vadd.f32 %v1494_v7, %v633_v20  ;;  %v1151_v38 = vpop.f32.mrf.mxu0  ;;  %v649_v40 = vmul.f32 0.5, %v642_v39 }
 0x2ef   :  { %988 = vst.msk [vmem:[%s1665_s7 + $0xc] sm:$0xf] %vm301_vm5, %v1027_v41  ;;  %v504_v4 = vadd.f32 %v493_v42, %v1271_v5  ;;  %v1132_v19 = vpop.f32.mrf.mxu1  ;;  %v857_v34 = vadd.f32 %v1151_v38, %v1494_v7  ;;  %v1006_v42 = vld [vmem:[%s1665_s7 + $0x20] sm:$0x1] }
 0x2f0   :  { %303 = vst.msk [vmem:[%s1665_s7 + $0x4] sm:$0xf] %vm301_vm5, %v1025_v3  ;;  %v650_v49 = vmul.f32 0.70710677, %v634_v48  ;;  %v848_v53 = vpop.f32.mrf.mxu0  ;;  %1207 = verf.f32 %v652_v15  ;;  %v647_v44 = vmul.f32 0.5, %v634_v48 }
 0x2f1   :  { %v1028_v54 = vpack.c.bf16 %v504_v4, %v504_v4  ;;  %v867_v58 = vmul.f32 0.70710677, %v857_v34  ;;  %v636_v59 = vpop.f32.mrf.mxu1  ;;  %v849_v61 = vadd.f32 %v1494_v7, %v848_v53  ;;  %v1022_v53 = vld [vmem:[%s1665_s7 + $0x2c] sm:$0x1] }
 0x2f2   :  { %1209 = verf.f32 %v650_v49  ;;  %v637_v0 = vadd.f32 %v1494_v7, %v636_v59  ;;  %v1152_v5 = vpop.f32.mrf.mxu0 }
 0x2f3   :  { %989 = vst.msk [vmem:[%s1665_s7 + $0x10] sm:$0xf] %vm301_vm5, %v1028_v54  ;;  %v865_v25 = vmul.f32 0.70710677, %v849_v61  ;;  %1211 = verf.f32 %v867_v58  ;;  %v862_v12 = vmul.f32 0.5, %v849_v61 }
 0x2f4   :  { %v651_v1 = vmul.f32 0.70710677, %v637_v0  ;;  %v851_v33 = vpop.f32.mrf.mxu0  ;;  %v648_v14 = vmul.f32 0.5, %v637_v0 }
 0x2f5   :  { %1213 = verf.f32 %v865_v25  ;;  %v852_v43 = vadd.f32 %v1494_v7, %v851_v33  ;;  %v864_v7 = vmul.f32 0.5, %v857_v34 }
 0x2f6   :  { %1215 = verf.f32 %v651_v1 }
 0x2f7   :  { %v866_v21 = vmul.f32 0.70710677, %v852_v43  ;;  %v863_v30 = vmul.f32 0.5, %v852_v43 }
 0x2f9   :  { %1217 = verf.f32 %v866_v21 }
 0x2fd   :  { %v1208_v6 = vpop.eup %1207 }
 0x2fe   :  { %v658_v52 = vadd.f32 1.0, %v1208_v6 }
 0x2ff   :  { %v1210_v8 = vpop.eup %1209 }
 0x300   :  { %v1212_v9 = vpop.eup %1211  ;;  %v656_v63 = vadd.f32 1.0, %v1210_v8  ;;  %v661_v16 = vmul.f32 %v658_v52, %v649_v40 }
 0x301   :  { %v873_v46 = vadd.f32 1.0, %v1212_v9 }
 0x302   :  { %v1214_v11 = vpop.eup %1213  ;;  %v659_v22 = vmul.f32 %v656_v63, %v647_v44  ;;  %v663_v27 = vpack.c.bf16 %v661_v16, %v661_v16 }
 0x303   :  { %v1216_v10 = vpop.eup %1215  ;;  %v871_v17 = vadd.f32 1.0, %v1214_v11  ;;  %v876_v24 = vmul.f32 %v873_v46, %v864_v7 }
 0x304   :  { %v657_v47 = vadd.f32 1.0, %v1216_v10 }
 0x305   :  { %v874_v31 = vmul.f32 %v871_v17, %v862_v12  ;;  %v878_v13 = vpack.c.bf16 %v876_v24, %v876_v24 }
 0x306   :  { %v1218_v18 = vpop.eup %1217  ;;  %v660_v23 = vmul.f32 %v657_v47, %v648_v14 }
 0x307   :  { %v872_v37 = vadd.f32 1.0, %v1218_v18 }
 0x308   :  { %v662_v26 = vpack.c.bf16 %v660_v23, %v659_v22 }
 0x309   :  { %v875_v32 = vmul.f32 %v872_v37, %v863_v30 }
 0x30a   :  { %1141 = vmatprep.mubr.msk.bf16.mxu1 %vm230_vm2, %v662_v26 }
 0x30b   :  { %v877_v2 = vpack.c.bf16 %v875_v32, %v874_v31  ;;  %1142 = vmatmul.mubr.msk.bf16.vlgmr.msra.gmra.mxu1 %vm230_vm2, %v663_v27 }
 0x30d   :  { %1161 = vmatprep.mubr.msk.bf16.mxu0 %vm230_vm2, %v877_v2 }
 0x30e   :  { %1162 = vmatmul.mubr.msk.bf16.vlgmr.msra.gmra.mxu0 %vm230_vm2, %v878_v13 }
 0x3cb   :  { %v1143_v29 = vpop.f32.mrf.mxu1 }
 0x3cc   :  { %v713_v57 = vadd.f32 %v1143_v29, %v1553_v62 }
 0x3cd   :  { %v704_v39 = vpop.f32.mrf.mxu1 }
 0x3ce   :  { %v720_v35 = vadd.f32 %v713_v57, %v1354_v56  ;;  %v705_v36 = vadd.f32 %v1553_v62, %v704_v39  ;;  %v1163_v41 = vpop.f32.mrf.mxu0 }
 0x3cf   :  { %v1144_v20 = vpop.f32.mrf.mxu1  ;;  %v928_v3 = vadd.f32 %v1163_v41, %v1553_v62 }
 0x3d0   :  { %v1032_v15 = vpack.c.bf16 %v720_v35, %v720_v35  ;;  %v718_v48 = vadd.f32 %v1332_v45, %v705_v36  ;;  %v919_v38 = vpop.f32.mrf.mxu0 }
 0x3d1   :  { %v935_v4 = vadd.f32 %v928_v3, %v1363_v60  ;;  %v707_v19 = vpop.f32.mrf.mxu1  ;;  %v920_v34 = vadd.f32 %v1553_v62, %v919_v38 }
 0x3d2   :  { %v738_v56 = vsel %vm1559_vm4, %v1032_v15, %v1006_v42  ;;  %v1030_v49 = vpack.c.bf16 %v718_v48, %v718_v48  ;;  %v708_v54 = vadd.f32 %v1553_v62, %v707_v19  ;;  %v1164_v58 = vpop.f32.mrf.mxu0 }
 0x3d3   :  { %1007 = vst [vmem:[%s1665_s7 + $0x20] sm:$0x1] %v738_v56  ;;  %v1035_v45 = vpack.c.bf16 %v935_v4, %v935_v4  ;;  %v933_v60 = vadd.f32 %v920_v34, %v1343_v51 }
 0x3d4   :  { %1004 = vst.msk [vmem:[%s1665_s7 + $0x18] sm:$0xf] %vm301_vm5, %v1030_v49  ;;  %v719_v59 = vadd.f32 %v1341_v50, %v708_v54  ;;  %v922_v61 = vpop.f32.mrf.mxu0 }
 0x3d5   :  { %v953_v0 = vsel %vm1559_vm4, %v1035_v45, %v1022_v53  ;;  %v1033_v5 = vpack.c.bf16 %v933_v60, %v933_v60  ;;  %v923_v25 = vadd.f32 %v1553_v62, %v922_v61 }
 0x3d6   :  { %1023 = vst [vmem:[%s1665_s7 + $0x2c] sm:$0x1] %v953_v0  ;;  %v1031_v1 = vpack.c.bf16 %v719_v59, %v719_v59 }
 0x3d7   :  { %1020 = vst.msk [vmem:[%s1665_s7 + $0x24] sm:$0xf] %vm301_vm5, %v1033_v5  ;;  %v934_v51 = vadd.f32 %v923_v25, %v1352_v55 }
 0x3d8   :  { %1005 = vst.msk [vmem:[%s1665_s7 + $0x1c] sm:$0xf] %vm301_vm5, %v1031_v1 }
 0x3d9   :  { %v1034_v50 = vpack.c.bf16 %v934_v51, %v934_v51 }
 0x3db   :  { %1021 = vst.msk [vmem:[%s1665_s7 + $0x28] sm:$0xf] %vm301_vm5, %v1034_v50 }

</bundles_post_ra>
